<compile_context>
chip_gen: v5e
topology: v5e:2x2
jax: 0.10.0
libtpu: 0.0.40
codegen_flags: <defaults>
</compile_context>

<pallas_src>
import jax
import jax.numpy as jnp
from jax.experimental import pallas as pl
from jax.experimental.pallas import tpu as pltpu

TM = 256          # batch tile (multiple of 256 -> full MXU rows on v6e/v7x; also 128-aligned for v5e)
OUT_LANES = 128   # lane-dense output slab width


def _mlp_kernel(x_ref, w1_ref, b1_ref, w2_ref, b2_ref, w3_ref, b3_ref, o_ref):
    # Layer 1: (TM, Z) bf16 @ (Z, 512) bf16 -> f32 accumulation, + bias, ReLU.
    h1 = jnp.dot(x_ref[...], w1_ref[...], preferred_element_type=jnp.float32)
    h1 = jnp.maximum(h1 + b1_ref[...], 0.0)

    # Layer 2: bf16 matmul inputs, f32 accumulation, + bias, ReLU.
    h2 = jnp.dot(h1.astype(jnp.bfloat16), w2_ref[...],
                 preferred_element_type=jnp.float32)
    h2 = jnp.maximum(h2 + b2_ref[...], 0.0)

    # Layer 3 (out_features == 1): VPU multiply + lane reduction instead of a
    # 1-column MXU matmul (which would waste >99% of the systolic array).
    logit = jnp.sum(h2 * w3_ref[...].astype(jnp.float32), axis=-1, keepdims=True)
    logit = logit + b3_ref[...]

    # EUP-friendly sigmoid: tanh issues on the (otherwise idle) EUP slot.
    sig = 0.5 * (jnp.tanh(0.5 * logit) + 1.0)

    # Lane-dense store: broadcast the single column across 128 lanes; wrapper slices col 0.
    o_ref[...] = jnp.broadcast_to(sig, o_ref.shape)


def discriminator_z_forward(x, params):
    """x: (B, z) float32. params: dict of transposed weights/biases. Returns (B, 1) f32."""
    B, Z = x.shape
    n_tiles = pl.cdiv(B, TM)
    b_pad = n_tiles * TM

    # bf16 matmul operands (halves weight DMA, native MXU rate); biases stay f32.
    x_p = jnp.zeros((b_pad, Z), jnp.bfloat16).at[:B].set(x.astype(jnp.bfloat16))
    w1 = params["w1"].astype(jnp.bfloat16)
    w2 = params["w2"].astype(jnp.bfloat16)
    w3 = params["w3"].reshape(1, -1).astype(jnp.bfloat16)   # (1, 512) row for bcast-mul
    b1 = params["b1"].astype(jnp.float32)
    b2 = params["b2"].astype(jnp.float32)
    b3 = params["b3"].reshape(1, 1).astype(jnp.float32)

    # Weights/biases: full block, constant block index -> fetched once, resident across steps.
    def resident(arr):
        return pl.BlockSpec(arr.shape, lambda i: (0, 0))

    out = pl.pallas_call(
        _mlp_kernel,
        out_shape=jax.ShapeDtypeStruct((b_pad, OUT_LANES), jnp.float32),
        grid=(n_tiles,),
        in_specs=[
            pl.BlockSpec((TM, Z), lambda i: (i, 0)),   # x: streamed per batch tile
            resident(w1), resident(b1),
            resident(w2), resident(b2),
            resident(w3), resident(b3),
        ],
        out_specs=pl.BlockSpec((TM, OUT_LANES), lambda i: (i, 0)),
        compiler_params=pltpu.CompilerParams(
            dimension_semantics=("parallel",),
            vmem_limit_bytes=16 << 20,
        ),
    )(x_p, w1, b1, w2, b2, w3, b3)

    return out[:B, :1]


def init_params(key, z_dim, hidden=512):
    """Deterministic PyTorch-Linear-style uniform init, weights stored (in, out)."""
    ks = jax.random.split(key, 6)

    def linear(kw, kb, fan_in, fan_out):
        bound = 1.0 / jnp.sqrt(fan_in)
        w = jax.random.uniform(kw, (fan_in, fan_out), jnp.float32, -bound, bound)
        b = jax.random.uniform(kb, (1, fan_out), jnp.float32, -bound, bound)
        return w, b

    w1, b1 = linear(ks[0], ks[1], z_dim, hidden)
    w2, b2 = linear(ks[2], ks[3], hidden, hidden)
    w3, b3 = linear(ks[4], ks[5], hidden, 1)
    return {"w1": w1, "b1": b1, "w2": w2, "b2": b2, "w3": w3, "b3": b3}


def reference_forward(x, params):
    """Pure-JAX f32 reference of the PyTorch forward."""
    h1 = jnp.maximum(x @ params["w1"] + params["b1"], 0.0)
    h2 = jnp.maximum(h1 @ params["w2"] + params["b2"], 0.0)
    return jax.nn.sigmoid(h2 @ params["w3"] + params["b3"])


if __name__ == "__main__":
    key = jax.random.PRNGKey(0)
    batch_size, z_dim = 8, 32

    k_x, k_p = jax.random.split(key)
    # Module does x.view(batch_size, -1); we build the already-flattened (B, z) input.
    x = jax.random.normal(k_x, (batch_size, z_dim), dtype=jnp.float32)
    params = init_params(k_p, z_dim)

    out = discriminator_z_forward(x, params)
    out = jax.block_until_ready(out)

    ref = reference_forward(x, params)
    assert out.shape == (batch_size, 1)
    # bf16 matmul operands (f32 accumulation) -> loosened tolerance vs f32 reference.
    assert jnp.allclose(out, ref, atol=2e-2, rtol=2e-2)

    print("KERNEL_OK")
</pallas_src>

<mosaic_0001>
module attributes {stable_mosaic.version = 11 : i64} {
  func.func @_mlp_kernel(%arg0: i32, %arg1: memref<256x32xbf16, #tpu.memory_space<vmem>>, %arg2: memref<32x512xbf16, #tpu.memory_space<vmem>>, %arg3: memref<1x512xf32, #tpu.memory_space<vmem>>, %arg4: memref<512x512xbf16, #tpu.memory_space<vmem>>, %arg5: memref<1x512xf32, #tpu.memory_space<vmem>>, %arg6: memref<1x512xbf16, #tpu.memory_space<vmem>>, %arg7: memref<1x1xf32, #tpu.memory_space<vmem>>, %arg8: memref<256x128xf32, #tpu.memory_space<vmem>>) attributes {dimension_semantics = [#tpu.dimension_semantics<parallel>], iteration_bounds = array<i64: 1>, scalar_prefetch = 0 : i64, scratch_operands = 0 : i64, tpu.core_type = #tpu.core_type<tc>, window_params = [{transform_indices = @transform_0, window_bounds = array<i64: 256, 32>}, {pipeline_mode = #tpu.pipeline_mode<synchronous>, transform_indices = @transform_1, window_bounds = array<i64: 32, 512>}, {pipeline_mode = #tpu.pipeline_mode<synchronous>, transform_indices = @transform_2, window_bounds = array<i64: 1, 512>}, {pipeline_mode = #tpu.pipeline_mode<synchronous>, transform_indices = @transform_3, window_bounds = array<i64: 512, 512>}, {pipeline_mode = #tpu.pipeline_mode<synchronous>, transform_indices = @transform_4, window_bounds = array<i64: 1, 512>}, {pipeline_mode = #tpu.pipeline_mode<synchronous>, transform_indices = @transform_5, window_bounds = array<i64: 1, 512>}, {pipeline_mode = #tpu.pipeline_mode<synchronous>, transform_indices = @transform_6, window_bounds = array<i64: 1, 1>}, {transform_indices = @transform_7, window_bounds = array<i64: 256, 128>}]} {
    %c0 = arith.constant 0 : index
    %c0_0 = arith.constant 0 : index
    %0 = vector.load %arg1[%c0, %c0_0] : memref<256x32xbf16, #tpu.memory_space<vmem>>, vector<256x32xbf16>
    %c0_1 = arith.constant 0 : index
    %c0_2 = arith.constant 0 : index
    %1 = vector.load %arg2[%c0_1, %c0_2] : memref<32x512xbf16, #tpu.memory_space<vmem>>, vector<32x512xbf16>
    %cst = arith.constant dense<0.000000e+00> : vector<256x512xf32>
    %2 = tpu.matmul %0, %1, %cst {dimension_numbers = #tpu.dot_dimension_numbers<[1], [0], [0], [1], [0, 0, 1, 1], [], []>} : vector<256x32xbf16>, vector<32x512xbf16>, vector<256x512xf32> -> vector<256x512xf32>
    %c0_3 = arith.constant 0 : index
    %c0_4 = arith.constant 0 : index
    %3 = vector.load %arg3[%c0_3, %c0_4] : memref<1x512xf32, #tpu.memory_space<vmem>>, vector<1x512xf32>
    %4 = vector.broadcast %3 : vector<1x512xf32> to vector<256x512xf32>
    %5 = arith.addf %2, %4 : vector<256x512xf32>
    %cst_5 = arith.constant 0.000000e+00 : f32
    %6 = vector.broadcast %cst_5 : f32 to vector<256x512xf32>
    %7 = arith.maximumf %5, %6 : vector<256x512xf32>
    %8 = arith.truncf %7 : vector<256x512xf32> to vector<256x512xbf16>
    %c0_6 = arith.constant 0 : index
    %c0_7 = arith.constant 0 : index
    %9 = vector.load %arg4[%c0_6, %c0_7] : memref<512x512xbf16, #tpu.memory_space<vmem>>, vector<512x512xbf16>
    %cst_8 = arith.constant dense<0.000000e+00> : vector<256x512xf32>
    %10 = tpu.matmul %8, %9, %cst_8 {dimension_numbers = #tpu.dot_dimension_numbers<[1], [0], [0], [1], [0, 0, 1, 1], [], []>} : vector<256x512xbf16>, vector<512x512xbf16>, vector<256x512xf32> -> vector<256x512xf32>
    %c0_9 = arith.constant 0 : index
    %c0_10 = arith.constant 0 : index
    %11 = vector.load %arg5[%c0_9, %c0_10] : memref<1x512xf32, #tpu.memory_space<vmem>>, vector<1x512xf32>
    %12 = vector.broadcast %11 : vector<1x512xf32> to vector<256x512xf32>
    %13 = arith.addf %10, %12 : vector<256x512xf32>
    %cst_11 = arith.constant 0.000000e+00 : f32
    %14 = vector.broadcast %cst_11 : f32 to vector<256x512xf32>
    %15 = arith.maximumf %13, %14 : vector<256x512xf32>
    %c0_12 = arith.constant 0 : index
    %c0_13 = arith.constant 0 : index
    %16 = vector.load %arg6[%c0_12, %c0_13] : memref<1x512xbf16, #tpu.memory_space<vmem>>, vector<1x512xbf16>
    %17 = arith.extf %16 : vector<1x512xbf16> to vector<1x512xf32>
    %18 = vector.broadcast %17 : vector<1x512xf32> to vector<256x512xf32>
    %19 = arith.mulf %15, %18 : vector<256x512xf32>
    %cst_14 = arith.constant dense<0.000000e+00> : vector<256xf32>
    %20 = vector.multi_reduction <add>, %19, %cst_14 [1] : vector<256x512xf32> to vector<256xf32>
    %21 = vector.shape_cast %20 : vector<256xf32> to vector<256x1xf32>
    %c0_15 = arith.constant 0 : index
    %c0_16 = arith.constant 0 : index
    %22 = vector.load %arg7[%c0_15, %c0_16] : memref<1x1xf32, #tpu.memory_space<vmem>>, vector<1x1xf32>
    %23 = vector.broadcast %22 : vector<1x1xf32> to vector<256x1xf32>
    %24 = arith.addf %21, %23 : vector<256x1xf32>
    %cst_17 = arith.constant 5.000000e-01 : f32
    %25 = vector.broadcast %cst_17 : f32 to vector<256x1xf32>
    %26 = arith.mulf %25, %24 : vector<256x1xf32>
    %27 = math.tanh %26 : vector<256x1xf32>
    %cst_18 = arith.constant 1.000000e+00 : f32
    %28 = vector.broadcast %cst_18 : f32 to vector<256x1xf32>
    %29 = arith.addf %27, %28 : vector<256x1xf32>
    %cst_19 = arith.constant 5.000000e-01 : f32
    %30 = vector.broadcast %cst_19 : f32 to vector<256x1xf32>
    %31 = arith.mulf %30, %29 : vector<256x1xf32>
    %32 = vector.shape_cast %31 : vector<256x1xf32> to vector<256x1xf32>
    %33 = vector.broadcast %32 : vector<256x1xf32> to vector<256x128xf32>
    %c0_20 = arith.constant 0 : index
    %c0_21 = arith.constant 0 : index
    %34 = vector.load %arg8[%c0_20, %c0_21] : memref<256x128xf32, #tpu.memory_space<vmem>>, vector<256x128xf32>
    tpu.vector_store %arg8[%c0_20, %c0_21], %33 {strides = array<i32>} : memref<256x128xf32, #tpu.memory_space<vmem>>, vector<256x128xf32>,
    return
  }
  func.func @transform_0(%arg0: i32) -> (i32, i32) {
    %c0_i32 = arith.constant 0 : i32
    %c0_i32_0 = arith.constant 0 : i32
    return %arg0, %c0_i32 : i32, i32
  }
  func.func @transform_1(%arg0: i32) -> (i32, i32) {
    %c0_i32 = arith.constant 0 : i32
    %c0_i32_0 = arith.constant 0 : i32
    %c0_i32_1 = arith.constant 0 : i32
    return %c0_i32, %c0_i32_0 : i32, i32
  }
  func.func @transform_2(%arg0: i32) -> (i32, i32) {
    %c0_i32 = arith.constant 0 : i32
    %c0_i32_0 = arith.constant 0 : i32
    %c0_i32_1 = arith.constant 0 : i32
    return %c0_i32, %c0_i32_0 : i32, i32
  }
  func.func @transform_3(%arg0: i32) -> (i32, i32) {
    %c0_i32 = arith.constant 0 : i32
    %c0_i32_0 = arith.constant 0 : i32
    %c0_i32_1 = arith.constant 0 : i32
    return %c0_i32, %c0_i32_0 : i32, i32
  }
  func.func @transform_4(%arg0: i32) -> (i32, i32) {
    %c0_i32 = arith.constant 0 : i32
    %c0_i32_0 = arith.constant 0 : i32
    %c0_i32_1 = arith.constant 0 : i32
    return %c0_i32, %c0_i32_0 : i32, i32
  }
  func.func @transform_5(%arg0: i32) -> (i32, i32) {
    %c0_i32 = arith.constant 0 : i32
    %c0_i32_0 = arith.constant 0 : i32
    %c0_i32_1 = arith.constant 0 : i32
    return %c0_i32, %c0_i32_0 : i32, i32
  }
  func.func @transform_6(%arg0: i32) -> (i32, i32) {
    %c0_i32 = arith.constant 0 : i32
    %c0_i32_0 = arith.constant 0 : i32
    %c0_i32_1 = arith.constant 0 : i32
    return %c0_i32, %c0_i32_0 : i32, i32
  }
  func.func @transform_7(%arg0: i32) -> (i32, i32) {
    %c0_i32 = arith.constant 0 : i32
    %c0_i32_0 = arith.constant 0 : i32
    return %arg0, %c0_i32 : i32, i32
  }
}

</mosaic_0001>

<bundles_post_ra>
// kernel: tpu_custom_call.1
= control target key start
LH: loop header
LB: loop body
LE: loop exit
PB: predicated region body
PF: predicated region fallthrough
CT: control target
= control target key end

     0   :  { %s6198_s0 = inlined_call_operand.vmem [shape: bf16[256,32], index: 0, kind: input, shape index: {}]   ;;  %s6199_s1 = inlined_call_operand.vmem [shape: bf16[32,512], index: 1, kind: input, shape index: {}]   ;;  %s6200_s2 = inlined_call_operand.vmem [shape: f32[1,512], index: 2, kind: input, shape index: {}]   ;;  %s6201_s3 = inlined_call_operand.hbm [shape: bf16[512,512], index: 3, kind: input, shape index: {}]   ;;  %s6202_s4 = inlined_call_operand.vmem [shape: f32[1,512], index: 4, kind: input, shape index: {}]   ;;  %s6203_s5 = inlined_call_operand.vmem [shape: bf16[1,512], index: 5, kind: input, shape index: {}]   ;;  %s6204_s6 = inlined_call_operand.<no memory space> [shape: f32[1,1], index: 6, kind: input, shape index: {}]   ;;  %s6205_s7 = inlined_call_operand.hbm [shape: f32[256,128], index: 7, kind: output, shape index: {}]  }
   0x1   :  { %v12_v0 = vstv %s6204_s6 }
   0x2   :  { %13 = vst [vmem:[#allocation2] sm:$0x1] %v12_v0 }
   0x3   :  { %14 = vsyncpa [#allocation4], 0 }
   0x4   :  { %15 = vsyncpa [#allocation5], 0  ;;  %s26_s28 = sshll.u32 %s6201_s3, 4  ;;  %s4773_s29 = smov [#allocation3]   ;;  %s27_s28 = int_to_ptr.hbm [resolvable:$true] %s26_s28 }
   0x5   :  { %s28_s30 = sshll.u32 %s4773_s29, 4  ;;  %s4774_s8 = smov 256   ;;  %s29_s30 = int_to_ptr.vmem [resolvable:$true] %s28_s30 }
   0x6   :  { %s4775_s9 = smov 16  }
   0x7   :  { %34 = dma.hbm_to_vmem [thread:$0]  %s27_s28, 16384, %s29_s30, [#allocation4], %s4774_s8, %s4774_s8, %s4775_s9  }
   0x8   :  { %4769 = dma.done.wait [#allocation4], 16384  }
   0x9   :  { %4770 = vsyncadd [#allocation4], 4294950912  ;;  %v3903_v1 = vld [vmem:[%s6199_s1 + $0x20] sm:$0xf]  ;;  %v4515_v2 = vld [vmem:[%s6199_s1 + $0x2c] sm:$0xf0] }
   0xa   :  { %v4513_v3 = vld [vmem:[%s6199_s1 + $0x24] sm:$0xf]  ;;  %v3904_v4 = vor.u32 %v4515_v2, %v3903_v1  ;;  %v3905_v5 = vld [vmem:[%s6199_s1 + $0x30] sm:$0xf0]  ;;  %v3911_v6 = vld [vmem:[%s6199_s1 + $0x28] sm:$0xf] }
   0xb   :  { %v4516_v7 = vld [vmem:[%s6199_s1 + $0x34] sm:$0xf0]  ;;  %v3908_v8 = vor.u32 %v4513_v3, %v3905_v5  ;;  %v4514_v10 = vld [vmem:[%s6199_s1 + $0x2c] sm:$0xf]  ;;  %v3913_v11 = vld [vmem:[%s6199_s1 + $0x38] sm:$0xf0] }
   0xc   :  { %v3912_v9 = vor.u32 %v4516_v7, %v3911_v6  ;;  %v3887_v12 = vld [vmem:[%s6199_s1] sm:$0xf]  ;;  %271 = vmatpush.bf16.msra.mxu0 %v3904_v4  ;;  %v3916_v13 = vor.u32 %v4514_v10, %v3913_v11  ;;  %v4511_v14 = vld [vmem:[%s6199_s1 + $0xc] sm:$0xf0]  ;;  %v4509_v15 = vld [vmem:[%s6199_s1 + $0x4] sm:$0xf] }
   0xd   :  { %v3889_v16 = vld [vmem:[%s6199_s1 + $0x10] sm:$0xf0]  ;;  %360 = vmatpush.bf16.msra.mxu1 %v3908_v8  ;;  %v3888_v17 = vor.u32 %v4511_v14, %v3887_v12  ;;  %v3895_v19 = vld [vmem:[%s6199_s1 + $0x8] sm:$0xf]  ;;  %v4512_v20 = vld [vmem:[%s6199_s1 + $0x14] sm:$0xf0] }
   0xe   :  { %449 = vmatpush.bf16.msra.mxu2 %v3912_v9  ;;  %v3892_v18 = vor.u32 %v4509_v15, %v3889_v16  ;;  %v4510_v21 = vld [vmem:[%s6199_s1 + $0xc] sm:$0xf]  ;;  %538 = vmatpush.bf16.msra.mxu3 %v3916_v13  ;;  %v3896_v22 = vor.u32 %v4512_v20, %v3895_v19  ;;  %v3897_v23 = vld [vmem:[%s6199_s1 + $0x18] sm:$0xf0]  ;;  %v4493_v24 = vld [vmem:[%s6198_s0] sm:$0xff]  ;;  %vm216_vm0 = vcmask 261120  }
   0xf   :  { %v4351_v25 = vld [vmem:[#allocation3 + $0x2e0] sm:$0xf]  ;;  %v3900_v26 = vor.u32 %v4510_v21, %v3897_v23  ;;  %v4611_v27 = vld [vmem:[#allocation3 + $0x2ec] sm:$0xf0]  ;;  %v4494_v50 = vld [vmem:[%s6198_s0 + $0x8] sm:$0xff]  ;;  %s3808_s28 = sshll.u32 %s6205_s7, 4  ;;  %s3809_s28 = int_to_ptr.hbm [resolvable:$true] %s3808_s28 }
  0x10   :  { %v4095_v28 = vld [vmem:[#allocation3 + $0xe0] sm:$0xf]  ;;  %v4547_v29 = vld [vmem:[#allocation3 + $0xec] sm:$0xf0]  ;;  %272 = vmatpush.bf16.msra.mxu0 %v3888_v17  ;;  %v4352_v30 = vor.u32 %v4611_v27, %v4351_v25  ;;  %v4496_v0 = vld [vmem:[%s6198_s0 + $0x18] sm:$0xff]  ;;  %s4778_s29 = smov 128  }
  0x11   :  { %v4479_v31 = vld [vmem:[#allocation3 + $0x3e0] sm:$0xf]  ;;  %v4643_v32 = vld [vmem:[#allocation3 + $0x3ec] sm:$0xf0]  ;;  %361 = vmatpush.bf16.msra.mxu1 %v3892_v18  ;;  %v4096_v34 = vor.u32 %v4547_v29, %v4095_v28  ;;  %v4498_v14 = vld [vmem:[%s6198_s0 + $0x28] sm:$0xff]  ;;  %s4779_s30 = smov 8  }
  0x12   :  { %v4223_v33 = vld [vmem:[#allocation3 + $0x1e0] sm:$0xf]  ;;  %450 = vmatpush.bf16.msra.mxu2 %v3896_v22  ;;  %v4480_v35 = vor.u32 %v4643_v32, %v4479_v31  ;;  %v4579_v36 = vld [vmem:[#allocation3 + $0x1ec] sm:$0xf0]  ;;  %539 = vmatpush.bf16.msra.mxu3 %v3900_v26  ;;  %v4500_v28 = vld [vmem:[%s6198_s0 + $0x38] sm:$0xff] }
  0x13   :  { %v4224_v37 = vor.u32 %v4579_v36, %v4223_v33  ;;  %3917 = vmatmul.msk.bf16.vlgmr.msra.gmra.mxu0 %vm216_vm0, %v4493_v24  ;;  %v4335_v38 = vld [vmem:[#allocation3 + $0x2c0] sm:$0xf]  ;;  %v4607_v39 = vld [vmem:[#allocation3 + $0x2cc] sm:$0xf0] }
  0x14   :  { %3933 = vmatmul.msk.bf16.vlgmr.msra.gmra.mxu1 %vm216_vm0, %v4493_v24  ;;  %1591 = vmatpush.bf16.msrb.mxu0 %v4096_v34  ;;  %v4079_v40 = vld [vmem:[#allocation3 + $0xc0] sm:$0xf]  ;;  %v4336_v41 = vor.u32 %v4607_v39, %v4335_v38  ;;  %v4543_v42 = vld [vmem:[#allocation3 + $0xcc] sm:$0xf0] }
  0x15   :  { %3949 = vmatmul.msk.bf16.vlgmr.msra.gmra.mxu2 %vm216_vm0, %v4493_v24  ;;  %3965 = vmatmul.msk.bf16.vlgmr.msra.gmra.mxu3 %vm216_vm0, %v4493_v24  ;;  %v4463_v43 = vld [vmem:[#allocation3 + $0x3c0] sm:$0xf]  ;;  %v4639_v44 = vld [vmem:[#allocation3 + $0x3cc] sm:$0xf0]  ;;  %v4080_v45 = vor.u32 %v4543_v42, %v4079_v40 }
  0x16   :  { %1769 = vmatpush.bf16.msrb.mxu2 %v4352_v30  ;;  %1858 = vmatpush.bf16.msrb.mxu3 %v4480_v35  ;;  %v4464_v46 = vor.u32 %v4639_v44, %v4463_v43  ;;  %v4207_v47 = vld [vmem:[#allocation3 + $0x1c0] sm:$0xf]  ;;  %v4575_v48 = vld [vmem:[#allocation3 + $0x1cc] sm:$0xf0] }
  0x17   :  { %1680 = vmatpush.bf16.msrb.mxu1 %v4224_v37  ;;  %v4208_v49 = vor.u32 %v4575_v48, %v4207_v47  ;;  %v4495_v51 = vld [vmem:[%s6198_s0 + $0x10] sm:$0xff]  ;;  %v4319_v52 = vld [vmem:[#allocation3 + $0x2a0] sm:$0xf] }
  0x18   :  { %1592 = vmatpush.bf16.msrb.mxu0 %v4080_v45  ;;  %v4603_v53 = vld [vmem:[#allocation3 + $0x2ac] sm:$0xf0]  ;;  %v4063_v54 = vld [vmem:[#allocation3 + $0xa0] sm:$0xf] }
  0x19   :  { %v4320_v55 = vor.u32 %v4603_v53, %v4319_v52  ;;  %v4539_v56 = vld [vmem:[#allocation3 + $0xac] sm:$0xf0]  ;;  %v4447_v57 = vld [vmem:[#allocation3 + $0x3a0] sm:$0xf] }
  0x1a   :  { %1770 = vmatpush.bf16.msrb.mxu2 %v4336_v41  ;;  %1859 = vmatpush.bf16.msrb.mxu3 %v4464_v46  ;;  %v4635_v58 = vld [vmem:[#allocation3 + $0x3ac] sm:$0xf0]  ;;  %v4064_v59 = vor.u32 %v4539_v56, %v4063_v54  ;;  %v4191_v61 = vld [vmem:[#allocation3 + $0x1a0] sm:$0xf] }
  0x1b   :  { %1681 = vmatpush.bf16.msrb.mxu1 %v4208_v49  ;;  %v4448_v60 = vor.u32 %v4635_v58, %v4447_v57  ;;  %v4571_v62 = vld [vmem:[#allocation3 + $0x1ac] sm:$0xf0]  ;;  %v4497_v1 = vld [vmem:[%s6198_s0 + $0x20] sm:$0xff] }
  0x1c   :  { %v4192_v63 = vor.u32 %v4571_v62, %v4191_v61  ;;  %1593 = vmatpush.bf16.msrb.mxu0 %v4064_v59  ;;  %v4303_v2 = vld [vmem:[#allocation3 + $0x280] sm:$0xf]  ;;  %v4599_v3 = vld [vmem:[#allocation3 + $0x28c] sm:$0xf0] }
  0x1d   :  { %v4047_v4 = vld [vmem:[#allocation3 + $0x80] sm:$0xf]  ;;  %v4304_v5 = vor.u32 %v4599_v3, %v4303_v2  ;;  %v4535_v6 = vld [vmem:[#allocation3 + $0x8c] sm:$0xf0]  ;;  %v4502_v2 = vld [vmem:[%s6198_s0 + $0x48] sm:$0xff] }
  0x1e   :  { %1771 = vmatpush.bf16.msrb.mxu2 %v4320_v55  ;;  %1860 = vmatpush.bf16.msrb.mxu3 %v4448_v60  ;;  %v4431_v7 = vld [vmem:[#allocation3 + $0x380] sm:$0xf]  ;;  %v4631_v8 = vld [vmem:[#allocation3 + $0x38c] sm:$0xf0]  ;;  %v4048_v9 = vor.u32 %v4535_v6, %v4047_v4 }
  0x1f   :  { %1682 = vmatpush.bf16.msrb.mxu1 %v4192_v63  ;;  %v4432_v10 = vor.u32 %v4631_v8, %v4431_v7  ;;  %v4175_v11 = vld [vmem:[#allocation3 + $0x180] sm:$0xf]  ;;  %v4567_v12 = vld [vmem:[#allocation3 + $0x18c] sm:$0xf0] }
  0x20   :  { %v4176_v13 = vor.u32 %v4567_v12, %v4175_v11  ;;  %1594 = vmatpush.bf16.msrb.mxu0 %v4048_v9  ;;  %v4499_v15 = vld [vmem:[%s6198_s0 + $0x30] sm:$0xff]  ;;  %v4287_v16 = vld [vmem:[#allocation3 + $0x260] sm:$0xf] }
  0x21   :  { %v4595_v17 = vld [vmem:[#allocation3 + $0x26c] sm:$0xf0]  ;;  %v4031_v18 = vld [vmem:[#allocation3 + $0x60] sm:$0xf] }
  0x22   :  { %1772 = vmatpush.bf16.msrb.mxu2 %v4304_v5  ;;  %1861 = vmatpush.bf16.msrb.mxu3 %v4432_v10  ;;  %v4288_v19 = vor.u32 %v4595_v17, %v4287_v16  ;;  %v4531_v20 = vld [vmem:[#allocation3 + $0x6c] sm:$0xf0]  ;;  %v4415_v21 = vld [vmem:[#allocation3 + $0x360] sm:$0xf] }
  0x23   :  { %3918 = vmatmul.msk.bf16.gmra.mxu0 %vm216_vm0, %v4494_v50  ;;  %1683 = vmatpush.bf16.msrb.mxu1 %v4176_v13  ;;  %v4627_v22 = vld [vmem:[#allocation3 + $0x36c] sm:$0xf0]  ;;  %v4032_v23 = vor.u32 %v4531_v20, %v4031_v18  ;;  %v4159_v25 = vld [vmem:[#allocation3 + $0x160] sm:$0xf] }
  0x24   :  { %3934 = vmatmul.msk.bf16.gmra.mxu1 %vm216_vm0, %v4494_v50  ;;  %v4416_v24 = vor.u32 %v4627_v22, %v4415_v21  ;;  %v4563_v26 = vld [vmem:[#allocation3 + $0x16c] sm:$0xf0]  ;;  %v4501_v29 = vld [vmem:[%s6198_s0 + $0x40] sm:$0xff] }
  0x25   :  { %3950 = vmatmul.msk.bf16.gmra.mxu2 %vm216_vm0, %v4494_v50  ;;  %3966 = vmatmul.msk.bf16.gmra.mxu3 %vm216_vm0, %v4494_v50  ;;  %v4160_v27 = vor.u32 %v4563_v26, %v4159_v25  ;;  %v86_v30 = vld [vmem:[%s6200_s2] sm:$0xf]  ;;  %v4591_v36 = vld [vmem:[#allocation3 + $0x24c] sm:$0xf0] }
  0x26   :  { %1773 = vmatpush.bf16.msrb.mxu2 %v4288_v19  ;;  %1595 = vmatpush.bf16.msrb.mxu0 %v4032_v23  ;;  %v4936_v33 = vperm.slane %v86_v30, 0  ;;  %v4939_v34 = vperm.slane %v86_v30, 1  ;;  %v4271_v35 = vld [vmem:[#allocation3 + $0x240] sm:$0xf]  ;;  %v4527_v39 = vld [vmem:[#allocation3 + $0x4c] sm:$0xf0] }
  0x27   :  { %1862 = vmatpush.bf16.msrb.mxu3 %v4416_v24  ;;  %1684 = vmatpush.bf16.msrb.mxu1 %v4160_v27  ;;  %v4015_v37 = vld [vmem:[#allocation3 + $0x40] sm:$0xf]  ;;  %v4272_v38 = vor.u32 %v4591_v36, %v4271_v35  ;;  %v4623_v41 = vld [vmem:[#allocation3 + $0x34c] sm:$0xf0]  ;;  %v4949_v52 = vperm.slane %v86_v30, 3 }
  0x28   :  { %v4399_v40 = vld [vmem:[#allocation3 + $0x340] sm:$0xf]  ;;  %v4016_v44 = vor.u32 %v4527_v39, %v4015_v37  ;;  %v4559_v57 = vld [vmem:[#allocation3 + $0x14c] sm:$0xf0] }
  0x29   :  { %v4400_v45 = vor.u32 %v4623_v41, %v4399_v40  ;;  %v4143_v56 = vld [vmem:[#allocation3 + $0x140] sm:$0xf] }
  0x2a   :  { %1774 = vmatpush.bf16.msrb.mxu2 %v4272_v38  ;;  %1596 = vmatpush.bf16.msrb.mxu0 %v4016_v44  ;;  %v4144_v60 = vor.u32 %v4559_v57, %v4143_v56 }
  0x2b   :  { %1863 = vmatpush.bf16.msrb.mxu3 %v4400_v45  ;;  %v4255_v45 = vld [vmem:[#allocation3 + $0x220] sm:$0xf] }
  0x2c   :  { %1685 = vmatpush.bf16.msrb.mxu1 %v4144_v60 }
  0x33   :  { %3919 = vmatmul.msk.bf16.gmra.mxu0 %vm216_vm0, %v4495_v51 }
  0x34   :  { %3935 = vmatmul.msk.bf16.gmra.mxu1 %vm216_vm0, %v4495_v51 }
  0x35   :  { %3951 = vmatmul.msk.bf16.gmra.mxu2 %vm216_vm0, %v4495_v51  ;;  %3967 = vmatmul.msk.bf16.gmra.mxu3 %vm216_vm0, %v4495_v51  ;;  %v4947_v51 = vperm.slane %v86_v30, 2 }
  0x43   :  { %3920 = vmatmul.msk.bf16.gmra.mxu0 %vm216_vm0, %v4496_v0 }
  0x44   :  { %3936 = vmatmul.msk.bf16.gmra.mxu1 %vm216_vm0, %v4496_v0 }
  0x45   :  { %3952 = vmatmul.msk.bf16.gmra.mxu2 %vm216_vm0, %v4496_v0  ;;  %3968 = vmatmul.msk.bf16.gmra.mxu3 %vm216_vm0, %v4496_v0 }
  0x53   :  { %3921 = vmatmul.msk.bf16.gmra.mxu0 %vm216_vm0, %v4497_v1 }
  0x54   :  { %3937 = vmatmul.msk.bf16.gmra.mxu1 %vm216_vm0, %v4497_v1 }
  0x55   :  { %3953 = vmatmul.msk.bf16.gmra.mxu2 %vm216_vm0, %v4497_v1  ;;  %3969 = vmatmul.msk.bf16.gmra.mxu3 %vm216_vm0, %v4497_v1 }
  0x63   :  { %3922 = vmatmul.msk.bf16.gmra.mxu0 %vm216_vm0, %v4498_v14 }
  0x64   :  { %3938 = vmatmul.msk.bf16.gmra.mxu1 %vm216_vm0, %v4498_v14 }
  0x65   :  { %3954 = vmatmul.msk.bf16.gmra.mxu2 %vm216_vm0, %v4498_v14  ;;  %3970 = vmatmul.msk.bf16.gmra.mxu3 %vm216_vm0, %v4498_v14 }
  0x73   :  { %3923 = vmatmul.msk.bf16.gmra.mxu0 %vm216_vm0, %v4499_v15 }
  0x74   :  { %3939 = vmatmul.msk.bf16.gmra.mxu1 %vm216_vm0, %v4499_v15 }
  0x75   :  { %3955 = vmatmul.msk.bf16.gmra.mxu2 %vm216_vm0, %v4499_v15  ;;  %3971 = vmatmul.msk.bf16.gmra.mxu3 %vm216_vm0, %v4499_v15 }
  0x83   :  { %3924 = vmatmul.msk.bf16.gmra.mxu0 %vm216_vm0, %v4500_v28 }
  0x84   :  { %3940 = vmatmul.msk.bf16.gmra.mxu1 %vm216_vm0, %v4500_v28 }
  0x85   :  { %3956 = vmatmul.msk.bf16.gmra.mxu2 %vm216_vm0, %v4500_v28  ;;  %3972 = vmatmul.msk.bf16.gmra.mxu3 %vm216_vm0, %v4500_v28 }
  0x90   :  { %v274_v31 = vpop.f32.mrf.mxu0 }
  0x91   :  { %v363_v32 = vpop.f32.mrf.mxu1  ;;  %v275_v42 = vadd.f32 %v274_v31, %v4936_v33  ;;  %v4503_v31 = vld [vmem:[%s6198_s0 + $0x50] sm:$0xff] }
  0x92   :  { %v364_v46 = vadd.f32 %v363_v32, %v4939_v34 }
  0x93   :  { %3925 = vmatmul.msk.bf16.gmra.mxu0 %vm216_vm0, %v4501_v29  ;;  %v621_v54 = vmax.f32 %v275_v42, 0.0 }
  0x94   :  { %3941 = vmatmul.msk.bf16.gmra.mxu1 %vm216_vm0, %v4501_v29  ;;  %v622_v58 = vmax.f32 %v364_v46, 0.0  ;;  %v4587_v46 = vld [vmem:[#allocation3 + $0x22c] sm:$0xf0] }
  0x95   :  { %3957 = vmatmul.msk.bf16.gmra.mxu2 %vm216_vm0, %v4501_v29  ;;  %3973 = vmatmul.msk.bf16.gmra.mxu3 %vm216_vm0, %v4501_v29 }
  0x98   :  { %v452_v43 = vpop.f32.mrf.mxu2  ;;  %v541_v47 = vpop.f32.mrf.mxu3 }
  0x99   :  { %v276_v48 = vpop.f32.mrf.mxu0  ;;  %v365_v50 = vpop.f32.mrf.mxu1  ;;  %v453_v62 = vadd.f32 %v452_v43, %v4947_v51  ;;  %v542_v0 = vadd.f32 %v541_v47, %v4949_v52  ;;  %v3999_v47 = vld [vmem:[#allocation3 + $0x20] sm:$0xf] }
  0x9a   :  { %v277_v49 = vadd.f32 %v276_v48, %v4936_v33  ;;  %v366_v53 = vadd.f32 %v365_v50, %v4939_v34  ;;  %v4256_v48 = vor.u32 %v4587_v46, %v4255_v45  ;;  %v4383_v50 = vld [vmem:[#allocation3 + $0x320] sm:$0xf] }
  0x9b   :  { %v623_v8 = vmax.f32 %v453_v62, 0.0  ;;  %v624_v10 = vmax.f32 %v542_v0, 0.0 }
  0x9c   :  { %v625_v55 = vmax.f32 %v277_v49, 0.0  ;;  %v626_v59 = vmax.f32 %v366_v53, 0.0  ;;  %v4523_v49 = vld [vmem:[#allocation3 + $0x2c] sm:$0xf0]  ;;  %1775 = vmatpush.bf16.msrb.mxu2 %v4256_v48 }
  0x9d   :  { %v4619_v53 = vld [vmem:[#allocation3 + $0x32c] sm:$0xf0]  ;;  %v4000_v56 = vor.u32 %v4523_v49, %v3999_v47 }
  0x9e   :  { %v4952_v61 = vpack.c.bf16 %v625_v55, %v621_v54  ;;  %v4955_v63 = vpack.c.bf16 %v626_v59, %v622_v58  ;;  %v4384_v57 = vor.u32 %v4619_v53, %v4383_v50  ;;  %v4505_v53 = vld [vmem:[%s6198_s0 + $0x60] sm:$0xff] }
  0x9f   :  { %1597 = vmatpush.bf16.msrb.mxu0 %v4000_v56 }
  0xa0   :  { %6299 = vst [vmem:[#allocation9_spill] sm:$0xff] %v4952_v61  ;;  %v454_v1 = vpop.f32.mrf.mxu2  ;;  %v543_v4 = vpop.f32.mrf.mxu3  ;;  %1864 = vmatpush.bf16.msrb.mxu3 %v4384_v57 }
  0xa1   :  { %6300 = vst [vmem:[#allocation10_spill] sm:$0xff] %v4955_v63  ;;  %v455_v3 = vadd.f32 %v454_v1, %v4947_v51  ;;  %v279_v5 = vpop.f32.mrf.mxu0  ;;  %v544_v6 = vadd.f32 %v543_v4, %v4949_v52  ;;  %v368_v7 = vpop.f32.mrf.mxu1  ;;  %v4127_v4 = vld [vmem:[#allocation3 + $0x120] sm:$0xf] }
  0xa2   :  { %v280_v14 = vadd.f32 %v279_v5, %v4936_v33  ;;  %v369_v16 = vadd.f32 %v368_v7, %v4939_v34  ;;  %v4555_v5 = vld [vmem:[#allocation3 + $0x12c] sm:$0xf0] }
  0xa3   :  { %v627_v9 = vmax.f32 %v455_v3, 0.0  ;;  %v628_v11 = vmax.f32 %v544_v6, 0.0  ;;  %3926 = vmatmul.msk.bf16.gmra.mxu0 %vm216_vm0, %v4502_v2 }
  0xa4   :  { %3942 = vmatmul.msk.bf16.gmra.mxu1 %vm216_vm0, %v4502_v2  ;;  %v629_v22 = vmax.f32 %v280_v14, 0.0  ;;  %v630_v24 = vmax.f32 %v369_v16, 0.0  ;;  %v4504_v16 = vld [vmem:[%s6198_s0 + $0x58] sm:$0xff] }
  0xa5   :  { %v4964_v12 = vpack.c.bf16 %v627_v9, %v623_v8  ;;  %3958 = vmatmul.msk.bf16.gmra.mxu2 %vm216_vm0, %v4502_v2  ;;  %v4968_v13 = vpack.c.bf16 %v628_v11, %v624_v10  ;;  %3974 = vmatmul.msk.bf16.gmra.mxu3 %vm216_vm0, %v4502_v2  ;;  %v4128_v8 = vor.u32 %v4555_v5, %v4127_v4  ;;  %v4583_v4 = vld [vmem:[#allocation3 + $0x20c] sm:$0xf0]  ;;  %v3983_v5 = vld [vmem:[#allocation3] sm:$0xf] }
  0xa7   :  { %6301 = vst [vmem:[#allocation11_spill] sm:$0xff] %v4964_v12  ;;  %1686 = vmatpush.bf16.msrb.mxu1 %v4128_v8  ;;  %v4367_v8 = vld [vmem:[#allocation3 + $0x300] sm:$0xf] }
  0xa8   :  { %6302 = vst [vmem:[#allocation12_spill] sm:$0xff] %v4968_v13  ;;  %v457_v15 = vpop.f32.mrf.mxu2  ;;  %v546_v17 = vpop.f32.mrf.mxu3 }
  0xa9   :  { %v281_v18 = vpop.f32.mrf.mxu0  ;;  %v370_v20 = vpop.f32.mrf.mxu1  ;;  %v458_v27 = vadd.f32 %v457_v15, %v4947_v51  ;;  %v547_v29 = vadd.f32 %v546_v17, %v4949_v52 }
  0xaa   :  { %v282_v19 = vadd.f32 %v281_v18, %v4936_v33  ;;  %v371_v21 = vadd.f32 %v370_v20, %v4939_v34 }
  0xab   :  { %v631_v39 = vmax.f32 %v458_v27, 0.0  ;;  %v632_v41 = vmax.f32 %v547_v29, 0.0 }
  0xac   :  { %v633_v23 = vmax.f32 %v282_v19, 0.0  ;;  %v634_v25 = vmax.f32 %v371_v21, 0.0 }
  0xae   :  { %v4975_v26 = vpack.c.bf16 %v633_v23, %v629_v22  ;;  %v4978_v28 = vpack.c.bf16 %v634_v25, %v630_v24 }
  0xb0   :  { %v459_v30 = vpop.f32.mrf.mxu2  ;;  %v548_v35 = vpop.f32.mrf.mxu3 }
  0xb1   :  { %v460_v32 = vadd.f32 %v459_v30, %v4947_v51  ;;  %v284_v36 = vpop.f32.mrf.mxu0  ;;  %v549_v37 = vadd.f32 %v548_v35, %v4949_v52  ;;  %v373_v38 = vpop.f32.mrf.mxu1 }
  0xb2   :  { %v285_v54 = vadd.f32 %v284_v36, %v4936_v33  ;;  %v374_v58 = vadd.f32 %v373_v38, %v4939_v34 }
  0xb3   :  { %v635_v40 = vmax.f32 %v460_v32, 0.0  ;;  %v636_v42 = vmax.f32 %v549_v37, 0.0  ;;  %3927 = vmatmul.msk.bf16.gmra.mxu0 %vm216_vm0, %v4503_v31 }
  0xb4   :  { %3943 = vmatmul.msk.bf16.gmra.mxu1 %vm216_vm0, %v4503_v31  ;;  %v637_v2 = vmax.f32 %v285_v54, 0.0  ;;  %v638_v6 = vmax.f32 %v374_v58, 0.0 }
  0xb5   :  { %v4987_v43 = vpack.c.bf16 %v635_v40, %v631_v39  ;;  %3959 = vmatmul.msk.bf16.gmra.mxu2 %vm216_vm0, %v4503_v31  ;;  %v4991_v44 = vpack.c.bf16 %v636_v42, %v632_v41  ;;  %3975 = vmatmul.msk.bf16.gmra.mxu3 %vm216_vm0, %v4503_v31 }
  0xb7   :  { %6303 = vst [vmem:[#allocation13_spill] sm:$0xff] %v4991_v44 }
  0xb8   :  { %v462_v55 = vpop.f32.mrf.mxu2  ;;  %v551_v59 = vpop.f32.mrf.mxu3 }
  0xb9   :  { %v286_v60 = vpop.f32.mrf.mxu0  ;;  %v375_v0 = vpop.f32.mrf.mxu1  ;;  %v463_v10 = vadd.f32 %v462_v55, %v4947_v51  ;;  %v552_v14 = vadd.f32 %v551_v59, %v4949_v52 }
  0xba   :  { %v287_v62 = vadd.f32 %v286_v60, %v4936_v33  ;;  %v376_v1 = vadd.f32 %v375_v0, %v4939_v34 }
  0xbb   :  { %v639_v22 = vmax.f32 %v463_v10, 0.0  ;;  %v640_v24 = vmax.f32 %v552_v14, 0.0  ;;  %v4615_v10 = vld [vmem:[#allocation3 + $0x30c] sm:$0xf0] }
  0xbc   :  { %v641_v3 = vmax.f32 %v287_v62, 0.0  ;;  %v642_v7 = vmax.f32 %v376_v1, 0.0 }
  0xbe   :  { %v4998_v9 = vpack.c.bf16 %v641_v3, %v637_v2  ;;  %v5001_v11 = vpack.c.bf16 %v642_v7, %v638_v6  ;;  %v4239_v3 = vld [vmem:[#allocation3 + $0x200] sm:$0xf]  ;;  %v4519_v7 = vld [vmem:[#allocation3 + $0xc] sm:$0xf0] }
  0xbf   :  { %v4240_v6 = vor.u32 %v4583_v4, %v4239_v3 }
  0xc0   :  { %6304 = vst [vmem:[#allocation14_spill] sm:$0xff] %v4998_v9  ;;  %v464_v15 = vpop.f32.mrf.mxu2  ;;  %v553_v18 = vpop.f32.mrf.mxu3 }
  0xc1   :  { %6305 = vst [vmem:[#allocation15_spill] sm:$0xff] %v5001_v11  ;;  %v465_v17 = vadd.f32 %v464_v15, %v4947_v51  ;;  %v289_v19 = vpop.f32.mrf.mxu0  ;;  %v554_v20 = vadd.f32 %v553_v18, %v4949_v52  ;;  %v378_v21 = vpop.f32.mrf.mxu1  ;;  %1776 = vmatpush.bf16.msrb.mxu2 %v4240_v6 }
  0xc2   :  { %v290_v30 = vadd.f32 %v289_v19, %v4936_v33  ;;  %v379_v32 = vadd.f32 %v378_v21, %v4939_v34 }
  0xc3   :  { %v643_v23 = vmax.f32 %v465_v17, 0.0  ;;  %v644_v25 = vmax.f32 %v554_v20, 0.0  ;;  %3928 = vmatmul.msk.bf16.gmra.mxu0 %vm216_vm0, %v4504_v16  ;;  %v4368_v17 = vor.u32 %v4615_v10, %v4367_v8 }
  0xc4   :  { %3944 = vmatmul.msk.bf16.gmra.mxu1 %vm216_vm0, %v4504_v16  ;;  %v645_v40 = vmax.f32 %v290_v30, 0.0  ;;  %v646_v42 = vmax.f32 %v379_v32, 0.0  ;;  %v4111_v30 = vld [vmem:[#allocation3 + $0x100] sm:$0xf] }
  0xc5   :  { %v5010_v27 = vpack.c.bf16 %v643_v23, %v639_v22  ;;  %3960 = vmatmul.msk.bf16.gmra.mxu2 %vm216_vm0, %v4504_v16  ;;  %v5014_v29 = vpack.c.bf16 %v644_v25, %v640_v24  ;;  %3976 = vmatmul.msk.bf16.gmra.mxu3 %vm216_vm0, %v4504_v16  ;;  %v3984_v16 = vor.u32 %v4519_v7, %v3983_v5 }
  0xc6   :  { %1865 = vmatpush.bf16.msrb.mxu3 %v4368_v17 }
  0xc7   :  { %6306 = vst [vmem:[#allocation16_spill] sm:$0xff] %v5010_v27  ;;  %1598 = vmatpush.bf16.msrb.mxu0 %v3984_v16 }
  0xc8   :  { %6307 = vst [vmem:[#allocation17_spill] sm:$0xff] %v5014_v29  ;;  %v467_v31 = vpop.f32.mrf.mxu2  ;;  %v556_v35 = vpop.f32.mrf.mxu3 }
  0xc9   :  { %v291_v36 = vpop.f32.mrf.mxu0  ;;  %v380_v38 = vpop.f32.mrf.mxu1  ;;  %v468_v47 = vadd.f32 %v467_v31, %v4947_v51  ;;  %v557_v49 = vadd.f32 %v556_v35, %v4949_v52  ;;  %v4551_v31 = vld [vmem:[#allocation3 + $0x10c] sm:$0xf0] }
  0xca   :  { %v292_v37 = vadd.f32 %v291_v36, %v4936_v33  ;;  %v381_v39 = vadd.f32 %v380_v38, %v4939_v34  ;;  %v4112_v36 = vor.u32 %v4551_v31, %v4111_v30 }
  0xcb   :  { %v647_v59 = vmax.f32 %v468_v47, 0.0  ;;  %v648_v62 = vmax.f32 %v557_v49, 0.0 }
  0xcc   :  { %v649_v41 = vmax.f32 %v292_v37, 0.0  ;;  %v650_v45 = vmax.f32 %v381_v39, 0.0  ;;  %1687 = vmatpush.bf16.msrb.mxu1 %v4112_v36 }
  0xce   :  { %v5021_v46 = vpack.c.bf16 %v649_v41, %v645_v40  ;;  %v5024_v48 = vpack.c.bf16 %v650_v45, %v646_v42  ;;  %v4506_v42 = vld [vmem:[%s6198_s0 + $0x68] sm:$0xff] }
  0xd0   :  { %6308 = vst [vmem:[#allocation18_spill] sm:$0xff] %v5021_v46  ;;  %v469_v50 = vpop.f32.mrf.mxu2  ;;  %v558_v55 = vpop.f32.mrf.mxu3 }
  0xd1   :  { %6309 = vst [vmem:[#allocation19_spill] sm:$0xff] %v5024_v48  ;;  %v470_v54 = vadd.f32 %v469_v50, %v4947_v51  ;;  %v294_v56 = vpop.f32.mrf.mxu0  ;;  %v559_v57 = vadd.f32 %v558_v55, %v4949_v52  ;;  %v383_v58 = vpop.f32.mrf.mxu1 }
  0xd2   :  { %v295_v14 = vadd.f32 %v294_v56, %v4936_v33  ;;  %v384_v18 = vadd.f32 %v383_v58, %v4939_v34 }
  0xd3   :  { %v651_v60 = vmax.f32 %v470_v54, 0.0  ;;  %v652_v0 = vmax.f32 %v559_v57, 0.0  ;;  %3929 = vmatmul.msk.bf16.gmra.mxu0 %vm216_vm0, %v4505_v53 }
  0xd4   :  { %3945 = vmatmul.msk.bf16.gmra.mxu1 %vm216_vm0, %v4505_v53  ;;  %v653_v24 = vmax.f32 %v295_v14, 0.0  ;;  %v654_v32 = vmax.f32 %v384_v18, 0.0 }
  0xd5   :  { %v5033_v1 = vpack.c.bf16 %v651_v60, %v647_v59  ;;  %3961 = vmatmul.msk.bf16.gmra.mxu2 %vm216_vm0, %v4505_v53  ;;  %v5037_v2 = vpack.c.bf16 %v652_v0, %v648_v62  ;;  %3977 = vmatmul.msk.bf16.gmra.mxu3 %vm216_vm0, %v4505_v53 }
  0xd7   :  { %6310 = vst [vmem:[#allocation20_spill] sm:$0xff] %v5033_v1 }
  0xd8   :  { %6311 = vst [vmem:[#allocation21_spill] sm:$0xff] %v5037_v2  ;;  %v472_v15 = vpop.f32.mrf.mxu2  ;;  %v561_v19 = vpop.f32.mrf.mxu3 }
  0xd9   :  { %v296_v20 = vpop.f32.mrf.mxu0  ;;  %v385_v22 = vpop.f32.mrf.mxu1  ;;  %v473_v38 = vadd.f32 %v472_v15, %v4947_v51  ;;  %v562_v40 = vadd.f32 %v561_v19, %v4949_v52 }
  0xda   :  { %v297_v21 = vadd.f32 %v296_v20, %v4936_v33  ;;  %v386_v23 = vadd.f32 %v385_v22, %v4939_v34 }
  0xdb   :  { %v655_v54 = vmax.f32 %v473_v38, 0.0  ;;  %v656_v56 = vmax.f32 %v562_v40, 0.0 }
  0xdc   :  { %v657_v25 = vmax.f32 %v297_v21, 0.0  ;;  %v658_v35 = vmax.f32 %v386_v23, 0.0  ;;  %v4507_v21 = vld [vmem:[%s6198_s0 + $0x70] sm:$0xff] }
  0xde   :  { %v5044_v37 = vpack.c.bf16 %v657_v25, %v653_v24  ;;  %v5047_v39 = vpack.c.bf16 %v658_v35, %v654_v32 }
  0xe0   :  { %6312 = vst [vmem:[#allocation22_spill] sm:$0xff] %v5044_v37  ;;  %v474_v41 = vpop.f32.mrf.mxu2  ;;  %v563_v47 = vpop.f32.mrf.mxu3 }
  0xe1   :  { %6313 = vst [vmem:[#allocation23_spill] sm:$0xff] %v5047_v39  ;;  %v475_v45 = vadd.f32 %v474_v41, %v4947_v51  ;;  %v299_v49 = vpop.f32.mrf.mxu0  ;;  %v564_v50 = vadd.f32 %v563_v47, %v4949_v52  ;;  %v388_v53 = vpop.f32.mrf.mxu1  ;;  %v4609_v41 = vld [vmem:[#allocation3 + $0x2e4] sm:$0xf] }
  0xe2   :  { %v300_v60 = vadd.f32 %v299_v49, %v4936_v33  ;;  %v389_v0 = vadd.f32 %v388_v53, %v4939_v34  ;;  %v4097_v49 = vld [vmem:[#allocation3 + $0xf0] sm:$0xf0] }
  0xe3   :  { %v659_v55 = vmax.f32 %v475_v45, 0.0  ;;  %v660_v57 = vmax.f32 %v564_v50, 0.0  ;;  %3930 = vmatmul.msk.bf16.gmra.mxu0 %vm216_vm0, %v4506_v42  ;;  %v4545_v45 = vld [vmem:[#allocation3 + $0xe4] sm:$0xf]  ;;  %v4481_v53 = vld [vmem:[#allocation3 + $0x3f0] sm:$0xf0] }
  0xe4   :  { %3946 = vmatmul.msk.bf16.gmra.mxu1 %vm216_vm0, %v4506_v42  ;;  %v661_v8 = vmax.f32 %v300_v60, 0.0  ;;  %v662_v14 = vmax.f32 %v389_v0, 0.0  ;;  %v4641_v50 = vld [vmem:[#allocation3 + $0x3e4] sm:$0xf] }
  0xe5   :  { %v5056_v58 = vpack.c.bf16 %v659_v55, %v655_v54  ;;  %3962 = vmatmul.msk.bf16.gmra.mxu2 %vm216_vm0, %v4506_v42  ;;  %v5060_v59 = vpack.c.bf16 %v660_v57, %v656_v56  ;;  %3978 = vmatmul.msk.bf16.gmra.mxu3 %vm216_vm0, %v4506_v42  ;;  %v4353_v42 = vld [vmem:[#allocation3 + $0x2f0] sm:$0xf0]  ;;  %v4100_v56 = vor.u32 %v4545_v45, %v4097_v49 }
  0xe6   :  { %v4356_v47 = vor.u32 %v4609_v41, %v4353_v42  ;;  %v4484_v57 = vor.u32 %v4641_v50, %v4481_v53 }
  0xe7   :  { %6314 = vst [vmem:[#allocation24_spill] sm:$0xff] %v5056_v58  ;;  %1947 = vmatpush.bf16.msra.mxu0 %v4100_v56 }
  0xe8   :  { %6315 = vst [vmem:[#allocation25_spill] sm:$0xff] %v5060_v59  ;;  %v477_v62 = vpop.f32.mrf.mxu2  ;;  %v566_v3 = vpop.f32.mrf.mxu3  ;;  %2125 = vmatpush.bf16.msra.mxu2 %v4356_v47  ;;  %2214 = vmatpush.bf16.msra.mxu3 %v4484_v57 }
  0xe9   :  { %v301_v4 = vpop.f32.mrf.mxu0  ;;  %v390_v6 = vpop.f32.mrf.mxu1  ;;  %v478_v17 = vadd.f32 %v477_v62, %v4947_v51  ;;  %v567_v19 = vadd.f32 %v566_v3, %v4949_v52 }
  0xea   :  { %v302_v5 = vadd.f32 %v301_v4, %v4936_v33  ;;  %v391_v7 = vadd.f32 %v390_v6, %v4939_v34 }
  0xeb   :  { %v663_v31 = vmax.f32 %v478_v17, 0.0  ;;  %v664_v35 = vmax.f32 %v567_v19, 0.0 }
  0xec   :  { %v665_v10 = vmax.f32 %v302_v5, 0.0  ;;  %v666_v15 = vmax.f32 %v391_v7, 0.0 }
  0xee   :  { %v5067_v16 = vpack.c.bf16 %v665_v10, %v661_v8  ;;  %v5070_v18 = vpack.c.bf16 %v666_v15, %v662_v14  ;;  %v4577_v8 = vld [vmem:[#allocation3 + $0x1e4] sm:$0xf]  ;;  %v4225_v10 = vld [vmem:[#allocation3 + $0x1f0] sm:$0xf0] }
  0xef   :  { %v4228_v17 = vor.u32 %v4577_v8, %v4225_v10 }
  0xf0   :  { %6316 = vst [vmem:[#allocation26_spill] sm:$0xff] %v5067_v16  ;;  %v479_v20 = vpop.f32.mrf.mxu2  ;;  %v568_v23 = vpop.f32.mrf.mxu3 }
  0xf1   :  { %6317 = vst [vmem:[#allocation27_spill] sm:$0xff] %v5070_v18  ;;  %v480_v22 = vadd.f32 %v479_v20, %v4947_v51  ;;  %v304_v24 = vpop.f32.mrf.mxu0  ;;  %v569_v25 = vadd.f32 %v568_v23, %v4949_v52  ;;  %v393_v30 = vpop.f32.mrf.mxu1  ;;  %2036 = vmatpush.bf16.msra.mxu1 %v4228_v17 }
  0xf2   :  { %v305_v54 = vadd.f32 %v304_v24, %v4936_v33  ;;  %v394_v60 = vadd.f32 %v393_v30, %v4939_v34  ;;  %v4508_v24 = vld [vmem:[%s6198_s0 + $0x78] sm:$0xff] }
  0xf3   :  { %v667_v32 = vmax.f32 %v480_v22, 0.0  ;;  %v668_v36 = vmax.f32 %v569_v25, 0.0  ;;  %3931 = vmatmul.msk.bf16.gmra.mxu0 %vm216_vm0, %v4507_v21 }
  0xf4   :  { %3947 = vmatmul.msk.bf16.gmra.mxu1 %vm216_vm0, %v4507_v21  ;;  %v669_v6 = vmax.f32 %v305_v54, 0.0  ;;  %v670_v14 = vmax.f32 %v394_v60, 0.0 }
  0xf5   :  { %v5079_v38 = vpack.c.bf16 %v667_v32, %v663_v31  ;;  %3963 = vmatmul.msk.bf16.gmra.mxu2 %vm216_vm0, %v4507_v21  ;;  %v5083_v40 = vpack.c.bf16 %v668_v36, %v664_v35  ;;  %3979 = vmatmul.msk.bf16.gmra.mxu3 %vm216_vm0, %v4507_v21 }
  0xf7   :  { %6318 = vst [vmem:[#allocation28_spill] sm:$0xff] %v5079_v38 }
  0xf8   :  { %6319 = vst [vmem:[#allocation29_spill] sm:$0xff] %v5083_v40  ;;  %v482_v55 = vpop.f32.mrf.mxu2  ;;  %v571_v62 = vpop.f32.mrf.mxu3 }
  0xf9   :  { %v306_v0 = vpop.f32.mrf.mxu0  ;;  %v395_v4 = vpop.f32.mrf.mxu1  ;;  %v483_v20 = vadd.f32 %v482_v55, %v4947_v51  ;;  %v572_v22 = vadd.f32 %v571_v62, %v4949_v52 }
  0xfa   :  { %v307_v3 = vadd.f32 %v306_v0, %v4936_v33  ;;  %v396_v5 = vadd.f32 %v395_v4, %v4939_v34 }
  0xfb   :  { %v671_v36 = vmax.f32 %v483_v20, 0.0  ;;  %v672_v42 = vmax.f32 %v572_v22, 0.0 }
  0xfc   :  { %v673_v7 = vmax.f32 %v307_v3, 0.0  ;;  %v674_v15 = vmax.f32 %v396_v5, 0.0 }
  0xfe   :  { %v5090_v19 = vpack.c.bf16 %v673_v7, %v669_v6  ;;  %v5093_v21 = vpack.c.bf16 %v674_v15, %v670_v14 }
 0x100   :  { %6320 = vst [vmem:[#allocation30_spill] sm:$0xff] %v5090_v19  ;;  %v484_v23 = vpop.f32.mrf.mxu2  ;;  %v573_v30 = vpop.f32.mrf.mxu3 }
 0x101   :  { %6321 = vst [vmem:[#allocation31_spill] sm:$0xff] %v5093_v21  ;;  %v485_v25 = vadd.f32 %v484_v23, %v4947_v51  ;;  %v309_v31 = vpop.f32.mrf.mxu0  ;;  %v574_v32 = vadd.f32 %v573_v30, %v4949_v52  ;;  %v398_v35 = vpop.f32.mrf.mxu1 }
 0x102   :  { %v310_v50 = vadd.f32 %v309_v31, %v4936_v33  ;;  %v399_v54 = vadd.f32 %v398_v35, %v4939_v34 }
 0x103   :  { %v675_v41 = vmax.f32 %v485_v25, 0.0  ;;  %v676_v45 = vmax.f32 %v574_v32, 0.0  ;;  %3932 = vmatmul.msk.bf16.gmra.mxu0 %vm216_vm0, %v4508_v24 }
 0x104   :  { %3948 = vmatmul.msk.bf16.gmra.mxu1 %vm216_vm0, %v4508_v24  ;;  %v677_v0 = vmax.f32 %v310_v50, 0.0  ;;  %v678_v4 = vmax.f32 %v399_v54, 0.0  ;;  %v4081_v50 = vld [vmem:[#allocation3 + $0xd0] sm:$0xf0] }
 0x105   :  { %v5102_v47 = vpack.c.bf16 %v675_v41, %v671_v36  ;;  %3964 = vmatmul.msk.bf16.gmra.mxu2 %vm216_vm0, %v4508_v24  ;;  %v5106_v49 = vpack.c.bf16 %v676_v45, %v672_v42  ;;  %3980 = vmatmul.msk.bf16.gmra.mxu3 %vm216_vm0, %v4508_v24  ;;  %v4605_v36 = vld [vmem:[#allocation3 + $0x2c4] sm:$0xf]  ;;  %v4337_v41 = vld [vmem:[#allocation3 + $0x2d0] sm:$0xf0] }
 0x106   :  { %v4541_v42 = vld [vmem:[#allocation3 + $0xc4] sm:$0xf]  ;;  %v4340_v45 = vor.u32 %v4605_v36, %v4337_v41  ;;  %v4465_v54 = vld [vmem:[#allocation3 + $0x3d0] sm:$0xf0] }
 0x107   :  { %6322 = vst [vmem:[#allocation32_spill] sm:$0xff] %v5102_v47 }
 0x108   :  { %6323 = vst [vmem:[#allocation33_spill] sm:$0xff] %v5106_v49  ;;  %v487_v53 = vpop.f32.mrf.mxu2  ;;  %v576_v55 = vpop.f32.mrf.mxu3  ;;  %2126 = vmatpush.bf16.msra.mxu2 %v4340_v45 }
 0x109   :  { %v311_v56 = vpop.f32.mrf.mxu0  ;;  %v400_v60 = vpop.f32.mrf.mxu1  ;;  %v488_v7 = vadd.f32 %v487_v53, %v4947_v51  ;;  %v577_v10 = vadd.f32 %v576_v55, %v4949_v52  ;;  %v4637_v53 = vld [vmem:[#allocation3 + $0x3c4] sm:$0xf] }
 0x10a   :  { %v312_v57 = vadd.f32 %v311_v56, %v4936_v33  ;;  %v401_v62 = vadd.f32 %v400_v60, %v4939_v34  ;;  %v4468_v60 = vor.u32 %v4637_v53, %v4465_v54 }
 0x10b   :  { %v679_v24 = vmax.f32 %v488_v7, 0.0  ;;  %v680_v30 = vmax.f32 %v577_v10, 0.0 }
 0x10c   :  { %v681_v3 = vmax.f32 %v312_v57, 0.0  ;;  %v682_v5 = vmax.f32 %v401_v62, 0.0  ;;  %v4084_v57 = vor.u32 %v4541_v42, %v4081_v50  ;;  %2215 = vmatpush.bf16.msra.mxu3 %v4468_v60 }
 0x10e   :  { %v5113_v6 = vpack.c.bf16 %v681_v3, %v677_v0  ;;  %v5116_v8 = vpack.c.bf16 %v682_v5, %v678_v4  ;;  %1948 = vmatpush.bf16.msra.mxu0 %v4084_v57 }
 0x110   :  { %6324 = vst [vmem:[#allocation34_spill] sm:$0xff] %v5113_v6  ;;  %v489_v14 = vpop.f32.mrf.mxu2  ;;  %v578_v17 = vpop.f32.mrf.mxu3 }
 0x111   :  { %6325 = vst [vmem:[#allocation35_spill] sm:$0xff] %v5116_v8  ;;  %v490_v15 = vadd.f32 %v489_v14, %v4947_v51  ;;  %v314_v20 = vpop.f32.mrf.mxu0  ;;  %v579_v22 = vadd.f32 %v578_v17, %v4949_v52  ;;  %v403_v23 = vpop.f32.mrf.mxu1  ;;  %v4209_v17 = vld [vmem:[#allocation3 + $0x1d0] sm:$0xf0] }
 0x112   :  { %v315_v55 = vadd.f32 %v314_v20, %v4936_v33  ;;  %v404_v62 = vadd.f32 %v403_v23, %v4939_v34 }
 0x113   :  { %v683_v25 = vmax.f32 %v490_v15, 0.0  ;;  %v684_v31 = vmax.f32 %v579_v22, 0.0  ;;  %1599 = vmatmul.bf16.vlgmr.msrb.gmra.mxu0 %v4952_v61  ;;  %v4573_v15 = vld [vmem:[#allocation3 + $0x1c4] sm:$0xf] }
 0x114   :  { %1688 = vmatmul.bf16.vlgmr.msrb.gmra.mxu1 %v4955_v63  ;;  %v685_v10 = vmax.f32 %v315_v55, 0.0  ;;  %v686_v20 = vmax.f32 %v404_v62, 0.0 }
 0x115   :  { %v5122_v32 = vpack.c.bf16 %v683_v25, %v679_v24  ;;  %1777 = vmatmul.bf16.vlgmr.msrb.gmra.mxu2 %v4964_v12  ;;  %v5126_v35 = vpack.c.bf16 %v684_v31, %v680_v30  ;;  %1866 = vmatmul.bf16.vlgmr.msrb.gmra.mxu3 %v4968_v13  ;;  %v4212_v24 = vor.u32 %v4573_v15, %v4209_v17 }
 0x117   :  { %6326 = vst [vmem:[#allocation36_spill] sm:$0xff] %v5122_v32  ;;  %2037 = vmatpush.bf16.msra.mxu1 %v4212_v24 }
 0x118   :  { %6327 = vst [vmem:[#allocation37_spill] sm:$0xff] %v5126_v35  ;;  %v492_v56 = vpop.f32.mrf.mxu2  ;;  %v581_v0 = vpop.f32.mrf.mxu3 }
 0x119   :  { %v316_v3 = vpop.f32.mrf.mxu0  ;;  %v405_v5 = vpop.f32.mrf.mxu1  ;;  %v493_v23 = vadd.f32 %v492_v56, %v4947_v51  ;;  %v582_v31 = vadd.f32 %v581_v0, %v4949_v52 }
 0x11a   :  { %v317_v4 = vadd.f32 %v316_v3, %v4936_v33  ;;  %v406_v7 = vadd.f32 %v405_v5, %v4939_v34 }
 0x11b   :  { %v687_v54 = vmax.f32 %v493_v23, 0.0  ;;  %v688_v57 = vmax.f32 %v582_v31, 0.0 }
 0x11c   :  { %v689_v14 = vmax.f32 %v317_v4, 0.0  ;;  %v690_v22 = vmax.f32 %v406_v7, 0.0 }
 0x11e   :  { %v5133_v25 = vpack.c.bf16 %v689_v14, %v685_v10  ;;  %v5136_v30 = vpack.c.bf16 %v690_v22, %v686_v20 }
 0x120   :  { %6328 = vst [vmem:[#allocation38_spill] sm:$0xff] %v5133_v25  ;;  %v494_v36 = vpop.f32.mrf.mxu2  ;;  %v583_v42 = vpop.f32.mrf.mxu3 }
 0x121   :  { %6329 = vst [vmem:[#allocation39_spill] sm:$0xff] %v5136_v30  ;;  %v495_v41 = vadd.f32 %v494_v36, %v4947_v51  ;;  %v319_v45 = vpop.f32.mrf.mxu0  ;;  %v584_v50 = vadd.f32 %v583_v42, %v4949_v52  ;;  %v408_v53 = vpop.f32.mrf.mxu1 }
 0x122   :  { %v320_v0 = vadd.f32 %v319_v45, %v4936_v33  ;;  %v409_v4 = vadd.f32 %v408_v53, %v4939_v34 }
 0x123   :  { %v691_v55 = vmax.f32 %v495_v41, 0.0  ;;  %v692_v60 = vmax.f32 %v584_v50, 0.0  ;;  %1604 = vmatmul.bf16.gmra.mxu0 %v4975_v26 }
 0x124   :  { %1693 = vmatmul.bf16.gmra.mxu1 %v4978_v28  ;;  %v693_v17 = vmax.f32 %v320_v0, 0.0  ;;  %v694_v22 = vmax.f32 %v409_v4, 0.0 }
 0x125   :  { %v5142_v56 = vpack.c.bf16 %v691_v55, %v687_v54  ;;  %1782 = vmatmul.bf16.gmra.mxu2 %v4987_v43  ;;  %v5146_v62 = vpack.c.bf16 %v692_v60, %v688_v57  ;;  %1871 = vmatmul.bf16.gmra.mxu3 %v4991_v44 }
 0x127   :  { %6330 = vst [vmem:[#allocation40_spill] sm:$0xff] %v5142_v56 }
 0x128   :  { %6331 = vst [vmem:[#allocation41_spill] sm:$0xff] %v5146_v62  ;;  %v497_v3 = vpop.f32.mrf.mxu2  ;;  %v586_v5 = vpop.f32.mrf.mxu3 }
 0x129   :  { %v321_v7 = vpop.f32.mrf.mxu0  ;;  %v410_v14 = vpop.f32.mrf.mxu1  ;;  %v498_v31 = vadd.f32 %v497_v3, %v4947_v51  ;;  %v587_v41 = vadd.f32 %v586_v5, %v4949_v52  ;;  %v4601_v5 = vld [vmem:[#allocation3 + $0x2a4] sm:$0xf] }
 0x12a   :  { %v322_v10 = vadd.f32 %v321_v7, %v4936_v33  ;;  %v411_v15 = vadd.f32 %v410_v14, %v4939_v34  ;;  %v4537_v14 = vld [vmem:[#allocation3 + $0xa4] sm:$0xf] }
 0x12b   :  { %v695_v57 = vmax.f32 %v498_v31, 0.0  ;;  %v696_v0 = vmax.f32 %v587_v41, 0.0 }
 0x12c   :  { %v697_v20 = vmax.f32 %v322_v10, 0.0  ;;  %v698_v24 = vmax.f32 %v411_v15, 0.0  ;;  %v4321_v10 = vld [vmem:[#allocation3 + $0x2b0] sm:$0xf0] }
 0x12d   :  { %v4324_v15 = vor.u32 %v4601_v5, %v4321_v10  ;;  %v4569_v10 = vld [vmem:[#allocation3 + $0x1a4] sm:$0xf] }
 0x12e   :  { %v5153_v23 = vpack.c.bf16 %v697_v20, %v693_v17  ;;  %v5156_v36 = vpack.c.bf16 %v698_v24, %v694_v22  ;;  %v4065_v17 = vld [vmem:[#allocation3 + $0xb0] sm:$0xf0]  ;;  %v4633_v20 = vld [vmem:[#allocation3 + $0x3a4] sm:$0xf] }
 0x12f   :  { %v4449_v22 = vld [vmem:[#allocation3 + $0x3b0] sm:$0xf0]  ;;  %v4068_v41 = vor.u32 %v4537_v14, %v4065_v17  ;;  %2127 = vmatpush.bf16.msra.mxu2 %v4324_v15 }
 0x130   :  { %v499_v42 = vpop.f32.mrf.mxu2  ;;  %v588_v50 = vpop.f32.mrf.mxu3 }
 0x131   :  { %v500_v45 = vadd.f32 %v499_v42, %v4947_v51  ;;  %v324_v53 = vpop.f32.mrf.mxu0  ;;  %v589_v54 = vadd.f32 %v588_v50, %v4949_v52  ;;  %v413_v55 = vpop.f32.mrf.mxu1  ;;  %v4452_v42 = vor.u32 %v4633_v20, %v4449_v22  ;;  %1949 = vmatpush.bf16.msra.mxu0 %v4068_v41 }
 0x132   :  { %v325_v24 = vadd.f32 %v324_v53, %v4936_v33 }
 0x133   :  { %v699_v60 = vmax.f32 %v500_v45, 0.0  ;;  %v700_v4 = vmax.f32 %v589_v54, 0.0  ;;  %1609 = vmatmul.bf16.gmra.mxu0 %v4998_v9  ;;  %v414_v45 = vadd.f32 %v413_v55, %v4939_v34  ;;  %2216 = vmatpush.bf16.msra.mxu3 %v4452_v42 }
 0x134   :  { %1698 = vmatmul.bf16.gmra.mxu1 %v5001_v11 }
 0x135   :  { %v5162_v7 = vpack.c.bf16 %v699_v60, %v695_v57  ;;  %1787 = vmatmul.bf16.gmra.mxu2 %v5010_v27  ;;  %v5166_v3 = vpack.c.bf16 %v700_v4, %v696_v0  ;;  %1876 = vmatmul.bf16.gmra.mxu3 %v5014_v29  ;;  %v701_v4 = vmax.f32 %v325_v24, 0.0  ;;  %v4193_v29 = vld [vmem:[#allocation3 + $0x1b0] sm:$0xf0]  ;;  %v702_v53 = vmax.f32 %v414_v45, 0.0 }
 0x136   :  { %v4196_v14 = vor.u32 %v4569_v10, %v4193_v29 }
 0x138   :  { %v502_v31 = vpop.f32.mrf.mxu2  ;;  %v591_v50 = vpop.f32.mrf.mxu3  ;;  %2038 = vmatpush.bf16.msra.mxu1 %v4196_v14 }
 0x139   :  { %v326_v54 = vpop.f32.mrf.mxu0  ;;  %v415_v60 = vpop.f32.mrf.mxu1  ;;  %v503_v55 = vadd.f32 %v502_v31, %v4947_v51  ;;  %v592_v15 = vadd.f32 %v591_v50, %v4949_v52 }
 0x13a   :  { %v327_v57 = vadd.f32 %v326_v54, %v4936_v33  ;;  %v416_v0 = vadd.f32 %v415_v60, %v4939_v34 }
 0x13b   :  { %v703_v45 = vmax.f32 %v503_v55, 0.0  ;;  %v704_v29 = vmax.f32 %v592_v15, 0.0 }
 0x13c   :  { %v705_v5 = vmax.f32 %v327_v57, 0.0  ;;  %v706_v27 = vmax.f32 %v416_v0, 0.0 }
 0x13e   :  { %v5173_v17 = vpack.c.bf16 %v705_v5, %v701_v4  ;;  %v5176_v20 = vpack.c.bf16 %v706_v27, %v702_v53 }
 0x140   :  { %6332 = vst [vmem:[#allocation42_spill] sm:$0xff] %v5173_v17  ;;  %v504_v22 = vpop.f32.mrf.mxu2  ;;  %v593_v42 = vpop.f32.mrf.mxu3 }
 0x141   :  { %6333 = vst [vmem:[#allocation43_spill] sm:$0xff] %v5176_v20  ;;  %v505_v41 = vadd.f32 %v504_v22, %v4947_v51  ;;  %v329_v24 = vpop.f32.mrf.mxu0  ;;  %v594_v54 = vadd.f32 %v593_v42, %v4949_v52  ;;  %v418_v57 = vpop.f32.mrf.mxu1 }
 0x142   :  { %v330_v50 = vadd.f32 %v329_v24, %v4936_v33  ;;  %v419_v5 = vadd.f32 %v418_v57, %v4939_v34 }
 0x143   :  { %v707_v60 = vmax.f32 %v505_v41, 0.0  ;;  %v708_v0 = vmax.f32 %v594_v54, 0.0  ;;  %1614 = vmatmul.bf16.gmra.mxu0 %v5021_v46 }
 0x144   :  { %1703 = vmatmul.bf16.gmra.mxu1 %v5024_v48  ;;  %v709_v22 = vmax.f32 %v330_v50, 0.0  ;;  %v710_v42 = vmax.f32 %v419_v5, 0.0  ;;  %v4177_v48 = vld [vmem:[#allocation3 + $0x190] sm:$0xf0] }
 0x145   :  { %v5182_v31 = vpack.c.bf16 %v707_v60, %v703_v45  ;;  %1792 = vmatmul.bf16.gmra.mxu2 %v5033_v1  ;;  %v5186_v27 = vpack.c.bf16 %v708_v0, %v704_v29  ;;  %1881 = vmatmul.bf16.gmra.mxu3 %v5037_v2 }
 0x147   :  { %6334 = vst [vmem:[#allocation44_spill] sm:$0xff] %v5182_v31 }
 0x148   :  { %6335 = vst [vmem:[#allocation45_spill] sm:$0xff] %v5186_v27  ;;  %v507_v4 = vpop.f32.mrf.mxu2  ;;  %v596_v10 = vpop.f32.mrf.mxu3 }
 0x149   :  { %v331_v53 = vpop.f32.mrf.mxu0  ;;  %v420_v55 = vpop.f32.mrf.mxu1  ;;  %v508_v60 = vadd.f32 %v507_v4, %v4947_v51  ;;  %v597_v24 = vadd.f32 %v596_v10, %v4949_v52  ;;  %v4597_v10 = vld [vmem:[#allocation3 + $0x284] sm:$0xf] }
 0x14a   :  { %v332_v14 = vadd.f32 %v331_v53, %v4936_v33  ;;  %v421_v15 = vadd.f32 %v420_v55, %v4939_v34 }
 0x14b   :  { %v711_v50 = vmax.f32 %v508_v60, 0.0  ;;  %v712_v5 = vmax.f32 %v597_v24, 0.0  ;;  %v4629_v60 = vld [vmem:[#allocation3 + $0x384] sm:$0xf]  ;;  %v4433_v24 = vld [vmem:[#allocation3 + $0x390] sm:$0xf0] }
 0x14c   :  { %v713_v41 = vmax.f32 %v332_v14, 0.0  ;;  %v714_v54 = vmax.f32 %v421_v15, 0.0 }
 0x14e   :  { %v5193_v45 = vpack.c.bf16 %v713_v41, %v709_v22  ;;  %v5196_v29 = vpack.c.bf16 %v714_v54, %v710_v42  ;;  %v4305_v41 = vld [vmem:[#allocation3 + $0x290] sm:$0xf0] }
 0x14f   :  { %v4308_v42 = vor.u32 %v4597_v10, %v4305_v41  ;;  %v4049_v54 = vld [vmem:[#allocation3 + $0x90] sm:$0xf0] }
 0x150   :  { %v509_v57 = vpop.f32.mrf.mxu2  ;;  %v598_v2 = vpop.f32.mrf.mxu3 }
 0x151   :  { %v510_v0 = vadd.f32 %v509_v57, %v4947_v51  ;;  %v334_v53 = vpop.f32.mrf.mxu0  ;;  %v599_v1 = vadd.f32 %v598_v2, %v4949_v52  ;;  %v423_v55 = vpop.f32.mrf.mxu1  ;;  %v4533_v2 = vld [vmem:[#allocation3 + $0x84] sm:$0xf]  ;;  %2128 = vmatpush.bf16.msra.mxu2 %v4308_v42 }
 0x153   :  { %v715_v14 = vmax.f32 %v510_v0, 0.0  ;;  %v716_v15 = vmax.f32 %v599_v1, 0.0  ;;  %1619 = vmatmul.bf16.gmra.mxu0 %v5044_v37  ;;  %v335_v1 = vadd.f32 %v334_v53, %v4936_v33  ;;  %v4052_v0 = vor.u32 %v4533_v2, %v4049_v54  ;;  %v4565_v37 = vld [vmem:[#allocation3 + $0x184] sm:$0xf] }
 0x154   :  { %1708 = vmatmul.bf16.gmra.mxu1 %v5047_v39  ;;  %v4180_v2 = vor.u32 %v4565_v37, %v4177_v48 }
 0x155   :  { %v5202_v22 = vpack.c.bf16 %v715_v14, %v711_v50  ;;  %1797 = vmatmul.bf16.gmra.mxu2 %v5056_v58  ;;  %v5206_v4 = vpack.c.bf16 %v716_v15, %v712_v5  ;;  %1886 = vmatmul.bf16.gmra.mxu3 %v5060_v59  ;;  %v4436_v50 = vor.u32 %v4629_v60, %v4433_v24  ;;  %v717_v41 = vmax.f32 %v335_v1, 0.0 }
 0x156   :  { %v424_v14 = vadd.f32 %v423_v55, %v4939_v34  ;;  %1950 = vmatpush.bf16.msra.mxu0 %v4052_v0  ;;  %2039 = vmatpush.bf16.msra.mxu1 %v4180_v2 }
 0x157   :  { %2217 = vmatpush.bf16.msra.mxu3 %v4436_v50 }
 0x158   :  { %v512_v57 = vpop.f32.mrf.mxu2  ;;  %v601_v39 = vpop.f32.mrf.mxu3  ;;  %v718_v53 = vmax.f32 %v424_v14, 0.0 }
 0x159   :  { %v336_v58 = vpop.f32.mrf.mxu0  ;;  %v425_v15 = vpop.f32.mrf.mxu1  ;;  %v513_v55 = vadd.f32 %v512_v57, %v4947_v51 }
 0x15a   :  { %v337_v5 = vadd.f32 %v336_v58, %v4936_v33  ;;  %v426_v10 = vadd.f32 %v425_v15, %v4939_v34  ;;  %v602_v58 = vadd.f32 %v601_v39, %v4949_v52 }
 0x15b   :  { %v719_v14 = vmax.f32 %v513_v55, 0.0 }
 0x15c   :  { %v721_v59 = vmax.f32 %v337_v5, 0.0  ;;  %v722_v46 = vmax.f32 %v426_v10, 0.0  ;;  %v720_v48 = vmax.f32 %v602_v58, 0.0 }
 0x15e   :  { %v5213_v54 = vpack.c.bf16 %v721_v59, %v717_v41  ;;  %v5216_v60 = vpack.c.bf16 %v722_v46, %v718_v53 }
 0x160   :  { %6336 = vst [vmem:[#allocation46_spill] sm:$0xff] %v5213_v54  ;;  %v514_v42 = vpop.f32.mrf.mxu2  ;;  %v603_v0 = vpop.f32.mrf.mxu3 }
 0x161   :  { %6337 = vst [vmem:[#allocation47_spill] sm:$0xff] %v5216_v60  ;;  %v515_v24 = vadd.f32 %v514_v42, %v4947_v51  ;;  %v339_v1 = vpop.f32.mrf.mxu0  ;;  %v604_v50 = vadd.f32 %v603_v0, %v4949_v52  ;;  %v428_v5 = vpop.f32.mrf.mxu1 }
 0x162   :  { %v340_v39 = vadd.f32 %v339_v1, %v4936_v33  ;;  %v429_v10 = vadd.f32 %v428_v5, %v4939_v34 }
 0x163   :  { %v723_v15 = vmax.f32 %v515_v24, 0.0  ;;  %v724_v37 = vmax.f32 %v604_v50, 0.0  ;;  %1624 = vmatmul.bf16.gmra.mxu0 %v5067_v16 }
 0x164   :  { %1713 = vmatmul.bf16.gmra.mxu1 %v5070_v18  ;;  %v725_v42 = vmax.f32 %v340_v39, 0.0  ;;  %v726_v0 = vmax.f32 %v429_v10, 0.0 }
 0x165   :  { %v5222_v59 = vpack.c.bf16 %v723_v15, %v719_v14  ;;  %1802 = vmatmul.bf16.gmra.mxu2 %v5079_v38  ;;  %v5226_v46 = vpack.c.bf16 %v724_v37, %v720_v48  ;;  %1891 = vmatmul.bf16.gmra.mxu3 %v5083_v40 }
 0x167   :  { %6338 = vst [vmem:[#allocation48_spill] sm:$0xff] %v5222_v59 }
 0x168   :  { %6339 = vst [vmem:[#allocation49_spill] sm:$0xff] %v5226_v46  ;;  %v517_v57 = vpop.f32.mrf.mxu2  ;;  %v606_v41 = vpop.f32.mrf.mxu3 }
 0x169   :  { %v341_v53 = vpop.f32.mrf.mxu0  ;;  %v430_v55 = vpop.f32.mrf.mxu1  ;;  %v518_v15 = vadd.f32 %v517_v57, %v4947_v51  ;;  %v607_v1 = vadd.f32 %v606_v41, %v4949_v52  ;;  %v4593_v41 = vld [vmem:[#allocation3 + $0x264] sm:$0xf] }
 0x16a   :  { %v342_v2 = vadd.f32 %v341_v53, %v4936_v33  ;;  %v431_v58 = vadd.f32 %v430_v55, %v4939_v34 }
 0x16b   :  { %v727_v39 = vmax.f32 %v518_v15, 0.0  ;;  %v728_v10 = vmax.f32 %v607_v1, 0.0  ;;  %v4625_v15 = vld [vmem:[#allocation3 + $0x364] sm:$0xf]  ;;  %v4417_v1 = vld [vmem:[#allocation3 + $0x370] sm:$0xf0] }
 0x16c   :  { %v729_v24 = vmax.f32 %v342_v2, 0.0  ;;  %v730_v50 = vmax.f32 %v431_v58, 0.0 }
 0x16e   :  { %v5233_v14 = vpack.c.bf16 %v729_v24, %v725_v42  ;;  %v5236_v48 = vpack.c.bf16 %v730_v50, %v726_v0  ;;  %v4289_v24 = vld [vmem:[#allocation3 + $0x270] sm:$0xf0] }
 0x16f   :  { %v4292_v0 = vor.u32 %v4593_v41, %v4289_v24  ;;  %v4033_v50 = vld [vmem:[#allocation3 + $0x70] sm:$0xf0] }
 0x170   :  { %v519_v5 = vpop.f32.mrf.mxu2  ;;  %v608_v40 = vpop.f32.mrf.mxu3 }
 0x171   :  { %v520_v37 = vadd.f32 %v519_v5, %v4947_v51  ;;  %v344_v53 = vpop.f32.mrf.mxu0  ;;  %v609_v38 = vadd.f32 %v608_v40, %v4949_v52  ;;  %v433_v55 = vpop.f32.mrf.mxu1  ;;  %v4529_v40 = vld [vmem:[#allocation3 + $0x64] sm:$0xf]  ;;  %2129 = vmatpush.bf16.msra.mxu2 %v4292_v0 }
 0x173   :  { %v731_v2 = vmax.f32 %v520_v37, 0.0  ;;  %v732_v58 = vmax.f32 %v609_v38, 0.0  ;;  %1629 = vmatmul.bf16.gmra.mxu0 %v5090_v19  ;;  %v345_v38 = vadd.f32 %v344_v53, %v4936_v33  ;;  %v4036_v37 = vor.u32 %v4529_v40, %v4033_v50 }
 0x174   :  { %1718 = vmatmul.bf16.gmra.mxu1 %v5093_v21 }
 0x175   :  { %v5242_v42 = vpack.c.bf16 %v731_v2, %v727_v39  ;;  %1807 = vmatmul.bf16.gmra.mxu2 %v5102_v47  ;;  %v5246_v57 = vpack.c.bf16 %v732_v58, %v728_v10  ;;  %1896 = vmatmul.bf16.gmra.mxu3 %v5106_v49  ;;  %v4420_v39 = vor.u32 %v4625_v15, %v4417_v1  ;;  %v733_v24 = vmax.f32 %v345_v38, 0.0  ;;  %v4161_v15 = vld [vmem:[#allocation3 + $0x170] sm:$0xf0] }
 0x176   :  { %v434_v2 = vadd.f32 %v433_v55, %v4939_v34  ;;  %1951 = vmatpush.bf16.msra.mxu0 %v4036_v37  ;;  %v4561_v55 = vld [vmem:[#allocation3 + $0x164] sm:$0xf] }
 0x177   :  { %2218 = vmatpush.bf16.msra.mxu3 %v4420_v39  ;;  %v4164_v1 = vor.u32 %v4561_v55, %v4161_v15 }
 0x178   :  { %v522_v5 = vpop.f32.mrf.mxu2  ;;  %v611_v21 = vpop.f32.mrf.mxu3  ;;  %v734_v19 = vmax.f32 %v434_v2, 0.0 }
 0x179   :  { %v346_v47 = vpop.f32.mrf.mxu0  ;;  %v435_v58 = vpop.f32.mrf.mxu1  ;;  %v523_v40 = vadd.f32 %v522_v5, %v4947_v51  ;;  %v612_v0 = vadd.f32 %v611_v21, %v4949_v52  ;;  %2040 = vmatpush.bf16.msra.mxu1 %v4164_v1 }
 0x17a   :  { %v347_v10 = vadd.f32 %v346_v47, %v4936_v33  ;;  %v436_v41 = vadd.f32 %v435_v58, %v4939_v34 }
 0x17c   :  { %v737_v49 = vmax.f32 %v347_v10, 0.0  ;;  %v738_v18 = vmax.f32 %v436_v41, 0.0  ;;  %v736_v41 = vmax.f32 %v612_v0, 0.0 }
 0x17e   :  { %v5253_v53 = vpack.c.bf16 %v737_v49, %v733_v24  ;;  %v5256_v50 = vpack.c.bf16 %v738_v18, %v734_v19  ;;  %v735_v49 = vmax.f32 %v523_v40, 0.0 }
 0x180   :  { %6340 = vst [vmem:[#allocation50_spill] sm:$0xff] %v5253_v53  ;;  %v524_v47 = vpop.f32.mrf.mxu2  ;;  %v613_v39 = vpop.f32.mrf.mxu3 }
 0x181   :  { %6341 = vst [vmem:[#allocation51_spill] sm:$0xff] %v5256_v50  ;;  %v525_v37 = vadd.f32 %v524_v47, %v4947_v51  ;;  %v349_v58 = vpop.f32.mrf.mxu0  ;;  %v614_v38 = vadd.f32 %v613_v39, %v4949_v52  ;;  %v438_v2 = vpop.f32.mrf.mxu1 }
 0x182   :  { %v350_v21 = vadd.f32 %v349_v58, %v4936_v33  ;;  %v439_v40 = vadd.f32 %v438_v2, %v4939_v34 }
 0x183   :  { %v739_v10 = vmax.f32 %v525_v37, 0.0  ;;  %v740_v5 = vmax.f32 %v614_v38, 0.0  ;;  %1634 = vmatmul.bf16.gmra.mxu0 %v5113_v6  ;;  %v5276_v37 = vld [vmem:[%s6202_s4] sm:$0xf] }
 0x184   :  { %1723 = vmatmul.bf16.gmra.mxu1 %v5116_v8  ;;  %6344 = vst [vmem:[#allocation54_spill] sm:$0xff] %v5276_v37  ;;  %v741_v39 = vmax.f32 %v350_v21, 0.0  ;;  %v5281_v2 = vperm.slane %v5276_v37, 0 }
 0x185   :  { %v5262_v18 = vpack.c.bf16 %v739_v10, %v735_v49  ;;  %1812 = vmatmul.bf16.gmra.mxu2 %v5122_v32  ;;  %v5266_v19 = vpack.c.bf16 %v740_v5, %v736_v41  ;;  %1901 = vmatmul.bf16.gmra.mxu3 %v5126_v35  ;;  %v742_v49 = vmax.f32 %v439_v40, 0.0 }
 0x187   :  { %6342 = vst [vmem:[#allocation52_spill] sm:$0xff] %v5262_v18 }
 0x188   :  { %6343 = vst [vmem:[#allocation53_spill] sm:$0xff] %v5266_v19  ;;  %v527_v24 = vpop.f32.mrf.mxu2  ;;  %v616_v55 = vpop.f32.mrf.mxu3 }
 0x189   :  { %v351_v15 = vpop.f32.mrf.mxu0  ;;  %v440_v47 = vpop.f32.mrf.mxu1  ;;  %v528_v41 = vadd.f32 %v527_v24, %v4947_v51 }
 0x18a   :  { %v352_v0 = vadd.f32 %v351_v15, %v4936_v33  ;;  %v441_v1 = vadd.f32 %v440_v47, %v4939_v34  ;;  %v617_v34 = vadd.f32 %v616_v55, %v4949_v52  ;;  %v4525_v55 = vld [vmem:[#allocation3 + $0x44] sm:$0xf] }
 0x18c   :  { %v745_v38 = vmax.f32 %v352_v0, 0.0  ;;  %v746_v10 = vmax.f32 %v441_v1, 0.0  ;;  %v743_v1 = vmax.f32 %v528_v41, 0.0  ;;  %v4017_v41 = vld [vmem:[#allocation3 + $0x50] sm:$0xf0] }
 0x18e   :  { %v5278_v58 = vpack.c.bf16 %v745_v38, %v741_v39  ;;  %v5284_v33 = vpack.c.bf16 %v746_v10, %v742_v49  ;;  %v744_v38 = vmax.f32 %v617_v34, 0.0  ;;  %v4621_v34 = vld [vmem:[#allocation3 + $0x344] sm:$0xf] }
 0x190   :  { %v529_v5 = vpop.f32.mrf.mxu2  ;;  %v618_v47 = vpop.f32.mrf.mxu3 }
 0x191   :  { %v530_v15 = vadd.f32 %v529_v5, %v4947_v51  ;;  %v1600_v35 = vpop.f32.mrf.mxu0  ;;  %v619_v21 = vadd.f32 %v618_v47, %v4949_v52  ;;  %v1689_v0 = vpop.f32.mrf.mxu1  ;;  %v4589_v52 = vld [vmem:[#allocation3 + $0x244] sm:$0xf]  ;;  %v4401_v5 = vld [vmem:[#allocation3 + $0x350] sm:$0xf0] }
 0x192   :  { %v1601_v40 = vadd.f32 %v1600_v35, %v5281_v2  ;;  %v4273_v35 = vld [vmem:[#allocation3 + $0x250] sm:$0xf0] }
 0x193   :  { %v747_v39 = vmax.f32 %v530_v15, 0.0  ;;  %v748_v37 = vmax.f32 %v619_v21, 0.0  ;;  %1639 = vmatmul.bf16.gmra.mxu0 %v5133_v25  ;;  %v4276_v10 = vor.u32 %v4589_v52, %v4273_v35 }
 0x194   :  { %v1690_v32 = vadd.f32 %v1689_v0, %v1601_v40  ;;  %1728 = vmatmul.bf16.gmra.mxu1 %v5136_v30  ;;  %v4020_v40 = vor.u32 %v4525_v55, %v4017_v41  ;;  %v4404_v0 = vor.u32 %v4621_v34, %v4401_v5 }
 0x195   :  { %v5291_v24 = vpack.c.bf16 %v747_v39, %v743_v1  ;;  %1817 = vmatmul.bf16.gmra.mxu2 %v5142_v56  ;;  %v5295_v51 = vpack.c.bf16 %v748_v37, %v744_v38  ;;  %1906 = vmatmul.bf16.gmra.mxu3 %v5146_v62  ;;  %v4557_v62 = vld [vmem:[#allocation3 + $0x144] sm:$0xf]  ;;  %v4145_v56 = vld [vmem:[#allocation3 + $0x150] sm:$0xf0] }
 0x196   :  { %2130 = vmatpush.bf16.msra.mxu2 %v4276_v10  ;;  %1952 = vmatpush.bf16.msra.mxu0 %v4020_v40  ;;  %v4148_v35 = vor.u32 %v4557_v62, %v4145_v56 }
 0x197   :  { %2219 = vmatpush.bf16.msra.mxu3 %v4404_v0 }
 0x198   :  { %v1778_v49 = vpop.f32.mrf.mxu2  ;;  %v1867_v47 = vpop.f32.mrf.mxu3  ;;  %2041 = vmatpush.bf16.msra.mxu1 %v4148_v35 }
 0x199   :  { %v1779_v15 = vadd.f32 %v1778_v49, %v1690_v32  ;;  %v1602_v21 = vpop.f32.mrf.mxu0  ;;  %v1691_v39 = vpop.f32.mrf.mxu1 }
 0x19a   :  { %v1603_v1 = vadd.f32 %v1602_v21, %v5281_v2 }
 0x19b   :  { %v5299_v37 = vadd.f32 %v1867_v47, %v1779_v15 }
 0x19c   :  { %v1692_v38 = vadd.f32 %v1691_v39, %v1603_v1 }
 0x1a0   :  { %v1780_v52 = vpop.f32.mrf.mxu2  ;;  %v1869_v25 = vpop.f32.mrf.mxu3 }
 0x1a1   :  { %v1781_v30 = vadd.f32 %v1780_v52, %v1692_v38  ;;  %v1605_v32 = vpop.f32.mrf.mxu0  ;;  %v1694_v55 = vpop.f32.mrf.mxu1 }
 0x1a2   :  { %v1606_v49 = vadd.f32 %v1605_v32, %v5281_v2  ;;  %v4585_v32 = vld [vmem:[#allocation3 + $0x224] sm:$0xf] }
 0x1a3   :  { %v5302_v41 = vadd.f32 %v1869_v25, %v1781_v30  ;;  %1644 = vmatmul.bf16.gmra.mxu0 %v5153_v23 }
 0x1a4   :  { %v1695_v34 = vadd.f32 %v1694_v55, %v1606_v49  ;;  %1733 = vmatmul.bf16.gmra.mxu1 %v5156_v36  ;;  %v4257_v49 = vld [vmem:[#allocation3 + $0x230] sm:$0xf0]  ;;  %v4521_v55 = vld [vmem:[#allocation3 + $0x24] sm:$0xf] }
 0x1a5   :  { %1822 = vmatmul.bf16.gmra.mxu2 %v5162_v7  ;;  %1911 = vmatmul.bf16.gmra.mxu3 %v5166_v3 }
 0x1a8   :  { %v1783_v10 = vpop.f32.mrf.mxu2  ;;  %v1872_v62 = vpop.f32.mrf.mxu3 }
 0x1a9   :  { %v1784_v56 = vadd.f32 %v1783_v10, %v1695_v34  ;;  %v1607_v5 = vpop.f32.mrf.mxu0  ;;  %v1696_v47 = vpop.f32.mrf.mxu1  ;;  %v4260_v10 = vor.u32 %v4585_v32, %v4257_v49 }
 0x1aa   :  { %v1608_v15 = vadd.f32 %v1607_v5, %v5281_v2  ;;  %v4385_v5 = vld [vmem:[#allocation3 + $0x330] sm:$0xf0] }
 0x1ab   :  { %v5309_v21 = vadd.f32 %v1872_v62, %v1784_v56  ;;  %v4001_v56 = vld [vmem:[#allocation3 + $0x30] sm:$0xf0]  ;;  %v4617_v62 = vld [vmem:[#allocation3 + $0x324] sm:$0xf]  ;;  %2131 = vmatpush.bf16.msra.mxu2 %v4260_v10 }
 0x1ac   :  { %v1697_v25 = vadd.f32 %v1696_v47, %v1608_v15 }
 0x1b0   :  { %v1785_v30 = vpop.f32.mrf.mxu2  ;;  %v1874_v0 = vpop.f32.mrf.mxu3 }
 0x1b1   :  { %v1786_v40 = vadd.f32 %v1785_v30, %v1697_v25  ;;  %v1610_v1 = vpop.f32.mrf.mxu0  ;;  %v1699_v38 = vpop.f32.mrf.mxu1  ;;  %v4004_v30 = vor.u32 %v4521_v55, %v4001_v56 }
 0x1b2   :  { %v1611_v39 = vadd.f32 %v1610_v1, %v5281_v2 }
 0x1b3   :  { %v5312_v52 = vadd.f32 %v1874_v0, %v1786_v40  ;;  %1649 = vmatmul.bf16.gmra.mxu0 %v5173_v17  ;;  %v4388_v40 = vor.u32 %v4617_v62, %v4385_v5 }
 0x1b4   :  { %v1700_v35 = vadd.f32 %v1699_v38, %v1611_v39  ;;  %1738 = vmatmul.bf16.gmra.mxu1 %v5176_v20  ;;  %1953 = vmatpush.bf16.msra.mxu0 %v4004_v30 }
 0x1b5   :  { %1827 = vmatmul.bf16.gmra.mxu2 %v5182_v31  ;;  %1916 = vmatmul.bf16.gmra.mxu3 %v5186_v27  ;;  %v4553_v27 = vld [vmem:[#allocation3 + $0x124] sm:$0xf]  ;;  %v4129_v31 = vld [vmem:[#allocation3 + $0x130] sm:$0xf0] }
 0x1b6   :  { %2220 = vmatpush.bf16.msra.mxu3 %v4388_v40  ;;  %v4132_v49 = vor.u32 %v4553_v27, %v4129_v31 }
 0x1b8   :  { %v1788_v34 = vpop.f32.mrf.mxu2  ;;  %v1877_v47 = vpop.f32.mrf.mxu3  ;;  %2042 = vmatpush.bf16.msra.mxu1 %v4132_v49 }
 0x1b9   :  { %v1789_v15 = vadd.f32 %v1788_v34, %v1700_v35  ;;  %v1612_v25 = vpop.f32.mrf.mxu0  ;;  %v1701_v1 = vpop.f32.mrf.mxu1 }
 0x1ba   :  { %v1613_v0 = vadd.f32 %v1612_v25, %v5281_v2 }
 0x1bb   :  { %v5319_v39 = vadd.f32 %v1877_v47, %v1789_v15 }
 0x1bc   :  { %v1702_v38 = vadd.f32 %v1701_v1, %v1613_v0 }
 0x1c0   :  { %v1790_v32 = vpop.f32.mrf.mxu2  ;;  %v1879_v17 = vpop.f32.mrf.mxu3 }
 0x1c1   :  { %v1791_v20 = vadd.f32 %v1790_v32, %v1702_v38  ;;  %v1615_v35 = vpop.f32.mrf.mxu0  ;;  %v1704_v55 = vpop.f32.mrf.mxu1 }
 0x1c2   :  { %v1616_v34 = vadd.f32 %v1615_v35, %v5281_v2  ;;  %v4581_v35 = vld [vmem:[#allocation3 + $0x204] sm:$0xf] }
 0x1c3   :  { %v5322_v56 = vadd.f32 %v1879_v17, %v1791_v20  ;;  %1654 = vmatmul.bf16.gmra.mxu0 %v5193_v45 }
 0x1c4   :  { %v1705_v62 = vadd.f32 %v1704_v55, %v1616_v34  ;;  %1743 = vmatmul.bf16.gmra.mxu1 %v5196_v29  ;;  %v4241_v34 = vld [vmem:[#allocation3 + $0x210] sm:$0xf0]  ;;  %v4517_v55 = vld [vmem:[#allocation3 + $0x4] sm:$0xf] }
 0x1c5   :  { %1832 = vmatmul.bf16.gmra.mxu2 %v5202_v22  ;;  %1921 = vmatmul.bf16.gmra.mxu3 %v5206_v4 }
 0x1c8   :  { %v1793_v10 = vpop.f32.mrf.mxu2  ;;  %v1882_v27 = vpop.f32.mrf.mxu3 }
 0x1c9   :  { %v1794_v31 = vadd.f32 %v1793_v10, %v1705_v62  ;;  %v1617_v5 = vpop.f32.mrf.mxu0  ;;  %v1706_v47 = vpop.f32.mrf.mxu1  ;;  %v4244_v10 = vor.u32 %v4581_v35, %v4241_v34 }
 0x1ca   :  { %v1618_v15 = vadd.f32 %v1617_v5, %v5281_v2  ;;  %v4369_v5 = vld [vmem:[#allocation3 + $0x310] sm:$0xf0] }
 0x1cb   :  { %v5329_v25 = vadd.f32 %v1882_v27, %v1794_v31  ;;  %v3985_v31 = vld [vmem:[#allocation3 + $0x10] sm:$0xf0]  ;;  %v4613_v27 = vld [vmem:[#allocation3 + $0x304] sm:$0xf]  ;;  %2132 = vmatpush.bf16.msra.mxu2 %v4244_v10 }
 0x1cc   :  { %v1707_v17 = vadd.f32 %v1706_v47, %v1618_v15 }
 0x1d0   :  { %v1795_v20 = vpop.f32.mrf.mxu2  ;;  %v1884_v40 = vpop.f32.mrf.mxu3 }
 0x1d1   :  { %v1796_v30 = vadd.f32 %v1795_v20, %v1707_v17  ;;  %v1620_v0 = vpop.f32.mrf.mxu0  ;;  %v1709_v38 = vpop.f32.mrf.mxu1  ;;  %v3988_v20 = vor.u32 %v4517_v55, %v3985_v31 }
 0x1d2   :  { %v1621_v1 = vadd.f32 %v1620_v0, %v5281_v2 }
 0x1d3   :  { %v5332_v32 = vadd.f32 %v1884_v40, %v1796_v30  ;;  %1659 = vmatmul.bf16.gmra.mxu0 %v5213_v54  ;;  %v4372_v30 = vor.u32 %v4613_v27, %v4369_v5 }
 0x1d4   :  { %v1710_v49 = vadd.f32 %v1709_v38, %v1621_v1  ;;  %1748 = vmatmul.bf16.gmra.mxu1 %v5216_v60  ;;  %1954 = vmatpush.bf16.msra.mxu0 %v3988_v20 }
 0x1d5   :  { %1837 = vmatmul.bf16.gmra.mxu2 %v5222_v59  ;;  %1926 = vmatmul.bf16.gmra.mxu3 %v5226_v46  ;;  %v4549_v46 = vld [vmem:[#allocation3 + $0x104] sm:$0xf]  ;;  %v4113_v59 = vld [vmem:[#allocation3 + $0x110] sm:$0xf0] }
 0x1d6   :  { %2221 = vmatpush.bf16.msra.mxu3 %v4372_v30  ;;  %v4116_v34 = vor.u32 %v4549_v46, %v4113_v59 }
 0x1d8   :  { %v1798_v62 = vpop.f32.mrf.mxu2  ;;  %v1887_v47 = vpop.f32.mrf.mxu3  ;;  %2043 = vmatpush.bf16.msra.mxu1 %v4116_v34 }
 0x1d9   :  { %v1799_v15 = vadd.f32 %v1798_v62, %v1710_v49  ;;  %v1622_v17 = vpop.f32.mrf.mxu0  ;;  %v1711_v0 = vpop.f32.mrf.mxu1 }
 0x1da   :  { %v1623_v40 = vadd.f32 %v1622_v17, %v5281_v2 }
 0x1db   :  { %v5339_v1 = vadd.f32 %v1887_v47, %v1799_v15 }
 0x1dc   :  { %v1712_v38 = vadd.f32 %v1711_v0, %v1623_v40 }
 0x1e0   :  { %v1800_v35 = vpop.f32.mrf.mxu2  ;;  %v1889_v54 = vpop.f32.mrf.mxu3 }
 0x1e1   :  { %v1801_v60 = vadd.f32 %v1800_v35, %v1712_v38  ;;  %v1625_v49 = vpop.f32.mrf.mxu0  ;;  %v1714_v55 = vpop.f32.mrf.mxu1 }
 0x1e2   :  { %v1626_v62 = vadd.f32 %v1625_v49, %v5281_v2  ;;  %v4359_v49 = vld [vmem:[#allocation3 + $0x2e8] sm:$0xf] }
 0x1e3   :  { %v5342_v31 = vadd.f32 %v1889_v54, %v1801_v60  ;;  %1664 = vmatmul.bf16.gmra.mxu0 %v5233_v14 }
 0x1e4   :  { %v1715_v27 = vadd.f32 %v1714_v55, %v1626_v62  ;;  %1753 = vmatmul.bf16.gmra.mxu1 %v5236_v48  ;;  %v4612_v62 = vld [vmem:[#allocation3 + $0x2f4] sm:$0xf0]  ;;  %v4103_v55 = vld [vmem:[#allocation3 + $0xe8] sm:$0xf] }
 0x1e5   :  { %1842 = vmatmul.bf16.gmra.mxu2 %v5242_v42  ;;  %1931 = vmatmul.bf16.gmra.mxu3 %v5246_v57 }
 0x1e8   :  { %v1803_v10 = vpop.f32.mrf.mxu2  ;;  %v1892_v46 = vpop.f32.mrf.mxu3 }
 0x1e9   :  { %v1804_v59 = vadd.f32 %v1803_v10, %v1715_v27  ;;  %v1627_v5 = vpop.f32.mrf.mxu0  ;;  %v1716_v47 = vpop.f32.mrf.mxu1  ;;  %v4360_v10 = vor.u32 %v4612_v62, %v4359_v49 }
 0x1ea   :  { %v1628_v15 = vadd.f32 %v1627_v5, %v5281_v2  ;;  %v4644_v5 = vld [vmem:[#allocation3 + $0x3f4] sm:$0xf0] }
 0x1eb   :  { %v5349_v17 = vadd.f32 %v1892_v46, %v1804_v59  ;;  %v4548_v59 = vld [vmem:[#allocation3 + $0xf4] sm:$0xf0]  ;;  %v4487_v46 = vld [vmem:[#allocation3 + $0x3e8] sm:$0xf]  ;;  %2481 = vmatpush.bf16.msrb.mxu2 %v4360_v10 }
 0x1ec   :  { %v1717_v54 = vadd.f32 %v1716_v47, %v1628_v15 }
 0x1f0   :  { %v1805_v60 = vpop.f32.mrf.mxu2  ;;  %v1894_v30 = vpop.f32.mrf.mxu3 }
 0x1f1   :  { %v1806_v20 = vadd.f32 %v1805_v60, %v1717_v54  ;;  %v1630_v40 = vpop.f32.mrf.mxu0  ;;  %v1719_v38 = vpop.f32.mrf.mxu1  ;;  %v4104_v60 = vor.u32 %v4548_v59, %v4103_v55 }
 0x1f2   :  { %v1631_v0 = vadd.f32 %v1630_v40, %v5281_v2 }
 0x1f3   :  { %v5352_v35 = vadd.f32 %v1894_v30, %v1806_v20  ;;  %1669 = vmatmul.bf16.gmra.mxu0 %v5253_v53  ;;  %v4488_v20 = vor.u32 %v4644_v5, %v4487_v46 }
 0x1f4   :  { %v1720_v34 = vadd.f32 %v1719_v38, %v1631_v0  ;;  %1758 = vmatmul.bf16.gmra.mxu1 %v5256_v50  ;;  %2303 = vmatpush.bf16.msrb.mxu0 %v4104_v60 }
 0x1f5   :  { %1847 = vmatmul.bf16.gmra.mxu2 %v5262_v18  ;;  %1936 = vmatmul.bf16.gmra.mxu3 %v5266_v19  ;;  %v4231_v19 = vld [vmem:[#allocation3 + $0x1e8] sm:$0xf]  ;;  %v4580_v18 = vld [vmem:[#allocation3 + $0x1f4] sm:$0xf0] }
 0x1f6   :  { %2570 = vmatpush.bf16.msrb.mxu3 %v4488_v20  ;;  %v4232_v62 = vor.u32 %v4580_v18, %v4231_v19 }
 0x1f8   :  { %v1808_v27 = vpop.f32.mrf.mxu2  ;;  %v1897_v47 = vpop.f32.mrf.mxu3  ;;  %2392 = vmatpush.bf16.msrb.mxu1 %v4232_v62 }
 0x1f9   :  { %v1809_v15 = vadd.f32 %v1808_v27, %v1720_v34  ;;  %v1632_v54 = vpop.f32.mrf.mxu0  ;;  %v1721_v40 = vpop.f32.mrf.mxu1 }
 0x1fa   :  { %v1633_v30 = vadd.f32 %v1632_v54, %v5281_v2 }
 0x1fb   :  { %v5359_v0 = vadd.f32 %v1897_v47, %v1809_v15 }
 0x1fc   :  { %v1722_v38 = vadd.f32 %v1721_v40, %v1633_v30 }
 0x200   :  { %v1810_v49 = vpop.f32.mrf.mxu2  ;;  %v1899_v53 = vpop.f32.mrf.mxu3 }
 0x201   :  { %v1811_v50 = vadd.f32 %v1810_v49, %v1722_v38  ;;  %v1635_v34 = vpop.f32.mrf.mxu0  ;;  %v1724_v55 = vpop.f32.mrf.mxu1 }
 0x202   :  { %v1636_v27 = vadd.f32 %v1635_v34, %v5281_v2  ;;  %v4343_v34 = vld [vmem:[#allocation3 + $0x2c8] sm:$0xf] }
 0x203   :  { %v5362_v59 = vadd.f32 %v1899_v53, %v1811_v50  ;;  %1674 = vmatmul.bf16.gmra.mxu0 %v5278_v58 }
 0x204   :  { %v1725_v46 = vadd.f32 %v1724_v55, %v1636_v27  ;;  %1763 = vmatmul.bf16.gmra.mxu1 %v5284_v33  ;;  %v4608_v27 = vld [vmem:[#allocation3 + $0x2d4] sm:$0xf0]  ;;  %v4087_v55 = vld [vmem:[#allocation3 + $0xc8] sm:$0xf] }
 0x205   :  { %1852 = vmatmul.bf16.gmra.mxu2 %v5291_v24  ;;  %1941 = vmatmul.bf16.gmra.mxu3 %v5295_v51 }
 0x208   :  { %v1813_v10 = vpop.f32.mrf.mxu2  ;;  %v1902_v19 = vpop.f32.mrf.mxu3 }
 0x209   :  { %v1814_v18 = vadd.f32 %v1813_v10, %v1725_v46  ;;  %v1637_v5 = vpop.f32.mrf.mxu0  ;;  %v1726_v47 = vpop.f32.mrf.mxu1  ;;  %v4344_v10 = vor.u32 %v4608_v27, %v4343_v34 }
 0x20a   :  { %v1638_v15 = vadd.f32 %v1637_v5, %v5281_v2  ;;  %v4640_v5 = vld [vmem:[#allocation3 + $0x3d4] sm:$0xf0] }
 0x20b   :  { %v5369_v54 = vadd.f32 %v1902_v19, %v1814_v18  ;;  %v4544_v18 = vld [vmem:[#allocation3 + $0xd4] sm:$0xf0]  ;;  %v4471_v19 = vld [vmem:[#allocation3 + $0x3c8] sm:$0xf]  ;;  %2482 = vmatpush.bf16.msrb.mxu2 %v4344_v10 }
 0x20c   :  { %v1727_v53 = vadd.f32 %v1726_v47, %v1638_v15 }
 0x210   :  { %v1815_v50 = vpop.f32.mrf.mxu2  ;;  %v1904_v20 = vpop.f32.mrf.mxu3 }
 0x211   :  { %v1816_v60 = vadd.f32 %v1815_v50, %v1727_v53  ;;  %v1640_v30 = vpop.f32.mrf.mxu0  ;;  %v1729_v38 = vpop.f32.mrf.mxu1  ;;  %v4088_v50 = vor.u32 %v4544_v18, %v4087_v55 }
 0x212   :  { %v1641_v40 = vadd.f32 %v1640_v30, %v5281_v2 }
 0x213   :  { %v5372_v49 = vadd.f32 %v1904_v20, %v1816_v60  ;;  %1955 = vmatmul.bf16.vlgmr.msra.gmra.mxu0 %v4952_v61  ;;  %v4472_v60 = vor.u32 %v4640_v5, %v4471_v19 }
 0x214   :  { %v1730_v62 = vadd.f32 %v1729_v38, %v1641_v40  ;;  %2044 = vmatmul.bf16.vlgmr.msra.gmra.mxu1 %v4955_v63  ;;  %2304 = vmatpush.bf16.msrb.mxu0 %v4088_v50 }
 0x215   :  { %2133 = vmatmul.bf16.vlgmr.msra.gmra.mxu2 %v4964_v12  ;;  %2222 = vmatmul.bf16.vlgmr.msra.gmra.mxu3 %v4968_v13  ;;  %v4215_v13 = vld [vmem:[#allocation3 + $0x1c8] sm:$0xf]  ;;  %v4576_v12 = vld [vmem:[#allocation3 + $0x1d4] sm:$0xf0] }
 0x216   :  { %2571 = vmatpush.bf16.msrb.mxu3 %v4472_v60  ;;  %v4216_v27 = vor.u32 %v4576_v12, %v4215_v13 }
 0x218   :  { %v1818_v46 = vpop.f32.mrf.mxu2  ;;  %v1907_v47 = vpop.f32.mrf.mxu3  ;;  %2393 = vmatpush.bf16.msrb.mxu1 %v4216_v27 }
 0x219   :  { %v1819_v15 = vadd.f32 %v1818_v46, %v1730_v62  ;;  %v1642_v53 = vpop.f32.mrf.mxu0  ;;  %v1731_v30 = vpop.f32.mrf.mxu1 }
 0x21a   :  { %v1643_v20 = vadd.f32 %v1642_v53, %v5281_v2 }
 0x21b   :  { %v5379_v40 = vadd.f32 %v1907_v47, %v1819_v15 }
 0x21c   :  { %v1732_v38 = vadd.f32 %v1731_v30, %v1643_v20 }
 0x220   :  { %v1820_v34 = vpop.f32.mrf.mxu2  ;;  %v1909_v61 = vpop.f32.mrf.mxu3 }
 0x221   :  { %v1821_v63 = vadd.f32 %v1820_v34, %v1732_v38  ;;  %v1645_v62 = vpop.f32.mrf.mxu0  ;;  %v1734_v55 = vpop.f32.mrf.mxu1 }
 0x222   :  { %v1646_v46 = vadd.f32 %v1645_v62, %v5281_v2  ;;  %v6347_v62 = vld [vmem:[#allocation16_spill] sm:$0xff] }
 0x223   :  { %v5382_v18 = vadd.f32 %v1909_v61, %v1821_v63  ;;  %1960 = vmatmul.bf16.gmra.mxu0 %v4975_v26 }
 0x224   :  { %v1735_v19 = vadd.f32 %v1734_v55, %v1646_v46  ;;  %2049 = vmatmul.bf16.gmra.mxu1 %v4978_v28  ;;  %v6348_v46 = vld [vmem:[#allocation17_spill] sm:$0xff]  ;;  %v4327_v55 = vld [vmem:[#allocation3 + $0x2a8] sm:$0xf] }
 0x225   :  { %2138 = vmatmul.bf16.gmra.mxu2 %v4987_v43  ;;  %2227 = vmatmul.bf16.gmra.mxu3 %v4991_v44 }
 0x228   :  { %v1823_v10 = vpop.f32.mrf.mxu2  ;;  %v1912_v13 = vpop.f32.mrf.mxu3 }
 0x229   :  { %v1824_v12 = vadd.f32 %v1823_v10, %v1735_v19  ;;  %v1647_v5 = vpop.f32.mrf.mxu0  ;;  %v1736_v47 = vpop.f32.mrf.mxu1  ;;  %v4604_v19 = vld [vmem:[#allocation3 + $0x2b4] sm:$0xf0]  ;;  %v4071_v10 = vld [vmem:[#allocation3 + $0xa8] sm:$0xf] }
 0x22a   :  { %v1648_v15 = vadd.f32 %v1647_v5, %v5281_v2  ;;  %v4540_v5 = vld [vmem:[#allocation3 + $0xb4] sm:$0xf0] }
 0x22b   :  { %v5389_v53 = vadd.f32 %v1912_v13, %v1824_v12  ;;  %v4328_v13 = vor.u32 %v4604_v19, %v4327_v55 }
 0x22c   :  { %v1737_v61 = vadd.f32 %v1736_v47, %v1648_v15  ;;  %v4455_v15 = vld [vmem:[#allocation3 + $0x3a8] sm:$0xf]  ;;  %v4636_v47 = vld [vmem:[#allocation3 + $0x3b4] sm:$0xf0] }
 0x22d   :  { %6345 = vst [vmem:[#allocation55_spill] sm:$0xff] %v5389_v53  ;;  %2483 = vmatpush.bf16.msrb.mxu2 %v4328_v13  ;;  %v6351_v13 = vld [vmem:[#allocation18_spill] sm:$0xff] }
 0x230   :  { %v1825_v63 = vpop.f32.mrf.mxu2  ;;  %v1914_v60 = vpop.f32.mrf.mxu3 }
 0x231   :  { %v1826_v50 = vadd.f32 %v1825_v63, %v1737_v61  ;;  %v1650_v20 = vpop.f32.mrf.mxu0  ;;  %v1739_v38 = vpop.f32.mrf.mxu1 }
 0x232   :  { %v1651_v30 = vadd.f32 %v1650_v20, %v5281_v2  ;;  %v4456_v20 = vor.u32 %v4636_v47, %v4455_v15  ;;  %v6352_v47 = vld [vmem:[#allocation19_spill] sm:$0xff] }
 0x233   :  { %v5392_v34 = vadd.f32 %v1914_v60, %v1826_v50  ;;  %1965 = vmatmul.bf16.gmra.mxu0 %v4998_v9  ;;  %v4072_v60 = vor.u32 %v4540_v5, %v4071_v10  ;;  %v4572_v9 = vld [vmem:[#allocation3 + $0x1b4] sm:$0xf0] }
 0x234   :  { %v1740_v27 = vadd.f32 %v1739_v38, %v1651_v30  ;;  %2054 = vmatmul.bf16.gmra.mxu1 %v5001_v11  ;;  %2572 = vmatpush.bf16.msrb.mxu3 %v4456_v20  ;;  %v4199_v11 = vld [vmem:[#allocation3 + $0x1a8] sm:$0xf] }
 0x235   :  { %6346 = vst [vmem:[#allocation56_spill] sm:$0xff] %v5392_v34  ;;  %2143 = vmatmul.bf16.gmra.mxu2 %v6347_v62  ;;  %2232 = vmatmul.bf16.gmra.mxu3 %v6348_v46  ;;  %v4200_v19 = vor.u32 %v4572_v9, %v4199_v11 }
 0x236   :  { %2305 = vmatpush.bf16.msrb.mxu0 %v4072_v60 }
 0x237   :  { %2394 = vmatpush.bf16.msrb.mxu1 %v4200_v19 }
 0x238   :  { %v1828_v12 = vpop.f32.mrf.mxu2  ;;  %v1917_v63 = vpop.f32.mrf.mxu3 }
 0x239   :  { %v1829_v61 = vadd.f32 %v1828_v12, %v1740_v27  ;;  %v1652_v50 = vpop.f32.mrf.mxu0  ;;  %v1741_v38 = vpop.f32.mrf.mxu1 }
 0x23a   :  { %v1653_v30 = vadd.f32 %v1652_v50, %v5281_v2 }
 0x23b   :  { %v5399_v62 = vadd.f32 %v1917_v63, %v1829_v61  ;;  %v6353_v61 = vld [vmem:[#allocation20_spill] sm:$0xff]  ;;  %v6354_v63 = vld [vmem:[#allocation21_spill] sm:$0xff] }
 0x23c   :  { %v1742_v46 = vadd.f32 %v1741_v38, %v1653_v30 }
 0x23d   :  { %6349 = vst [vmem:[#allocation57_spill] sm:$0xff] %v5399_v62 }
 0x240   :  { %v1830_v55 = vpop.f32.mrf.mxu2  ;;  %v1919_v53 = vpop.f32.mrf.mxu3 }
 0x241   :  { %v1831_v34 = vadd.f32 %v1830_v55, %v1742_v46  ;;  %v1655_v27 = vpop.f32.mrf.mxu0  ;;  %v1744_v10 = vpop.f32.mrf.mxu1 }
 0x242   :  { %v1656_v12 = vadd.f32 %v1655_v27, %v5281_v2 }
 0x243   :  { %v5402_v5 = vadd.f32 %v1919_v53, %v1831_v34  ;;  %1970 = vmatmul.bf16.gmra.mxu0 %v6351_v13  ;;  %v4568_v13 = vld [vmem:[#allocation3 + $0x194] sm:$0xf0] }
 0x244   :  { %v1745_v15 = vadd.f32 %v1744_v10, %v1656_v12  ;;  %2059 = vmatmul.bf16.gmra.mxu1 %v6352_v47 }
 0x245   :  { %6350 = vst [vmem:[#allocation58_spill] sm:$0xff] %v5402_v5  ;;  %2148 = vmatmul.bf16.gmra.mxu2 %v6353_v61  ;;  %2237 = vmatmul.bf16.gmra.mxu3 %v6354_v63  ;;  %v6357_v61 = vld [vmem:[#allocation22_spill] sm:$0xff] }
 0x248   :  { %v1833_v50 = vpop.f32.mrf.mxu2  ;;  %v1922_v11 = vpop.f32.mrf.mxu3 }
 0x249   :  { %v1834_v9 = vadd.f32 %v1833_v50, %v1745_v15  ;;  %v1657_v46 = vpop.f32.mrf.mxu0  ;;  %v1746_v20 = vpop.f32.mrf.mxu1  ;;  %v6358_v15 = vld [vmem:[#allocation23_spill] sm:$0xff]  ;;  %v6359_v50 = vld [vmem:[#allocation24_spill] sm:$0xff] }
 0x24a   :  { %v1658_v60 = vadd.f32 %v1657_v46, %v5281_v2  ;;  %v6360_v46 = vld [vmem:[#allocation25_spill] sm:$0xff] }
 0x24b   :  { %v5409_v30 = vadd.f32 %v1922_v11, %v1834_v9  ;;  %v4311_v9 = vld [vmem:[#allocation3 + $0x288] sm:$0xf]  ;;  %v4600_v11 = vld [vmem:[#allocation3 + $0x294] sm:$0xf0] }
 0x24c   :  { %v1747_v53 = vadd.f32 %v1746_v20, %v1658_v60  ;;  %v4055_v60 = vld [vmem:[#allocation3 + $0x88] sm:$0xf] }
 0x24d   :  { %6355 = vst [vmem:[#allocation59_spill] sm:$0xff] %v5409_v30  ;;  %v4439_v30 = vld [vmem:[#allocation3 + $0x388] sm:$0xf] }
 0x250   :  { %v1835_v34 = vpop.f32.mrf.mxu2  ;;  %v1924_v55 = vpop.f32.mrf.mxu3 }
 0x251   :  { %v1836_v38 = vadd.f32 %v1835_v34, %v1747_v53  ;;  %v1660_v19 = vpop.f32.mrf.mxu0  ;;  %v1749_v12 = vpop.f32.mrf.mxu1  ;;  %v4312_v53 = vor.u32 %v4600_v11, %v4311_v9  ;;  %v4536_v34 = vld [vmem:[#allocation3 + $0x94] sm:$0xf0] }
 0x252   :  { %v1661_v27 = vadd.f32 %v1660_v19, %v5281_v2  ;;  %v4632_v19 = vld [vmem:[#allocation3 + $0x394] sm:$0xf0] }
 0x253   :  { %v5412_v10 = vadd.f32 %v1924_v55, %v1836_v38  ;;  %1975 = vmatmul.bf16.gmra.mxu0 %v6357_v61  ;;  %2484 = vmatpush.bf16.msrb.mxu2 %v4312_v53  ;;  %v6363_v53 = vld [vmem:[#allocation28_spill] sm:$0xff] }
 0x254   :  { %v1750_v63 = vadd.f32 %v1749_v12, %v1661_v27  ;;  %2064 = vmatmul.bf16.gmra.mxu1 %v6358_v15  ;;  %v4056_v27 = vor.u32 %v4536_v34, %v4055_v60  ;;  %v4440_v12 = vor.u32 %v4632_v19, %v4439_v30 }
 0x255   :  { %6356 = vst [vmem:[#allocation60_spill] sm:$0xff] %v5412_v10  ;;  %2153 = vmatmul.bf16.gmra.mxu2 %v6359_v50  ;;  %2242 = vmatmul.bf16.gmra.mxu3 %v6360_v46  ;;  %v4183_v10 = vld [vmem:[#allocation3 + $0x188] sm:$0xf] }
 0x256   :  { %2306 = vmatpush.bf16.msrb.mxu0 %v4056_v27  ;;  %2573 = vmatpush.bf16.msrb.mxu3 %v4440_v12  ;;  %v4184_v11 = vor.u32 %v4568_v13, %v4183_v10 }
 0x258   :  { %v1838_v20 = vpop.f32.mrf.mxu2  ;;  %v1927_v38 = vpop.f32.mrf.mxu3  ;;  %2395 = vmatpush.bf16.msrb.mxu1 %v4184_v11 }
 0x259   :  { %v1839_v47 = vadd.f32 %v1838_v20, %v1750_v63  ;;  %v1662_v55 = vpop.f32.mrf.mxu0  ;;  %v1751_v15 = vpop.f32.mrf.mxu1 }
 0x25a   :  { %v1663_v61 = vadd.f32 %v1662_v55, %v5281_v2 }
 0x25b   :  { %v5419_v50 = vadd.f32 %v1927_v38, %v1839_v47  ;;  %v6362_v47 = vld [vmem:[#allocation27_spill] sm:$0xff] }
 0x25c   :  { %v1752_v46 = vadd.f32 %v1751_v15, %v1663_v61  ;;  %v6364_v61 = vld [vmem:[#allocation29_spill] sm:$0xff] }
 0x260   :  { %v1840_v9 = vpop.f32.mrf.mxu2  ;;  %v1929_v62 = vpop.f32.mrf.mxu3 }
 0x261   :  { %v1841_v5 = vadd.f32 %v1840_v9, %v1752_v46  ;;  %v1665_v63 = vpop.f32.mrf.mxu0  ;;  %v1754_v60 = vpop.f32.mrf.mxu1 }
 0x262   :  { %v1666_v20 = vadd.f32 %v1665_v63, %v5281_v2 }
 0x263   :  { %v5422_v30 = vadd.f32 %v1929_v62, %v1841_v5  ;;  %1980 = vmatmul.bf16.gmra.mxu0 %v5067_v16 }
 0x264   :  { %v1755_v34 = vadd.f32 %v1754_v60, %v1666_v20  ;;  %2069 = vmatmul.bf16.gmra.mxu1 %v6362_v47  ;;  %v4564_v47 = vld [vmem:[#allocation3 + $0x174] sm:$0xf0] }
 0x265   :  { %6361 = vst [vmem:[#allocation61_spill] sm:$0xff] %v5422_v30  ;;  %2158 = vmatmul.bf16.gmra.mxu2 %v6363_v53  ;;  %2247 = vmatmul.bf16.gmra.mxu3 %v6364_v61  ;;  %v6367_v61 = vld [vmem:[#allocation30_spill] sm:$0xff] }
 0x268   :  { %v1843_v15 = vpop.f32.mrf.mxu2  ;;  %v1932_v10 = vpop.f32.mrf.mxu3 }
 0x269   :  { %v1844_v13 = vadd.f32 %v1843_v15, %v1755_v34  ;;  %v1667_v46 = vpop.f32.mrf.mxu0  ;;  %v1756_v38 = vpop.f32.mrf.mxu1  ;;  %v6368_v34 = vld [vmem:[#allocation31_spill] sm:$0xff]  ;;  %v6369_v15 = vld [vmem:[#allocation32_spill] sm:$0xff] }
 0x26a   :  { %v1668_v19 = vadd.f32 %v1667_v46, %v5281_v2  ;;  %v6370_v46 = vld [vmem:[#allocation33_spill] sm:$0xff] }
 0x26b   :  { %v5429_v55 = vadd.f32 %v1932_v10, %v1844_v13  ;;  %v4295_v13 = vld [vmem:[#allocation3 + $0x268] sm:$0xf]  ;;  %v4596_v10 = vld [vmem:[#allocation3 + $0x274] sm:$0xf0] }
 0x26c   :  { %v1757_v62 = vadd.f32 %v1756_v38, %v1668_v19  ;;  %v4039_v19 = vld [vmem:[#allocation3 + $0x68] sm:$0xf] }
 0x26d   :  { %6365 = vst [vmem:[#allocation62_spill] sm:$0xff] %v5429_v55  ;;  %v4423_v55 = vld [vmem:[#allocation3 + $0x368] sm:$0xf] }
 0x270   :  { %v1845_v5 = vpop.f32.mrf.mxu2  ;;  %v1934_v12 = vpop.f32.mrf.mxu3 }
 0x271   :  { %v1846_v27 = vadd.f32 %v1845_v5, %v1757_v62  ;;  %v1670_v9 = vpop.f32.mrf.mxu0  ;;  %v1759_v63 = vpop.f32.mrf.mxu1  ;;  %v4296_v62 = vor.u32 %v4596_v10, %v4295_v13  ;;  %v4532_v5 = vld [vmem:[#allocation3 + $0x74] sm:$0xf0] }
 0x272   :  { %v1671_v11 = vadd.f32 %v1670_v9, %v5281_v2  ;;  %v4628_v9 = vld [vmem:[#allocation3 + $0x374] sm:$0xf0] }
 0x273   :  { %v5432_v20 = vadd.f32 %v1934_v12, %v1846_v27  ;;  %1985 = vmatmul.bf16.gmra.mxu0 %v6367_v61  ;;  %2485 = vmatpush.bf16.msrb.mxu2 %v4296_v62 }
 0x274   :  { %v1760_v60 = vadd.f32 %v1759_v63, %v1671_v11  ;;  %2074 = vmatmul.bf16.gmra.mxu1 %v6368_v34  ;;  %v4040_v11 = vor.u32 %v4532_v5, %v4039_v19  ;;  %v4424_v63 = vor.u32 %v4628_v9, %v4423_v55 }
 0x275   :  { %6366 = vst [vmem:[#allocation63_spill] sm:$0xff] %v5432_v20  ;;  %2163 = vmatmul.bf16.gmra.mxu2 %v6369_v15  ;;  %2252 = vmatmul.bf16.gmra.mxu3 %v6370_v46  ;;  %v4167_v20 = vld [vmem:[#allocation3 + $0x168] sm:$0xf] }
 0x276   :  { %2307 = vmatpush.bf16.msrb.mxu0 %v4040_v11  ;;  %2574 = vmatpush.bf16.msrb.mxu3 %v4424_v63  ;;  %v4168_v10 = vor.u32 %v4564_v47, %v4167_v20  ;;  %v3143_v11 = vld [vmem:[%s6203_s5] sm:$0xf] }
 0x278   :  { %v1848_v38 = vpop.f32.mrf.mxu2  ;;  %v1937_v27 = vpop.f32.mrf.mxu3  ;;  %2396 = vmatpush.bf16.msrb.mxu1 %v4168_v10 }
 0x279   :  { %v1849_v53 = vadd.f32 %v1848_v38, %v1760_v60  ;;  %v1672_v12 = vpop.f32.mrf.mxu0  ;;  %v1761_v34 = vpop.f32.mrf.mxu1 }
 0x27a   :  { %v1673_v61 = vadd.f32 %v1672_v12, %v5281_v2 }
 0x27b   :  { %v5439_v15 = vadd.f32 %v1937_v27, %v1849_v53  ;;  %v6371_v53 = vld [vmem:[#allocation36_spill] sm:$0xff] }
 0x27c   :  { %v1762_v46 = vadd.f32 %v1761_v34, %v1673_v61  ;;  %v6372_v61 = vld [vmem:[#allocation37_spill] sm:$0xff] }
 0x280   :  { %v1850_v13 = vpop.f32.mrf.mxu2  ;;  %v1939_v30 = vpop.f32.mrf.mxu3 }
 0x281   :  { %v1851_v16 = vadd.f32 %v1850_v13, %v1762_v46  ;;  %v1675_v60 = vpop.f32.mrf.mxu0  ;;  %v1764_v19 = vpop.f32.mrf.mxu1 }
 0x282   :  { %v1676_v38 = vadd.f32 %v1675_v60, %v5281_v2 }
 0x283   :  { %v5442_v55 = vadd.f32 %v1939_v30, %v1851_v16  ;;  %1990 = vmatmul.bf16.gmra.mxu0 %v5113_v6  ;;  %v6374_v30 = vld [vmem:[#allocation54_spill] sm:$0xff] }
 0x284   :  { %v1765_v5 = vadd.f32 %v1764_v19, %v1676_v38  ;;  %2079 = vmatmul.bf16.gmra.mxu1 %v5116_v8  ;;  %v5452_v12 = vperm.slane %v6374_v30, 1  ;;  %v5457_v38 = vunpack.c.l.bf16 %v3143_v11  ;;  %v4279_v30 = vld [vmem:[#allocation3 + $0x248] sm:$0xf]  ;;  %v4592_v11 = vld [vmem:[#allocation3 + $0x254] sm:$0xf0] }
 0x285   :  { %2168 = vmatmul.bf16.gmra.mxu2 %v6371_v53  ;;  %2257 = vmatmul.bf16.gmra.mxu3 %v6372_v61 }
 0x286   :  { %6375 = vst [vmem:[#allocation54_spill] sm:$0xff] %v5457_v38 }
 0x288   :  { %v1853_v34 = vpop.f32.mrf.mxu2  ;;  %v1942_v20 = vpop.f32.mrf.mxu3 }
 0x289   :  { %v1854_v47 = vadd.f32 %v1853_v34, %v1765_v5  ;;  %v1677_v46 = vpop.f32.mrf.mxu0  ;;  %v1766_v9 = vpop.f32.mrf.mxu1 }
 0x28a   :  { %v1678_v62 = vadd.f32 %v1677_v46, %v5281_v2  ;;  %v6379_v46 = vld [vmem:[#allocation40_spill] sm:$0xff] }
 0x28b   :  { %v5449_v27 = vadd.f32 %v1942_v20, %v1854_v47  ;;  %v6377_v47 = vld [vmem:[#allocation38_spill] sm:$0xff]  ;;  %v6378_v20 = vld [vmem:[#allocation39_spill] sm:$0xff] }
 0x28c   :  { %v1767_v16 = vadd.f32 %v1766_v9, %v1678_v62  ;;  %v3146_v62 = vperm.slane %v5457_v38, 0  ;;  %v6380_v9 = vld [vmem:[#allocation41_spill] sm:$0xff] }
 0x28d   :  { %6373 = vst [vmem:[#allocation64_spill] sm:$0xff] %v5449_v27  ;;  %v4280_v27 = vor.u32 %v4592_v11, %v4279_v30 }
 0x28f   :  { %2486 = vmatpush.bf16.msrb.mxu2 %v4280_v27 }
 0x290   :  { %v1855_v63 = vpop.f32.mrf.mxu2  ;;  %v1944_v10 = vpop.f32.mrf.mxu3 }
 0x291   :  { %v1856_v13 = vadd.f32 %v1855_v63, %v1767_v16  ;;  %v1956_v60 = vpop.f32.mrf.mxu0  ;;  %v2045_v2 = vpop.f32.mrf.mxu1  ;;  %v3147_v16 = vperm.slane %v5457_v38, 2  ;;  %v4023_v63 = vld [vmem:[#allocation3 + $0x48] sm:$0xf]  ;;  %v5470_v38 = vperm.slane %v3146_v62, 0 }
 0x292   :  { %v1957_v19 = vadd.f32 %v1956_v60, %v5452_v12 }
 0x293   :  { %v5460_v5 = vadd.f32 %v1944_v10, %v1856_v13  ;;  %1995 = vmatmul.bf16.gmra.mxu0 %v6377_v47  ;;  %v4528_v13 = vld [vmem:[#allocation3 + $0x54] sm:$0xf0]  ;;  %v4407_v10 = vld [vmem:[#allocation3 + $0x348] sm:$0xf]  ;;  %v5472_v6 = vperm.slane %v3147_v16, 0 }
 0x294   :  { %v2046_v34 = vadd.f32 %v2045_v2, %v1957_v19  ;;  %2084 = vmatmul.bf16.gmra.mxu1 %v6378_v20  ;;  %v4624_v19 = vld [vmem:[#allocation3 + $0x354] sm:$0xf0]  ;;  %v4024_v20 = vor.u32 %v4528_v13, %v4023_v63 }
 0x295   :  { %6376 = vst [vmem:[#allocation65_spill] sm:$0xff] %v5460_v5  ;;  %2173 = vmatmul.bf16.gmra.mxu2 %v6379_v46  ;;  %2262 = vmatmul.bf16.gmra.mxu3 %v6380_v9  ;;  %v4408_v61 = vor.u32 %v4624_v19, %v4407_v10  ;;  %v3015_v9 = vmax.f32 %v5299_v37, 0.0  ;;  %v4560_v13 = vld [vmem:[#allocation3 + $0x154] sm:$0xf0] }
 0x296   :  { %2308 = vmatpush.bf16.msrb.mxu0 %v4024_v20 }
 0x297   :  { %2575 = vmatpush.bf16.msrb.mxu3 %v4408_v61 }
 0x298   :  { %v2134_v60 = vpop.f32.mrf.mxu2  ;;  %v2223_v47 = vpop.f32.mrf.mxu3 }
 0x299   :  { %v2135_v2 = vadd.f32 %v2134_v60, %v2046_v34  ;;  %v1958_v5 = vpop.f32.mrf.mxu0  ;;  %v2047_v53 = vpop.f32.mrf.mxu1  ;;  %v3158_v34 = vmul.f32 %v5470_v38, %v3015_v9  ;;  %v4151_v60 = vld [vmem:[#allocation3 + $0x148] sm:$0xf] }
 0x29a   :  { %v1959_v46 = vadd.f32 %v1958_v5, %v5452_v12  ;;  %v4152_v10 = vor.u32 %v4560_v13, %v4151_v60  ;;  %v3023_v13 = vmax.f32 %v5309_v21, 0.0 }
 0x29b   :  { %v2224_v8 = vadd.f32 %v2223_v47, %v2135_v2 }
 0x29c   :  { %v2048_v30 = vadd.f32 %v2047_v53, %v1959_v46  ;;  %2397 = vmatpush.bf16.msrb.mxu1 %v4152_v10  ;;  %v3019_v53 = vmax.f32 %v5302_v41, 0.0 }
 0x29d   :  { %v3016_v11 = vmax.f32 %v2224_v8, 0.0 }
 0x29e   :  { %v3162_v46 = vmul.f32 %v5470_v38, %v3019_v53 }
 0x29f   :  { %v3159_v63 = vmul.f32 %v5472_v6, %v3016_v11 }
 0x2a0   :  { %v2136_v5 = vpop.f32.mrf.mxu2  ;;  %v2225_v19 = vpop.f32.mrf.mxu3 }
 0x2a1   :  { %v2137_v27 = vadd.f32 %v2136_v5, %v2048_v30  ;;  %v1961_v37 = vpop.f32.mrf.mxu0  ;;  %v5476_v62 = vadd.f32 %v3159_v63, %v3158_v34  ;;  %v2050_v16 = vpop.f32.mrf.mxu1 }
 0x2a2   :  { %v1962_v47 = vadd.f32 %v1961_v37, %v5452_v12 }
 0x2a3   :  { %v2226_v8 = vadd.f32 %v2225_v19, %v2137_v27  ;;  %2000 = vmatmul.bf16.gmra.mxu0 %v5153_v23  ;;  %v3166_v19 = vmul.f32 %v5470_v38, %v3023_v13 }
 0x2a4   :  { %v2051_v61 = vadd.f32 %v2050_v16, %v1962_v47  ;;  %2089 = vmatmul.bf16.gmra.mxu1 %v5156_v36 }
 0x2a5   :  { %v3020_v20 = vmax.f32 %v2226_v8, 0.0  ;;  %2178 = vmatmul.bf16.gmra.mxu2 %v5162_v7  ;;  %2267 = vmatmul.bf16.gmra.mxu3 %v5166_v3 }
 0x2a7   :  { %v3163_v9 = vmul.f32 %v5472_v6, %v3020_v20 }
 0x2a8   :  { %v2139_v2 = vpop.f32.mrf.mxu2  ;;  %v2228_v11 = vpop.f32.mrf.mxu3 }
 0x2a9   :  { %v2140_v30 = vadd.f32 %v2139_v2, %v2051_v61  ;;  %v1963_v34 = vpop.f32.mrf.mxu0  ;;  %v5486_v41 = vadd.f32 %v3163_v9, %v3162_v46  ;;  %v2052_v60 = vpop.f32.mrf.mxu1  ;;  %v3027_v9 = vmax.f32 %v5312_v52, 0.0 }
 0x2aa   :  { %v1964_v63 = vadd.f32 %v1963_v34, %v5452_v12  ;;  %v6383_v34 = vld [vmem:[#allocation43_spill] sm:$0xff] }
 0x2ab   :  { %v2229_v5 = vadd.f32 %v2228_v11, %v2140_v30  ;;  %v6382_v30 = vld [vmem:[#allocation42_spill] sm:$0xff]  ;;  %v3170_v13 = vmul.f32 %v5470_v38, %v3027_v9 }
 0x2ac   :  { %v2053_v10 = vadd.f32 %v2052_v60, %v1964_v63  ;;  %v6384_v63 = vld [vmem:[#allocation44_spill] sm:$0xff]  ;;  %v6385_v60 = vld [vmem:[#allocation45_spill] sm:$0xff] }
 0x2ad   :  { %v3024_v27 = vmax.f32 %v2229_v5, 0.0 }
 0x2af   :  { %v3167_v37 = vmul.f32 %v5472_v6, %v3024_v27  ;;  %v4588_v27 = vld [vmem:[#allocation3 + $0x234] sm:$0xf0] }
 0x2b0   :  { %v2141_v47 = vpop.f32.mrf.mxu2  ;;  %v2230_v53 = vpop.f32.mrf.mxu3 }
 0x2b1   :  { %v2142_v16 = vadd.f32 %v2141_v47, %v2053_v10  ;;  %v1966_v8 = vpop.f32.mrf.mxu0  ;;  %v5492_v61 = vadd.f32 %v3167_v37, %v3166_v19  ;;  %v2055_v46 = vpop.f32.mrf.mxu1  ;;  %v4263_v10 = vld [vmem:[#allocation3 + $0x228] sm:$0xf]  ;;  %v4524_v47 = vld [vmem:[#allocation3 + $0x34] sm:$0xf0] }
 0x2b2   :  { %v1967_v20 = vadd.f32 %v1966_v8, %v5452_v12  ;;  %v4007_v19 = vld [vmem:[#allocation3 + $0x28] sm:$0xf]  ;;  %v4264_v52 = vor.u32 %v4588_v27, %v4263_v10 }
 0x2b3   :  { %6381 = vst [vmem:[#allocation66_spill] sm:$0xff] %v5492_v61  ;;  %v2231_v2 = vadd.f32 %v2230_v53, %v2142_v16  ;;  %2005 = vmatmul.bf16.gmra.mxu0 %v6382_v30  ;;  %v4391_v16 = vld [vmem:[#allocation3 + $0x328] sm:$0xf]  ;;  %v4620_v53 = vld [vmem:[#allocation3 + $0x334] sm:$0xf0] }
 0x2b4   :  { %v2056_v21 = vadd.f32 %v2055_v46, %v1967_v20  ;;  %2094 = vmatmul.bf16.gmra.mxu1 %v6383_v34  ;;  %v4392_v34 = vor.u32 %v4620_v53, %v4391_v16  ;;  %2487 = vmatpush.bf16.msrb.mxu2 %v4264_v52  ;;  %v4556_v16 = vld [vmem:[#allocation3 + $0x134] sm:$0xf0] }
 0x2b5   :  { %v3028_v11 = vmax.f32 %v2231_v2, 0.0  ;;  %2183 = vmatmul.bf16.gmra.mxu2 %v6384_v63  ;;  %2272 = vmatmul.bf16.gmra.mxu3 %v6385_v60  ;;  %v4008_v2 = vor.u32 %v4524_v47, %v4007_v19 }
 0x2b6   :  { %2576 = vmatpush.bf16.msrb.mxu3 %v4392_v34  ;;  %v3035_v34 = vmax.f32 %v5322_v56, 0.0 }
 0x2b7   :  { %v3171_v5 = vmul.f32 %v5472_v6, %v3028_v11  ;;  %v3031_v11 = vmax.f32 %v5319_v39, 0.0  ;;  %2309 = vmatpush.bf16.msrb.mxu0 %v4008_v2 }
 0x2b8   :  { %v2144_v37 = vpop.f32.mrf.mxu2  ;;  %v2233_v20 = vpop.f32.mrf.mxu3 }
 0x2b9   :  { %v2145_v8 = vadd.f32 %v2144_v37, %v2056_v21  ;;  %v1968_v46 = vpop.f32.mrf.mxu0  ;;  %v5502_v63 = vadd.f32 %v3171_v5, %v3170_v13  ;;  %v2057_v9 = vpop.f32.mrf.mxu1  ;;  %v3174_v61 = vmul.f32 %v5470_v38, %v3031_v11  ;;  %v4135_v5 = vld [vmem:[#allocation3 + $0x128] sm:$0xf] }
 0x2ba   :  { %v1969_v60 = vadd.f32 %v1968_v46, %v5452_v12 }
 0x2bb   :  { %v2234_v30 = vadd.f32 %v2233_v20, %v2145_v8  ;;  %v4136_v8 = vor.u32 %v4556_v16, %v4135_v5 }
 0x2bc   :  { %v2058_v10 = vadd.f32 %v2057_v9, %v1969_v60 }
 0x2bd   :  { %v3032_v27 = vmax.f32 %v2234_v30, 0.0  ;;  %2398 = vmatpush.bf16.msrb.mxu1 %v4136_v8 }
 0x2bf   :  { %v3175_v21 = vmul.f32 %v5472_v6, %v3032_v27 }
 0x2c0   :  { %v2146_v37 = vpop.f32.mrf.mxu2  ;;  %v2235_v47 = vpop.f32.mrf.mxu3 }
 0x2c1   :  { %v2147_v19 = vadd.f32 %v2146_v37, %v2058_v10  ;;  %v1971_v13 = vpop.f32.mrf.mxu0  ;;  %v5508_v53 = vadd.f32 %v3175_v21, %v3174_v61  ;;  %v2060_v39 = vpop.f32.mrf.mxu1  ;;  %v3178_v61 = vmul.f32 %v5470_v38, %v3035_v34  ;;  %v3039_v37 = vmax.f32 %v5329_v25, 0.0 }
 0x2c2   :  { %v1972_v52 = vadd.f32 %v1971_v13, %v5452_v12 }
 0x2c3   :  { %v2236_v60 = vadd.f32 %v2235_v47, %v2147_v19  ;;  %2010 = vmatmul.bf16.gmra.mxu0 %v5193_v45  ;;  %v3182_v5 = vmul.f32 %v5470_v38, %v3039_v37 }
 0x2c4   :  { %v2061_v30 = vadd.f32 %v2060_v39, %v1972_v52  ;;  %2099 = vmatmul.bf16.gmra.mxu1 %v5196_v29 }
 0x2c5   :  { %v3036_v20 = vmax.f32 %v2236_v60, 0.0  ;;  %2188 = vmatmul.bf16.gmra.mxu2 %v5202_v22  ;;  %2277 = vmatmul.bf16.gmra.mxu3 %v5206_v4 }
 0x2c7   :  { %v3179_v46 = vmul.f32 %v5472_v6, %v3036_v20 }
 0x2c8   :  { %v2149_v2 = vpop.f32.mrf.mxu2  ;;  %v2238_v11 = vpop.f32.mrf.mxu3 }
 0x2c9   :  { %v2150_v9 = vadd.f32 %v2149_v2, %v2061_v30  ;;  %v1973_v56 = vpop.f32.mrf.mxu0  ;;  %v5518_v10 = vadd.f32 %v3179_v46, %v3178_v61  ;;  %v2062_v21 = vpop.f32.mrf.mxu1  ;;  %v3043_v61 = vmax.f32 %v5332_v32, 0.0  ;;  %v6386_v2 = vld [vmem:[#allocation46_spill] sm:$0xff] }
 0x2ca   :  { %v1974_v27 = vadd.f32 %v1973_v56, %v5452_v12  ;;  %v6388_v56 = vld [vmem:[#allocation48_spill] sm:$0xff] }
 0x2cb   :  { %v2239_v19 = vadd.f32 %v2238_v11, %v2150_v9  ;;  %v6387_v11 = vld [vmem:[#allocation47_spill] sm:$0xff] }
 0x2cc   :  { %v2063_v47 = vadd.f32 %v2062_v21, %v1974_v27  ;;  %v6389_v27 = vld [vmem:[#allocation49_spill] sm:$0xff]  ;;  %v3186_v21 = vmul.f32 %v5470_v38, %v3043_v61 }
 0x2cd   :  { %v3040_v13 = vmax.f32 %v2239_v19, 0.0  ;;  %v4247_v19 = vld [vmem:[#allocation3 + $0x208] sm:$0xf] }
 0x2cf   :  { %v3183_v16 = vmul.f32 %v5472_v6, %v3040_v13  ;;  %v3991_v13 = vld [vmem:[#allocation3 + $0x8] sm:$0xf] }
 0x2d0   :  { %v2151_v52 = vpop.f32.mrf.mxu2  ;;  %v2240_v34 = vpop.f32.mrf.mxu3 }
 0x2d1   :  { %v5524_v39 = vadd.f32 %v3183_v16, %v3182_v5  ;;  %v2152_v8 = vadd.f32 %v2151_v52, %v2063_v47  ;;  %v1976_v60 = vpop.f32.mrf.mxu0  ;;  %v2065_v20 = vpop.f32.mrf.mxu1  ;;  %v4584_v47 = vld [vmem:[#allocation3 + $0x214] sm:$0xf0]  ;;  %v4375_v52 = vld [vmem:[#allocation3 + $0x308] sm:$0xf] }
 0x2d2   :  { %v1977_v30 = vadd.f32 %v1976_v60, %v5452_v12  ;;  %v4248_v32 = vor.u32 %v4584_v47, %v4247_v19  ;;  %v4520_v16 = vld [vmem:[#allocation3 + $0x14] sm:$0xf0] }
 0x2d3   :  { %v2241_v46 = vadd.f32 %v2240_v34, %v2152_v8  ;;  %2015 = vmatmul.bf16.gmra.mxu0 %v6386_v2  ;;  %v4616_v8 = vld [vmem:[#allocation3 + $0x314] sm:$0xf0] }
 0x2d4   :  { %v2066_v25 = vadd.f32 %v2065_v20, %v1977_v30  ;;  %2104 = vmatmul.bf16.gmra.mxu1 %v6387_v11  ;;  %v3992_v20 = vor.u32 %v4520_v16, %v3991_v13  ;;  %2488 = vmatpush.bf16.msrb.mxu2 %v4248_v32 }
 0x2d5   :  { %v3044_v9 = vmax.f32 %v2241_v46, 0.0  ;;  %2193 = vmatmul.bf16.gmra.mxu2 %v6388_v56  ;;  %2282 = vmatmul.bf16.gmra.mxu3 %v6389_v27  ;;  %v4376_v46 = vor.u32 %v4616_v8, %v4375_v52  ;;  %v4119_v52 = vld [vmem:[#allocation3 + $0x108] sm:$0xf]  ;;  %v4552_v8 = vld [vmem:[#allocation3 + $0x114] sm:$0xf0] }
 0x2d6   :  { %2310 = vmatpush.bf16.msrb.mxu0 %v3992_v20 }
 0x2d7   :  { %v3187_v37 = vmul.f32 %v5472_v6, %v3044_v9  ;;  %v3047_v9 = vmax.f32 %v5339_v1, 0.0  ;;  %2577 = vmatpush.bf16.msrb.mxu3 %v4376_v46 }
 0x2d8   :  { %v2154_v5 = vpop.f32.mrf.mxu2  ;;  %v2243_v60 = vpop.f32.mrf.mxu3 }
 0x2d9   :  { %v2155_v34 = vadd.f32 %v2154_v5, %v2066_v25  ;;  %v1978_v30 = vpop.f32.mrf.mxu0  ;;  %v5534_v56 = vadd.f32 %v3187_v37, %v3186_v21  ;;  %v2067_v61 = vpop.f32.mrf.mxu1  ;;  %v3190_v2 = vmul.f32 %v5470_v38, %v3047_v9 }
 0x2da   :  { %v1979_v27 = vadd.f32 %v1978_v30, %v5452_v12 }
 0x2db   :  { %v2244_v11 = vadd.f32 %v2243_v60, %v2155_v34  ;;  %v4120_v34 = vor.u32 %v4552_v8, %v4119_v52  ;;  %v3051_v60 = vmax.f32 %v5342_v31, 0.0 }
 0x2dc   :  { %v2068_v19 = vadd.f32 %v2067_v61, %v1979_v27 }
 0x2dd   :  { %v3048_v47 = vmax.f32 %v2244_v11, 0.0  ;;  %2399 = vmatpush.bf16.msrb.mxu1 %v4120_v34 }
 0x2df   :  { %v3191_v25 = vmul.f32 %v5472_v6, %v3048_v47 }
 0x2e0   :  { %v2156_v5 = vpop.f32.mrf.mxu2  ;;  %v2245_v37 = vpop.f32.mrf.mxu3 }
 0x2e1   :  { %v5540_v13 = vadd.f32 %v3191_v25, %v3190_v2  ;;  %v2157_v21 = vadd.f32 %v2156_v5, %v2068_v19  ;;  %v1981_v16 = vpop.f32.mrf.mxu0  ;;  %v2070_v1 = vpop.f32.mrf.mxu1  ;;  %v3194_v2 = vmul.f32 %v5470_v38, %v3051_v60  ;;  %v3055_v5 = vmax.f32 %v5349_v17, 0.0 }
 0x2e2   :  { %v1982_v32 = vadd.f32 %v1981_v16, %v5452_v12 }
 0x2e3   :  { %v2246_v27 = vadd.f32 %v2245_v37, %v2157_v21  ;;  %2020 = vmatmul.bf16.gmra.mxu0 %v5233_v14  ;;  %v3198_v52 = vmul.f32 %v5470_v38, %v3055_v5 }
 0x2e4   :  { %v2071_v11 = vadd.f32 %v2070_v1, %v1982_v32  ;;  %2109 = vmatmul.bf16.gmra.mxu1 %v5236_v48 }
 0x2e5   :  { %v3052_v30 = vmax.f32 %v2246_v27, 0.0  ;;  %2198 = vmatmul.bf16.gmra.mxu2 %v5242_v42  ;;  %2287 = vmatmul.bf16.gmra.mxu3 %v5246_v57 }
 0x2e7   :  { %v3195_v20 = vmul.f32 %v5472_v6, %v3052_v30 }
 0x2e8   :  { %v2159_v46 = vpop.f32.mrf.mxu2  ;;  %v2248_v9 = vpop.f32.mrf.mxu3 }
 0x2e9   :  { %v2160_v61 = vadd.f32 %v2159_v46, %v2071_v11  ;;  %v1983_v31 = vpop.f32.mrf.mxu0  ;;  %v5550_v19 = vadd.f32 %v3195_v20, %v3194_v2  ;;  %v2072_v25 = vpop.f32.mrf.mxu1  ;;  %v3059_v2 = vmax.f32 %v5352_v35, 0.0  ;;  %v6390_v46 = vld [vmem:[#allocation50_spill] sm:$0xff] }
 0x2ea   :  { %v1984_v47 = vadd.f32 %v1983_v31, %v5452_v12  ;;  %v6392_v31 = vld [vmem:[#allocation52_spill] sm:$0xff] }
 0x2eb   :  { %v2249_v21 = vadd.f32 %v2248_v9, %v2160_v61  ;;  %v6391_v9 = vld [vmem:[#allocation51_spill] sm:$0xff] }
 0x2ec   :  { %v2073_v37 = vadd.f32 %v2072_v25, %v1984_v47  ;;  %v6393_v47 = vld [vmem:[#allocation53_spill] sm:$0xff]  ;;  %v3202_v25 = vmul.f32 %v5470_v38, %v3059_v2 }
 0x2ed   :  { %v3056_v16 = vmax.f32 %v2249_v21, 0.0  ;;  %v4610_v21 = vld [vmem:[#allocation3 + $0x2ec] sm:$0xf] }
 0x2ef   :  { %v3199_v8 = vmul.f32 %v5472_v6, %v3056_v16  ;;  %v4546_v16 = vld [vmem:[#allocation3 + $0xec] sm:$0xf] }
 0x2f0   :  { %v2161_v32 = vpop.f32.mrf.mxu2  ;;  %v2250_v60 = vpop.f32.mrf.mxu3 }
 0x2f1   :  { %v5556_v1 = vadd.f32 %v3199_v8, %v3198_v52  ;;  %v2162_v34 = vadd.f32 %v2161_v32, %v2073_v37  ;;  %v1986_v27 = vpop.f32.mrf.mxu0  ;;  %v2075_v30 = vpop.f32.mrf.mxu1  ;;  %v4361_v37 = vld [vmem:[#allocation3 + $0x2f8] sm:$0xf0]  ;;  %v4642_v32 = vld [vmem:[#allocation3 + $0x3ec] sm:$0xf] }
 0x2f2   :  { %v1987_v11 = vadd.f32 %v1986_v27, %v5452_v12  ;;  %v4364_v35 = vor.u32 %v4610_v21, %v4361_v37  ;;  %v4105_v8 = vld [vmem:[#allocation3 + $0xf8] sm:$0xf0] }
 0x2f3   :  { %v2251_v20 = vadd.f32 %v2250_v60, %v2162_v34  ;;  %2025 = vmatmul.bf16.gmra.mxu0 %v6390_v46  ;;  %v4489_v34 = vld [vmem:[#allocation3 + $0x3f8] sm:$0xf0] }
 0x2f4   :  { %v2076_v17 = vadd.f32 %v2075_v30, %v1987_v11  ;;  %2114 = vmatmul.bf16.gmra.mxu1 %v6391_v9  ;;  %v4108_v30 = vor.u32 %v4546_v16, %v4105_v8  ;;  %2837 = vmatpush.bf16.msra.mxu2 %v4364_v35 }
 0x2f5   :  { %v3060_v61 = vmax.f32 %v2251_v20, 0.0  ;;  %2203 = vmatmul.bf16.gmra.mxu2 %v6392_v31  ;;  %2292 = vmatmul.bf16.gmra.mxu3 %v6393_v47  ;;  %v4492_v20 = vor.u32 %v4642_v32, %v4489_v34  ;;  %v4578_v32 = vld [vmem:[#allocation3 + $0x1ec] sm:$0xf]  ;;  %v4233_v34 = vld [vmem:[#allocation3 + $0x1f8] sm:$0xf0] }
 0x2f6   :  { %2659 = vmatpush.bf16.msra.mxu0 %v4108_v30 }
 0x2f7   :  { %v3203_v5 = vmul.f32 %v5472_v6, %v3060_v61  ;;  %v3063_v61 = vmax.f32 %v5359_v0, 0.0  ;;  %2926 = vmatpush.bf16.msra.mxu3 %v4492_v20 }
 0x2f8   :  { %v2164_v52 = vpop.f32.mrf.mxu2  ;;  %v2253_v27 = vpop.f32.mrf.mxu3 }
 0x2f9   :  { %v2165_v60 = vadd.f32 %v2164_v52, %v2076_v17  ;;  %v1988_v11 = vpop.f32.mrf.mxu0  ;;  %v5566_v31 = vadd.f32 %v3203_v5, %v3202_v25  ;;  %v2077_v2 = vpop.f32.mrf.mxu1  ;;  %v3206_v46 = vmul.f32 %v5470_v38, %v3063_v61 }
 0x2fa   :  { %v1989_v47 = vadd.f32 %v1988_v11, %v5452_v12 }
 0x2fb   :  { %v2254_v9 = vadd.f32 %v2253_v27, %v2165_v60  ;;  %v4236_v60 = vor.u32 %v4578_v32, %v4233_v34  ;;  %v3067_v27 = vmax.f32 %v5362_v59, 0.0 }
 0x2fc   :  { %v2078_v21 = vadd.f32 %v2077_v2, %v1989_v47 }
 0x2fd   :  { %v3064_v37 = vmax.f32 %v2254_v9, 0.0  ;;  %2748 = vmatpush.bf16.msra.mxu1 %v4236_v60 }
 0x2ff   :  { %v3207_v17 = vmul.f32 %v5472_v6, %v3064_v37 }
 0x300   :  { %v2166_v52 = vpop.f32.mrf.mxu2  ;;  %v2255_v5 = vpop.f32.mrf.mxu3 }
 0x301   :  { %v5572_v16 = vadd.f32 %v3207_v17, %v3206_v46  ;;  %v2167_v25 = vadd.f32 %v2166_v52, %v2078_v21  ;;  %v1991_v8 = vpop.f32.mrf.mxu0  ;;  %v2080_v0 = vpop.f32.mrf.mxu1  ;;  %v3210_v46 = vmul.f32 %v5470_v38, %v3067_v27  ;;  %v3071_v52 = vmax.f32 %v5369_v54, 0.0 }
 0x302   :  { %v1992_v35 = vadd.f32 %v1991_v8, %v5452_v12 }
 0x303   :  { %v2256_v47 = vadd.f32 %v2255_v5, %v2167_v25  ;;  %2030 = vmatmul.bf16.gmra.mxu0 %v5278_v58  ;;  %v3214_v32 = vmul.f32 %v5470_v38, %v3071_v52 }
 0x304   :  { %v2081_v9 = vadd.f32 %v2080_v0, %v1992_v35  ;;  %2119 = vmatmul.bf16.gmra.mxu1 %v5284_v33 }
 0x305   :  { %v3068_v11 = vmax.f32 %v2256_v47, 0.0  ;;  %2208 = vmatmul.bf16.gmra.mxu2 %v5291_v24  ;;  %2297 = vmatmul.bf16.gmra.mxu3 %v5295_v51 }
 0x307   :  { %v3211_v30 = vmul.f32 %v5472_v6, %v3068_v11 }
 0x308   :  { %v2169_v20 = vpop.f32.mrf.mxu2  ;;  %v2258_v61 = vpop.f32.mrf.mxu3 }
 0x309   :  { %v2170_v2 = vadd.f32 %v2169_v20, %v2081_v9  ;;  %v1993_v59 = vpop.f32.mrf.mxu0  ;;  %v5582_v21 = vadd.f32 %v3211_v30, %v3210_v46  ;;  %v2082_v17 = vpop.f32.mrf.mxu1  ;;  %v3075_v46 = vmax.f32 %v5372_v49, 0.0  ;;  %v6394_v20 = vld [vmem:[#allocation9_spill] sm:$0xff] }
 0x30a   :  { %v1994_v37 = vadd.f32 %v1993_v59, %v5452_v12  ;;  %v6396_v59 = vld [vmem:[#allocation11_spill] sm:$0xff] }
 0x30b   :  { %v2259_v25 = vadd.f32 %v2258_v61, %v2170_v2  ;;  %v6395_v61 = vld [vmem:[#allocation10_spill] sm:$0xff] }
 0x30c   :  { %v2083_v5 = vadd.f32 %v2082_v17, %v1994_v37  ;;  %v6397_v37 = vld [vmem:[#allocation12_spill] sm:$0xff]  ;;  %v3218_v17 = vmul.f32 %v5470_v38, %v3075_v46 }
 0x30d   :  { %v3072_v8 = vmax.f32 %v2259_v25, 0.0  ;;  %v4606_v25 = vld [vmem:[#allocation3 + $0x2cc] sm:$0xf] }
 0x30f   :  { %v3215_v34 = vmul.f32 %v5472_v6, %v3072_v8  ;;  %v4542_v8 = vld [vmem:[#allocation3 + $0xcc] sm:$0xf] }
 0x310   :  { %v2171_v35 = vpop.f32.mrf.mxu2  ;;  %v2260_v27 = vpop.f32.mrf.mxu3 }
 0x311   :  { %v5588_v0 = vadd.f32 %v3215_v34, %v3214_v32  ;;  %v2172_v60 = vadd.f32 %v2171_v35, %v2083_v5  ;;  %v1996_v47 = vpop.f32.mrf.mxu0  ;;  %v2085_v11 = vpop.f32.mrf.mxu1  ;;  %v4345_v5 = vld [vmem:[#allocation3 + $0x2d8] sm:$0xf0]  ;;  %v4638_v35 = vld [vmem:[#allocation3 + $0x3cc] sm:$0xf] }
 0x312   :  { %v1997_v9 = vadd.f32 %v1996_v47, %v5452_v12  ;;  %v4348_v49 = vor.u32 %v4606_v25, %v4345_v5  ;;  %v4089_v34 = vld [vmem:[#allocation3 + $0xd8] sm:$0xf0] }
 0x313   :  { %v2261_v30 = vadd.f32 %v2260_v27, %v2172_v60  ;;  %2311 = vmatmul.bf16.vlgmr.msrb.gmra.mxu0 %v6394_v20  ;;  %v4473_v60 = vld [vmem:[#allocation3 + $0x3d8] sm:$0xf0] }
 0x314   :  { %v2086_v54 = vadd.f32 %v2085_v11, %v1997_v9  ;;  %2400 = vmatmul.bf16.vlgmr.msrb.gmra.mxu1 %v6395_v61  ;;  %v4092_v11 = vor.u32 %v4542_v8, %v4089_v34  ;;  %2838 = vmatpush.bf16.msra.mxu2 %v4348_v49 }
 0x315   :  { %v3076_v2 = vmax.f32 %v2261_v30, 0.0  ;;  %2489 = vmatmul.bf16.vlgmr.msrb.gmra.mxu2 %v6396_v59  ;;  %2578 = vmatmul.bf16.vlgmr.msrb.gmra.mxu3 %v6397_v37  ;;  %v4476_v30 = vor.u32 %v4638_v35, %v4473_v60  ;;  %v4574_v35 = vld [vmem:[#allocation3 + $0x1cc] sm:$0xf]  ;;  %v4217_v60 = vld [vmem:[#allocation3 + $0x1d8] sm:$0xf0] }
 0x316   :  { %2660 = vmatpush.bf16.msra.mxu0 %v4092_v11 }
 0x317   :  { %v3219_v52 = vmul.f32 %v5472_v6, %v3076_v2  ;;  %v3079_v2 = vmax.f32 %v5379_v40, 0.0  ;;  %2927 = vmatpush.bf16.msra.mxu3 %v4476_v30 }
 0x318   :  { %v2174_v32 = vpop.f32.mrf.mxu2  ;;  %v2263_v47 = vpop.f32.mrf.mxu3 }
 0x319   :  { %v2175_v27 = vadd.f32 %v2174_v32, %v2086_v54  ;;  %v1998_v9 = vpop.f32.mrf.mxu0  ;;  %v5598_v59 = vadd.f32 %v3219_v52, %v3218_v17  ;;  %v2087_v46 = vpop.f32.mrf.mxu1  ;;  %v3222_v20 = vmul.f32 %v5470_v38, %v3079_v2 }
 0x31a   :  { %v1999_v37 = vadd.f32 %v1998_v9, %v5452_v12 }
 0x31b   :  { %v2264_v61 = vadd.f32 %v2263_v47, %v2175_v27  ;;  %v4220_v27 = vor.u32 %v4574_v35, %v4217_v60  ;;  %v3083_v47 = vmax.f32 %v5382_v18, 0.0 }
 0x31c   :  { %v2088_v25 = vadd.f32 %v2087_v46, %v1999_v37 }
 0x31d   :  { %v3080_v5 = vmax.f32 %v2264_v61, 0.0  ;;  %2749 = vmatpush.bf16.msra.mxu1 %v4220_v27 }
 0x31f   :  { %v3223_v54 = vmul.f32 %v5472_v6, %v3080_v5 }
 0x320   :  { %v2176_v32 = vpop.f32.mrf.mxu2  ;;  %v2265_v52 = vpop.f32.mrf.mxu3 }
 0x321   :  { %v5604_v8 = vadd.f32 %v3223_v54, %v3222_v20  ;;  %v2177_v17 = vadd.f32 %v2176_v32, %v2088_v25  ;;  %v2001_v34 = vpop.f32.mrf.mxu0  ;;  %v2090_v40 = vpop.f32.mrf.mxu1  ;;  %v3226_v20 = vmul.f32 %v5470_v38, %v3083_v47  ;;  %v6399_v32 = vld [vmem:[#allocation55_spill] sm:$0xff] }
 0x322   :  { %v2002_v49 = vadd.f32 %v2001_v34, %v5452_v12 }
 0x323   :  { %v2266_v37 = vadd.f32 %v2265_v52, %v2177_v17  ;;  %2316 = vmatmul.bf16.gmra.mxu0 %v4975_v26  ;;  %v3087_v17 = vmax.f32 %v6399_v32, 0.0 }
 0x324   :  { %v2091_v61 = vadd.f32 %v2090_v40, %v2002_v49  ;;  %2405 = vmatmul.bf16.gmra.mxu1 %v4978_v28 }
 0x325   :  { %v3084_v9 = vmax.f32 %v2266_v37, 0.0  ;;  %2494 = vmatmul.bf16.gmra.mxu2 %v4987_v43  ;;  %2583 = vmatmul.bf16.gmra.mxu3 %v4991_v44  ;;  %v3230_v60 = vmul.f32 %v5470_v38, %v3087_v17  ;;  %v6405_v17 = vld [vmem:[#allocation17_spill] sm:$0xff] }
 0x327   :  { %v3227_v11 = vmul.f32 %v5472_v6, %v3084_v9 }
 0x328   :  { %v2179_v30 = vpop.f32.mrf.mxu2  ;;  %v2268_v2 = vpop.f32.mrf.mxu3 }
 0x329   :  { %v2180_v46 = vadd.f32 %v2179_v30, %v2091_v61  ;;  %v2003_v18 = vpop.f32.mrf.mxu0  ;;  %v5614_v25 = vadd.f32 %v3227_v11, %v3226_v20  ;;  %v2092_v54 = vpop.f32.mrf.mxu1  ;;  %v6401_v11 = vld [vmem:[#allocation56_spill] sm:$0xff] }
 0x32a   :  { %v2004_v5 = vadd.f32 %v2003_v18, %v5452_v12  ;;  %v3091_v30 = vmax.f32 %v6401_v11, 0.0 }
 0x32b   :  { %6398 = vst [vmem:[#allocation67_spill] sm:$0xff] %v5614_v25  ;;  %v2269_v52 = vadd.f32 %v2268_v2, %v2180_v46  ;;  %v6402_v46 = vld [vmem:[#allocation14_spill] sm:$0xff] }
 0x32c   :  { %v2093_v34 = vadd.f32 %v2092_v54, %v2004_v5  ;;  %v6403_v5 = vld [vmem:[#allocation15_spill] sm:$0xff]  ;;  %v6404_v54 = vld [vmem:[#allocation16_spill] sm:$0xff] }
 0x32d   :  { %v3088_v35 = vmax.f32 %v2269_v52, 0.0  ;;  %v3234_v52 = vmul.f32 %v5470_v38, %v3091_v30 }
 0x32f   :  { %v3231_v49 = vmul.f32 %v5472_v6, %v3088_v35  ;;  %v4602_v35 = vld [vmem:[#allocation3 + $0x2ac] sm:$0xf] }
 0x330   :  { %v2181_v40 = vpop.f32.mrf.mxu2  ;;  %v2270_v37 = vpop.f32.mrf.mxu3 }
 0x331   :  { %v5620_v27 = vadd.f32 %v3231_v49, %v3230_v60  ;;  %v2182_v47 = vadd.f32 %v2181_v40, %v2093_v34  ;;  %v2006_v61 = vpop.f32.mrf.mxu0  ;;  %v2095_v20 = vpop.f32.mrf.mxu1  ;;  %v4329_v60 = vld [vmem:[#allocation3 + $0x2b8] sm:$0xf0]  ;;  %v4538_v49 = vld [vmem:[#allocation3 + $0xac] sm:$0xf] }
 0x332   :  { %v2007_v9 = vadd.f32 %v2006_v61, %v5452_v12  ;;  %v4332_v61 = vor.u32 %v4602_v35, %v4329_v60 }
 0x333   :  { %6400 = vst [vmem:[#allocation55_spill] sm:$0xff] %v5620_v27  ;;  %v2271_v18 = vadd.f32 %v2270_v37, %v2182_v47  ;;  %2321 = vmatmul.bf16.gmra.mxu0 %v6402_v46  ;;  %v4073_v47 = vld [vmem:[#allocation3 + $0xb8] sm:$0xf0]  ;;  %v4634_v37 = vld [vmem:[#allocation3 + $0x3ac] sm:$0xf] }
 0x334   :  { %v2096_v32 = vadd.f32 %v2095_v20, %v2007_v9  ;;  %2410 = vmatmul.bf16.gmra.mxu1 %v6403_v5  ;;  %v4457_v9 = vld [vmem:[#allocation3 + $0x3b8] sm:$0xf0]  ;;  %v4076_v5 = vor.u32 %v4538_v49, %v4073_v47  ;;  %2839 = vmatpush.bf16.msra.mxu2 %v4332_v61 }
 0x335   :  { %v3092_v2 = vmax.f32 %v2271_v18, 0.0  ;;  %2499 = vmatmul.bf16.gmra.mxu2 %v6404_v54  ;;  %2588 = vmatmul.bf16.gmra.mxu3 %v6405_v17  ;;  %v4460_v46 = vor.u32 %v4634_v37, %v4457_v9  ;;  %v4570_v37 = vld [vmem:[#allocation3 + $0x1ac] sm:$0xf]  ;;  %v4201_v9 = vld [vmem:[#allocation3 + $0x1b8] sm:$0xf0] }
 0x336   :  { %2661 = vmatpush.bf16.msra.mxu0 %v4076_v5  ;;  %v6408_v5 = vld [vmem:[#allocation58_spill] sm:$0xff] }
 0x337   :  { %v3235_v34 = vmul.f32 %v5472_v6, %v3092_v2  ;;  %v6406_v2 = vld [vmem:[#allocation57_spill] sm:$0xff]  ;;  %2928 = vmatpush.bf16.msra.mxu3 %v4460_v46  ;;  %v3099_v46 = vmax.f32 %v6408_v5, 0.0 }
 0x338   :  { %v2184_v40 = vpop.f32.mrf.mxu2  ;;  %v2273_v11 = vpop.f32.mrf.mxu3  ;;  %v3095_v27 = vmax.f32 %v6406_v2, 0.0  ;;  %v6412_v2 = vld [vmem:[#allocation21_spill] sm:$0xff] }
 0x339   :  { %v2185_v20 = vadd.f32 %v2184_v40, %v2096_v32  ;;  %v2008_v18 = vpop.f32.mrf.mxu0  ;;  %v5630_v54 = vadd.f32 %v3235_v34, %v3234_v52  ;;  %v2097_v30 = vpop.f32.mrf.mxu1 }
 0x33a   :  { %v2009_v17 = vadd.f32 %v2008_v18, %v5452_v12  ;;  %v3238_v44 = vmul.f32 %v5470_v38, %v3095_v27 }
 0x33b   :  { %v2274_v25 = vadd.f32 %v2273_v11, %v2185_v20  ;;  %v4204_v20 = vor.u32 %v4570_v37, %v4201_v9  ;;  %v6409_v11 = vld [vmem:[#allocation18_spill] sm:$0xff] }
 0x33c   :  { %v2098_v35 = vadd.f32 %v2097_v30, %v2009_v17  ;;  %v6410_v30 = vld [vmem:[#allocation19_spill] sm:$0xff] }
 0x33d   :  { %v3096_v60 = vmax.f32 %v2274_v25, 0.0  ;;  %2750 = vmatpush.bf16.msra.mxu1 %v4204_v20 }
 0x33f   :  { %v3239_v32 = vmul.f32 %v5472_v6, %v3096_v60 }
 0x340   :  { %v2186_v40 = vpop.f32.mrf.mxu2  ;;  %v2275_v34 = vpop.f32.mrf.mxu3 }
 0x341   :  { %v5636_v49 = vadd.f32 %v3239_v32, %v3238_v44  ;;  %v2187_v52 = vadd.f32 %v2186_v40, %v2098_v35  ;;  %v2011_v47 = vpop.f32.mrf.mxu0  ;;  %v2100_v18 = vpop.f32.mrf.mxu1  ;;  %v6411_v44 = vld [vmem:[#allocation20_spill] sm:$0xff]  ;;  %v3242_v35 = vmul.f32 %v5470_v38, %v3099_v46 }
 0x342   :  { %v2012_v61 = vadd.f32 %v2011_v47, %v5452_v12 }
 0x343   :  { %6407 = vst [vmem:[#allocation56_spill] sm:$0xff] %v5636_v49  ;;  %v2276_v17 = vadd.f32 %v2275_v34, %v2187_v52  ;;  %2326 = vmatmul.bf16.gmra.mxu0 %v6409_v11 }
 0x344   :  { %v2101_v25 = vadd.f32 %v2100_v18, %v2012_v61  ;;  %2415 = vmatmul.bf16.gmra.mxu1 %v6410_v30  ;;  %v6414_v61 = vld [vmem:[#allocation59_spill] sm:$0xff] }
 0x345   :  { %v3100_v27 = vmax.f32 %v2276_v17, 0.0  ;;  %2504 = vmatmul.bf16.gmra.mxu2 %v6411_v44  ;;  %2593 = vmatmul.bf16.gmra.mxu3 %v6412_v2  ;;  %v3103_v18 = vmax.f32 %v6414_v61, 0.0 }
 0x347   :  { %v3243_v60 = vmul.f32 %v5472_v6, %v3100_v27  ;;  %v3246_v2 = vmul.f32 %v5470_v38, %v3103_v18  ;;  %v6420_v18 = vld [vmem:[#allocation25_spill] sm:$0xff] }
 0x348   :  { %v2189_v32 = vpop.f32.mrf.mxu2  ;;  %v2278_v47 = vpop.f32.mrf.mxu3 }
 0x349   :  { %v2190_v40 = vadd.f32 %v2189_v32, %v2101_v25  ;;  %v2013_v37 = vpop.f32.mrf.mxu0  ;;  %v5646_v52 = vadd.f32 %v3243_v60, %v3242_v35  ;;  %v2102_v9 = vpop.f32.mrf.mxu1 }
 0x34a   :  { %v2014_v34 = vadd.f32 %v2013_v37, %v5452_v12  ;;  %v6416_v37 = vld [vmem:[#allocation60_spill] sm:$0xff] }
 0x34b   :  { %6413 = vst [vmem:[#allocation57_spill] sm:$0xff] %v5646_v52  ;;  %v2279_v20 = vadd.f32 %v2278_v47, %v2190_v40  ;;  %v3107_v52 = vmax.f32 %v6416_v37, 0.0  ;;  %v6417_v40 = vld [vmem:[#allocation22_spill] sm:$0xff] }
 0x34c   :  { %v2103_v5 = vadd.f32 %v2102_v9, %v2014_v34  ;;  %v6418_v34 = vld [vmem:[#allocation23_spill] sm:$0xff]  ;;  %v6419_v9 = vld [vmem:[#allocation24_spill] sm:$0xff] }
 0x34d   :  { %v3104_v17 = vmax.f32 %v2279_v20, 0.0  ;;  %v4598_v20 = vld [vmem:[#allocation3 + $0x28c] sm:$0xf] }
 0x34f   :  { %v3247_v46 = vmul.f32 %v5472_v6, %v3104_v17 }
 0x350   :  { %v2191_v44 = vpop.f32.mrf.mxu2  ;;  %v2280_v32 = vpop.f32.mrf.mxu3 }
 0x351   :  { %v5652_v27 = vadd.f32 %v3247_v46, %v3246_v2  ;;  %v2192_v25 = vadd.f32 %v2191_v44, %v2103_v5  ;;  %v2016_v30 = vpop.f32.mrf.mxu0  ;;  %v2105_v60 = vpop.f32.mrf.mxu1  ;;  %v3250_v44 = vmul.f32 %v5470_v38, %v3107_v52  ;;  %v4534_v5 = vld [vmem:[#allocation3 + $0x8c] sm:$0xf] }
 0x352   :  { %v2017_v35 = vadd.f32 %v2016_v30, %v5452_v12  ;;  %v4313_v30 = vld [vmem:[#allocation3 + $0x298] sm:$0xf0] }
 0x353   :  { %6415 = vst [vmem:[#allocation58_spill] sm:$0xff] %v5652_v27  ;;  %v2281_v11 = vadd.f32 %v2280_v32, %v2192_v25  ;;  %2331 = vmatmul.bf16.gmra.mxu0 %v6417_v40  ;;  %v4316_v46 = vor.u32 %v4598_v20, %v4313_v30  ;;  %v4057_v25 = vld [vmem:[#allocation3 + $0x98] sm:$0xf0]  ;;  %v4630_v32 = vld [vmem:[#allocation3 + $0x38c] sm:$0xf] }
 0x354   :  { %v2106_v61 = vadd.f32 %v2105_v60, %v2017_v35  ;;  %2420 = vmatmul.bf16.gmra.mxu1 %v6418_v34  ;;  %v4441_v35 = vld [vmem:[#allocation3 + $0x398] sm:$0xf0]  ;;  %v4060_v34 = vor.u32 %v4534_v5, %v4057_v25 }
 0x355   :  { %v3108_v47 = vmax.f32 %v2281_v11, 0.0  ;;  %2509 = vmatmul.bf16.gmra.mxu2 %v6419_v9  ;;  %2598 = vmatmul.bf16.gmra.mxu3 %v6420_v18  ;;  %v4444_v40 = vor.u32 %v4630_v32, %v4441_v35  ;;  %v4566_v32 = vld [vmem:[#allocation3 + $0x18c] sm:$0xf]  ;;  %v4185_v35 = vld [vmem:[#allocation3 + $0x198] sm:$0xf0] }
 0x356   :  { %2840 = vmatpush.bf16.msra.mxu2 %v4316_v46  ;;  %2662 = vmatpush.bf16.msra.mxu0 %v4060_v34  ;;  %v6422_v34 = vld [vmem:[#allocation61_spill] sm:$0xff] }
 0x357   :  { %v3251_v2 = vmul.f32 %v5472_v6, %v3108_v47  ;;  %v3111_v47 = vmax.f32 %v5419_v50, 0.0  ;;  %2929 = vmatpush.bf16.msra.mxu3 %v4444_v40  ;;  %v3115_v40 = vmax.f32 %v6422_v34, 0.0 }
 0x358   :  { %v2194_v17 = vpop.f32.mrf.mxu2  ;;  %v2283_v11 = vpop.f32.mrf.mxu3 }
 0x359   :  { %v2195_v60 = vadd.f32 %v2194_v17, %v2106_v61  ;;  %v2018_v37 = vpop.f32.mrf.mxu0  ;;  %v5662_v9 = vadd.f32 %v3251_v2, %v3250_v44  ;;  %v2107_v52 = vpop.f32.mrf.mxu1  ;;  %v3254_v49 = vmul.f32 %v5470_v38, %v3111_v47  ;;  %v6426_v47 = vld [vmem:[#allocation29_spill] sm:$0xff] }
 0x35a   :  { %v2019_v18 = vadd.f32 %v2018_v37, %v5452_v12 }
 0x35b   :  { %v2284_v27 = vadd.f32 %v2283_v11, %v2195_v60  ;;  %v4188_v60 = vor.u32 %v4566_v32, %v4185_v35  ;;  %v6423_v11 = vld [vmem:[#allocation26_spill] sm:$0xff] }
 0x35c   :  { %v2108_v20 = vadd.f32 %v2107_v52, %v2019_v18  ;;  %v6424_v52 = vld [vmem:[#allocation27_spill] sm:$0xff] }
 0x35d   :  { %v3112_v30 = vmax.f32 %v2284_v27, 0.0  ;;  %2751 = vmatpush.bf16.msra.mxu1 %v4188_v60 }
 0x35f   :  { %v3255_v61 = vmul.f32 %v5472_v6, %v3112_v30 }
 0x360   :  { %v2196_v17 = vpop.f32.mrf.mxu2  ;;  %v2285_v2 = vpop.f32.mrf.mxu3 }
 0x361   :  { %v5668_v5 = vadd.f32 %v3255_v61, %v3254_v49  ;;  %v2197_v44 = vadd.f32 %v2196_v17, %v2108_v20  ;;  %v2021_v25 = vpop.f32.mrf.mxu0  ;;  %v2110_v50 = vpop.f32.mrf.mxu1  ;;  %v6425_v49 = vld [vmem:[#allocation28_spill] sm:$0xff]  ;;  %v3258_v20 = vmul.f32 %v5470_v38, %v3115_v40 }
 0x362   :  { %v2022_v46 = vadd.f32 %v2021_v25, %v5452_v12 }
 0x363   :  { %6421 = vst [vmem:[#allocation59_spill] sm:$0xff] %v5668_v5  ;;  %v2286_v18 = vadd.f32 %v2285_v2, %v2197_v44  ;;  %2336 = vmatmul.bf16.gmra.mxu0 %v6423_v11 }
 0x364   :  { %v2111_v27 = vadd.f32 %v2110_v50, %v2022_v46  ;;  %2425 = vmatmul.bf16.gmra.mxu1 %v6424_v52  ;;  %v6428_v46 = vld [vmem:[#allocation62_spill] sm:$0xff] }
 0x365   :  { %v3116_v37 = vmax.f32 %v2286_v18, 0.0  ;;  %2514 = vmatmul.bf16.gmra.mxu2 %v6425_v49  ;;  %2603 = vmatmul.bf16.gmra.mxu3 %v6426_v47  ;;  %v3119_v50 = vmax.f32 %v6428_v46, 0.0 }
 0x367   :  { %v3259_v30 = vmul.f32 %v5472_v6, %v3116_v37  ;;  %v3262_v47 = vmul.f32 %v5470_v38, %v3119_v50  ;;  %v6434_v50 = vld [vmem:[#allocation33_spill] sm:$0xff] }
 0x368   :  { %v2199_v61 = vpop.f32.mrf.mxu2  ;;  %v2288_v25 = vpop.f32.mrf.mxu3 }
 0x369   :  { %v2200_v17 = vadd.f32 %v2199_v61, %v2111_v27  ;;  %v2023_v32 = vpop.f32.mrf.mxu0  ;;  %v5678_v44 = vadd.f32 %v3259_v30, %v3258_v20  ;;  %v2112_v35 = vpop.f32.mrf.mxu1 }
 0x36a   :  { %v2024_v2 = vadd.f32 %v2023_v32, %v5452_v12  ;;  %v6430_v32 = vld [vmem:[#allocation63_spill] sm:$0xff] }
 0x36b   :  { %6427 = vst [vmem:[#allocation60_spill] sm:$0xff] %v5678_v44  ;;  %v2289_v60 = vadd.f32 %v2288_v25, %v2200_v17  ;;  %v3123_v44 = vmax.f32 %v6430_v32, 0.0  ;;  %v6431_v17 = vld [vmem:[#allocation30_spill] sm:$0xff] }
 0x36c   :  { %v2113_v34 = vadd.f32 %v2112_v35, %v2024_v2  ;;  %v6432_v2 = vld [vmem:[#allocation31_spill] sm:$0xff]  ;;  %v6433_v35 = vld [vmem:[#allocation32_spill] sm:$0xff] }
 0x36d   :  { %v3120_v18 = vmax.f32 %v2289_v60, 0.0  ;;  %v4594_v60 = vld [vmem:[#allocation3 + $0x26c] sm:$0xf] }
 0x36f   :  { %v3263_v40 = vmul.f32 %v5472_v6, %v3120_v18 }
 0x370   :  { %v2201_v49 = vpop.f32.mrf.mxu2  ;;  %v2290_v61 = vpop.f32.mrf.mxu3 }
 0x371   :  { %v5684_v37 = vadd.f32 %v3263_v40, %v3262_v47  ;;  %v2202_v27 = vadd.f32 %v2201_v49, %v2113_v34  ;;  %v2026_v52 = vpop.f32.mrf.mxu0  ;;  %v2115_v30 = vpop.f32.mrf.mxu1  ;;  %v3266_v49 = vmul.f32 %v5470_v38, %v3123_v44  ;;  %v4530_v34 = vld [vmem:[#allocation3 + $0x6c] sm:$0xf] }
 0x372   :  { %v2027_v20 = vadd.f32 %v2026_v52, %v5452_v12  ;;  %v4297_v52 = vld [vmem:[#allocation3 + $0x278] sm:$0xf0] }
 0x373   :  { %6429 = vst [vmem:[#allocation61_spill] sm:$0xff] %v5684_v37  ;;  %v2291_v11 = vadd.f32 %v2290_v61, %v2202_v27  ;;  %2341 = vmatmul.bf16.gmra.mxu0 %v6431_v17  ;;  %v4300_v40 = vor.u32 %v4594_v60, %v4297_v52  ;;  %v4041_v27 = vld [vmem:[#allocation3 + $0x78] sm:$0xf0]  ;;  %v4626_v61 = vld [vmem:[#allocation3 + $0x36c] sm:$0xf] }
 0x374   :  { %v2116_v46 = vadd.f32 %v2115_v30, %v2027_v20  ;;  %2430 = vmatmul.bf16.gmra.mxu1 %v6432_v2  ;;  %v4425_v20 = vld [vmem:[#allocation3 + $0x378] sm:$0xf0]  ;;  %v4044_v2 = vor.u32 %v4530_v34, %v4041_v27 }
 0x375   :  { %v3124_v25 = vmax.f32 %v2291_v11, 0.0  ;;  %2519 = vmatmul.bf16.gmra.mxu2 %v6433_v35  ;;  %2608 = vmatmul.bf16.gmra.mxu3 %v6434_v50  ;;  %v4428_v17 = vor.u32 %v4626_v61, %v4425_v20  ;;  %v4169_v34 = vld [vmem:[#allocation3 + $0x178] sm:$0xf0] }
 0x376   :  { %2841 = vmatpush.bf16.msra.mxu2 %v4300_v40  ;;  %2663 = vmatpush.bf16.msra.mxu0 %v4044_v2 }
 0x377   :  { %v3267_v47 = vmul.f32 %v5472_v6, %v3124_v25  ;;  %v3127_v25 = vmax.f32 %v5439_v15, 0.0  ;;  %2930 = vmatpush.bf16.msra.mxu3 %v4428_v17  ;;  %v3131_v17 = vmax.f32 %v5442_v55, 0.0 }
 0x378   :  { %v2204_v18 = vpop.f32.mrf.mxu2  ;;  %v2293_v11 = vpop.f32.mrf.mxu3 }
 0x379   :  { %v2205_v30 = vadd.f32 %v2204_v18, %v2116_v46  ;;  %v2028_v32 = vpop.f32.mrf.mxu0  ;;  %v5694_v35 = vadd.f32 %v3267_v47, %v3266_v49  ;;  %v2117_v44 = vpop.f32.mrf.mxu1  ;;  %v3270_v5 = vmul.f32 %v5470_v38, %v3127_v25  ;;  %v4562_v18 = vld [vmem:[#allocation3 + $0x16c] sm:$0xf]  ;;  %v3274_v25 = vmul.f32 %v5470_v38, %v3131_v17  ;;  %v5717_v17 = vld [vmem:[%s6202_s4] sm:$0xf]  ;;  %s4777_s4 = smov [#allocation6]  }
 0x37a   :  { %v2029_v50 = vadd.f32 %v2028_v32, %v5452_v12  ;;  %v4172_v49 = vor.u32 %v4562_v18, %v4169_v34  ;;  %v6436_v32 = vld [vmem:[#allocation35_spill] sm:$0xff]  ;;  %6441 = vst [vmem:[#allocation63_spill] sm:$0xff] %v5717_v17  ;;  %s3806_s25 = sshll.u32 %s4777_s4, 4  ;;  %s3807_s25 = int_to_ptr.vmem [resolvable:$true] %s3806_s25 }
 0x37b   :  { %v2294_v37 = vadd.f32 %v2293_v11, %v2205_v30 }
 0x37c   :  { %v2118_v60 = vadd.f32 %v2117_v44, %v2029_v50  ;;  %2752 = vmatpush.bf16.msra.mxu1 %v4172_v49  ;;  %v6435_v50 = vld [vmem:[#allocation34_spill] sm:$0xff]  ;;  %v6437_v44 = vld [vmem:[#allocation36_spill] sm:$0xff] }
 0x37d   :  { %v3128_v52 = vmax.f32 %v2294_v37, 0.0 }
 0x37f   :  { %v3271_v46 = vmul.f32 %v5472_v6, %v3128_v52 }
 0x380   :  { %v2206_v27 = vpop.f32.mrf.mxu2  ;;  %v2295_v20 = vpop.f32.mrf.mxu3 }
 0x381   :  { %v5700_v47 = vadd.f32 %v3271_v46, %v3270_v5  ;;  %v2207_v61 = vadd.f32 %v2206_v27, %v2118_v60  ;;  %v2031_v40 = vpop.f32.mrf.mxu0  ;;  %v2120_v30 = vpop.f32.mrf.mxu1  ;;  %v6438_v5 = vld [vmem:[#allocation37_spill] sm:$0xff] }
 0x382   :  { %v2032_v15 = vadd.f32 %v2031_v40, %v5452_v12 }
 0x383   :  { %v2296_v37 = vadd.f32 %v2295_v20, %v2207_v61  ;;  %2346 = vmatmul.bf16.gmra.mxu0 %v6435_v50  ;;  %v6440_v61 = vld [vmem:[#allocation64_spill] sm:$0xff] }
 0x384   :  { %v2121_v2 = vadd.f32 %v2120_v30, %v2032_v15  ;;  %2435 = vmatmul.bf16.gmra.mxu1 %v6436_v32  ;;  %v3135_v20 = vmax.f32 %v6440_v61, 0.0 }
 0x385   :  { %v3132_v11 = vmax.f32 %v2296_v37, 0.0  ;;  %2524 = vmatmul.bf16.gmra.mxu2 %v6437_v44  ;;  %2613 = vmatmul.bf16.gmra.mxu3 %v6438_v5  ;;  %v5720_v37 = vperm.slane %v5717_v17, 2  ;;  %v6445_v5 = vld [vmem:[#allocation39_spill] sm:$0xff] }
 0x387   :  { %v3275_v60 = vmul.f32 %v5472_v6, %v3132_v11 }
 0x388   :  { %v2209_v52 = vpop.f32.mrf.mxu2  ;;  %v2298_v18 = vpop.f32.mrf.mxu3 }
 0x389   :  { %v2210_v46 = vadd.f32 %v2209_v52, %v2121_v2  ;;  %v2033_v34 = vpop.f32.mrf.mxu0  ;;  %v5710_v55 = vadd.f32 %v3275_v60, %v3274_v25  ;;  %v2122_v49 = vpop.f32.mrf.mxu1  ;;  %v3278_v2 = vmul.f32 %v5470_v38, %v3135_v20  ;;  %v6446_v20 = vld [vmem:[#allocation40_spill] sm:$0xff] }
 0x38a   :  { %v2034_v27 = vadd.f32 %v2033_v34, %v5452_v12 }
 0x38b   :  { %6439 = vst [vmem:[#allocation62_spill] sm:$0xff] %v5710_v55  ;;  %v2299_v40 = vadd.f32 %v2298_v18, %v2210_v46  ;;  %v6444_v55 = vld [vmem:[#allocation38_spill] sm:$0xff] }
 0x38c   :  { %v2123_v15 = vadd.f32 %v2122_v49, %v2034_v27  ;;  %v6443_v27 = vld [vmem:[#allocation65_spill] sm:$0xff] }
 0x38d   :  { %v3136_v30 = vmax.f32 %v2299_v40, 0.0  ;;  %v3139_v49 = vmax.f32 %v6443_v27, 0.0  ;;  %v4526_v27 = vld [vmem:[#allocation3 + $0x4c] sm:$0xf] }
 0x38f   :  { %v3279_v11 = vmul.f32 %v5472_v6, %v3136_v30  ;;  %v6447_v30 = vld [vmem:[#allocation41_spill] sm:$0xff] }
 0x390   :  { %v2211_v25 = vpop.f32.mrf.mxu2  ;;  %v2300_v52 = vpop.f32.mrf.mxu3 }
 0x391   :  { %v5724_v12 = vadd.f32 %v3279_v11, %v3278_v2  ;;  %v2212_v60 = vadd.f32 %v2211_v25, %v2123_v15  ;;  %v2312_v46 = vpop.f32.mrf.mxu0  ;;  %v2401_v34 = vpop.f32.mrf.mxu1  ;;  %v6448_v2 = vld [vmem:[#allocation54_spill] sm:$0xff]  ;;  %v3282_v11 = vmul.f32 %v5470_v38, %v3139_v49 }
 0x392   :  { %v2313_v18 = vadd.f32 %v2312_v46, %v5720_v37  ;;  %v3148_v15 = vperm.slane %v6448_v2, 4  ;;  %v4590_v46 = vld [vmem:[#allocation3 + $0x24c] sm:$0xf] }
 0x393   :  { %6442 = vst [vmem:[#allocation64_spill] sm:$0xff] %v5724_v12  ;;  %v2301_v61 = vadd.f32 %v2300_v52, %v2212_v60  ;;  %2351 = vmatmul.bf16.gmra.mxu0 %v6444_v55  ;;  %v4281_v12 = vld [vmem:[#allocation3 + $0x258] sm:$0xf0] }
 0x394   :  { %v2402_v40 = vadd.f32 %v2401_v34, %v2313_v18  ;;  %2440 = vmatmul.bf16.gmra.mxu1 %v6445_v5  ;;  %v4284_v52 = vor.u32 %v4590_v46, %v4281_v12  ;;  %v4025_v18 = vld [vmem:[#allocation3 + $0x58] sm:$0xf0]  ;;  %v4622_v34 = vld [vmem:[#allocation3 + $0x34c] sm:$0xf] }
 0x395   :  { %v3140_v17 = vmax.f32 %v2301_v61, 0.0  ;;  %2529 = vmatmul.bf16.gmra.mxu2 %v6446_v20  ;;  %2618 = vmatmul.bf16.gmra.mxu3 %v6447_v30  ;;  %v4409_v61 = vld [vmem:[#allocation3 + $0x358] sm:$0xf0]  ;;  %v4028_v20 = vor.u32 %v4526_v27, %v4025_v18 }
 0x396   :  { %v4412_v32 = vor.u32 %v4622_v34, %v4409_v61  ;;  %2842 = vmatpush.bf16.msra.mxu2 %v4284_v52 }
 0x397   :  { %v3283_v25 = vmul.f32 %v5472_v6, %v3140_v17  ;;  %v5738_v17 = vperm.slane %v3148_v15, 0  ;;  %2664 = vmatpush.bf16.msra.mxu0 %v4028_v20 }
 0x398   :  { %v2490_v60 = vpop.f32.mrf.mxu2  ;;  %v2579_v5 = vpop.f32.mrf.mxu3  ;;  %2931 = vmatpush.bf16.msra.mxu3 %v4412_v32 }
 0x399   :  { %v2491_v55 = vadd.f32 %v2490_v60, %v2402_v40  ;;  %v2314_v44 = vpop.f32.mrf.mxu0  ;;  %v5735_v30 = vadd.f32 %v3283_v25, %v3282_v11  ;;  %v2403_v38 = vpop.f32.mrf.mxu1  ;;  %v4558_v40 = vld [vmem:[#allocation3 + $0x14c] sm:$0xf]  ;;  %v4153_v60 = vld [vmem:[#allocation3 + $0x158] sm:$0xf0] }
 0x39a   :  { %v2315_v2 = vadd.f32 %v2314_v44, %v5720_v37  ;;  %v4156_v27 = vor.u32 %v4558_v40, %v4153_v60 }
 0x39b   :  { %v2580_v6 = vadd.f32 %v2579_v5, %v2491_v55 }
 0x39c   :  { %v2404_v12 = vadd.f32 %v2403_v38, %v2315_v2  ;;  %2753 = vmatpush.bf16.msra.mxu1 %v4156_v27 }
 0x39d   :  { %v3017_v49 = vmax.f32 %v2580_v6, 0.0 }
 0x39f   :  { %v3160_v46 = vmul.f32 %v5738_v17, %v3017_v49 }
 0x3a0   :  { %v2492_v50 = vpop.f32.mrf.mxu2  ;;  %v2581_v11 = vpop.f32.mrf.mxu3 }
 0x3a1   :  { %v2493_v18 = vadd.f32 %v2492_v50, %v2404_v12  ;;  %v2317_v25 = vpop.f32.mrf.mxu0  ;;  %v5742_v44 = vadd.f32 %v5476_v62, %v3160_v46  ;;  %v2406_v55 = vpop.f32.mrf.mxu1 }
 0x3a2   :  { %v2318_v5 = vadd.f32 %v2317_v25, %v5720_v37  ;;  %v6449_v25 = vld [vmem:[#allocation66_spill] sm:$0xff] }
 0x3a3   :  { %v2582_v20 = vadd.f32 %v2581_v11, %v2493_v18  ;;  %2356 = vmatmul.bf16.gmra.mxu0 %v5153_v23 }
 0x3a4   :  { %v2407_v32 = vadd.f32 %v2406_v55, %v2318_v5  ;;  %2445 = vmatmul.bf16.gmra.mxu1 %v5156_v36 }
 0x3a5   :  { %v3021_v2 = vmax.f32 %v2582_v20, 0.0  ;;  %2534 = vmatmul.bf16.gmra.mxu2 %v5162_v7  ;;  %2623 = vmatmul.bf16.gmra.mxu3 %v5166_v3 }
 0x3a7   :  { %v3164_v50 = vmul.f32 %v5738_v17, %v3021_v2  ;;  %v6451_v2 = vld [vmem:[#allocation42_spill] sm:$0xff] }
 0x3a8   :  { %v2495_v15 = vpop.f32.mrf.mxu2  ;;  %v2584_v52 = vpop.f32.mrf.mxu3 }
 0x3a9   :  { %v2496_v62 = vadd.f32 %v2495_v15, %v2407_v32  ;;  %v2319_v34 = vpop.f32.mrf.mxu0  ;;  %v5751_v61 = vadd.f32 %v5486_v41, %v3164_v50  ;;  %v2408_v6 = vpop.f32.mrf.mxu1  ;;  %v6452_v15 = vld [vmem:[#allocation43_spill] sm:$0xff] }
 0x3aa   :  { %v2320_v38 = vadd.f32 %v2319_v34, %v5720_v37 }
 0x3ab   :  { %v2585_v12 = vadd.f32 %v2584_v52, %v2496_v62  ;;  %v6453_v62 = vld [vmem:[#allocation44_spill] sm:$0xff]  ;;  %v6454_v52 = vld [vmem:[#allocation45_spill] sm:$0xff] }
 0x3ac   :  { %v2409_v49 = vadd.f32 %v2408_v6, %v2320_v38  ;;  %v4586_v38 = vld [vmem:[#allocation3 + $0x22c] sm:$0xf]  ;;  %v4265_v6 = vld [vmem:[#allocation3 + $0x238] sm:$0xf0] }
 0x3ad   :  { %v3025_v46 = vmax.f32 %v2585_v12, 0.0  ;;  %v4522_v12 = vld [vmem:[#allocation3 + $0x2c] sm:$0xf] }
 0x3af   :  { %v3168_v40 = vmul.f32 %v5738_v17, %v3025_v46  ;;  %v4268_v46 = vor.u32 %v4586_v38, %v4265_v6 }
 0x3b0   :  { %v2497_v60 = vpop.f32.mrf.mxu2  ;;  %v2586_v18 = vpop.f32.mrf.mxu3 }
 0x3b1   :  { %v2498_v27 = vadd.f32 %v2497_v60, %v2409_v49  ;;  %v2322_v11 = vpop.f32.mrf.mxu0  ;;  %v5756_v5 = vadd.f32 %v6449_v25, %v3168_v40  ;;  %v2411_v20 = vpop.f32.mrf.mxu1  ;;  %v4009_v40 = vld [vmem:[#allocation3 + $0x38] sm:$0xf0]  ;;  %v4618_v60 = vld [vmem:[#allocation3 + $0x32c] sm:$0xf]  ;;  %2843 = vmatpush.bf16.msra.mxu2 %v4268_v46 }
 0x3b2   :  { %v2323_v55 = vadd.f32 %v2322_v11, %v5720_v37 }
 0x3b3   :  { %6450 = vst [vmem:[#allocation65_spill] sm:$0xff] %v5756_v5  ;;  %v2587_v41 = vadd.f32 %v2586_v18, %v2498_v27  ;;  %2361 = vmatmul.bf16.gmra.mxu0 %v6451_v2  ;;  %v4393_v27 = vld [vmem:[#allocation3 + $0x338] sm:$0xf0]  ;;  %v4554_v2 = vld [vmem:[#allocation3 + $0x12c] sm:$0xf] }
 0x3b4   :  { %v2412_v32 = vadd.f32 %v2411_v20, %v2323_v55  ;;  %2450 = vmatmul.bf16.gmra.mxu1 %v6452_v15  ;;  %v4012_v55 = vor.u32 %v4522_v12, %v4009_v40  ;;  %v4396_v20 = vor.u32 %v4618_v60, %v4393_v27 }
 0x3b5   :  { %v3029_v50 = vmax.f32 %v2587_v41, 0.0  ;;  %2539 = vmatmul.bf16.gmra.mxu2 %v6453_v62  ;;  %2628 = vmatmul.bf16.gmra.mxu3 %v6454_v52 }
 0x3b6   :  { %2665 = vmatpush.bf16.msra.mxu0 %v4012_v55  ;;  %2932 = vmatpush.bf16.msra.mxu3 %v4396_v20 }
 0x3b7   :  { %v3172_v34 = vmul.f32 %v5738_v17, %v3029_v50 }
 0x3b8   :  { %v2500_v49 = vpop.f32.mrf.mxu2  ;;  %v2589_v11 = vpop.f32.mrf.mxu3 }
 0x3b9   :  { %v2501_v18 = vadd.f32 %v2500_v49, %v2412_v32  ;;  %v2324_v25 = vpop.f32.mrf.mxu0  ;;  %v5765_v41 = vadd.f32 %v5502_v63, %v3172_v34  ;;  %v2413_v62 = vpop.f32.mrf.mxu1  ;;  %v4137_v32 = vld [vmem:[#allocation3 + $0x138] sm:$0xf0] }
 0x3ba   :  { %v2325_v52 = vadd.f32 %v2324_v25, %v5720_v37  ;;  %v4140_v5 = vor.u32 %v4554_v2, %v4137_v32 }
 0x3bb   :  { %v2590_v50 = vadd.f32 %v2589_v11, %v2501_v18 }
 0x3bc   :  { %v2414_v15 = vadd.f32 %v2413_v62, %v2325_v52  ;;  %2754 = vmatpush.bf16.msra.mxu1 %v4140_v5 }
 0x3bd   :  { %v3033_v38 = vmax.f32 %v2590_v50, 0.0 }
 0x3bf   :  { %v3176_v6 = vmul.f32 %v5738_v17, %v3033_v38 }
 0x3c0   :  { %v2502_v49 = vpop.f32.mrf.mxu2  ;;  %v2591_v40 = vpop.f32.mrf.mxu3 }
 0x3c1   :  { %v2503_v12 = vadd.f32 %v2502_v49, %v2414_v15  ;;  %v2327_v60 = vpop.f32.mrf.mxu0  ;;  %v5770_v63 = vadd.f32 %v5508_v53, %v3176_v6  ;;  %v2416_v46 = vpop.f32.mrf.mxu1 }
 0x3c2   :  { %v2328_v34 = vadd.f32 %v2327_v60, %v5720_v37 }
 0x3c3   :  { %v2592_v27 = vadd.f32 %v2591_v40, %v2503_v12  ;;  %2366 = vmatmul.bf16.gmra.mxu0 %v5193_v45 }
 0x3c4   :  { %v2417_v18 = vadd.f32 %v2416_v46, %v2328_v34  ;;  %2455 = vmatmul.bf16.gmra.mxu1 %v5196_v29 }
 0x3c5   :  { %v3037_v62 = vmax.f32 %v2592_v27, 0.0  ;;  %2544 = vmatmul.bf16.gmra.mxu2 %v5202_v22  ;;  %2633 = vmatmul.bf16.gmra.mxu3 %v5206_v4 }
 0x3c7   :  { %v3180_v2 = vmul.f32 %v5738_v17, %v3037_v62 }
 0x3c8   :  { %v2505_v15 = vpop.f32.mrf.mxu2  ;;  %v2594_v52 = vpop.f32.mrf.mxu3 }
 0x3c9   :  { %v2506_v53 = vadd.f32 %v2505_v15, %v2417_v18  ;;  %v2329_v11 = vpop.f32.mrf.mxu0  ;;  %v5779_v25 = vadd.f32 %v5518_v10, %v3180_v2  ;;  %v2418_v55 = vpop.f32.mrf.mxu1  ;;  %v6455_v18 = vld [vmem:[#allocation46_spill] sm:$0xff]  ;;  %v6456_v2 = vld [vmem:[#allocation47_spill] sm:$0xff]  ;;  %v6457_v15 = vld [vmem:[#allocation48_spill] sm:$0xff] }
 0x3ca   :  { %v2330_v5 = vadd.f32 %v2329_v11, %v5720_v37  ;;  %v4582_v11 = vld [vmem:[#allocation3 + $0x20c] sm:$0xf] }
 0x3cb   :  { %v2595_v20 = vadd.f32 %v2594_v52, %v2506_v53  ;;  %v6458_v53 = vld [vmem:[#allocation49_spill] sm:$0xff] }
 0x3cc   :  { %v2419_v50 = vadd.f32 %v2418_v55, %v2330_v5  ;;  %v4249_v5 = vld [vmem:[#allocation3 + $0x218] sm:$0xf0] }
 0x3cd   :  { %v3041_v38 = vmax.f32 %v2595_v20, 0.0  ;;  %v4252_v20 = vor.u32 %v4582_v11, %v4249_v5 }
 0x3cf   :  { %v3184_v6 = vmul.f32 %v5738_v17, %v3041_v38  ;;  %v4614_v38 = vld [vmem:[#allocation3 + $0x30c] sm:$0xf]  ;;  %2844 = vmatpush.bf16.msra.mxu2 %v4252_v20 }
 0x3d0   :  { %v2507_v32 = vpop.f32.mrf.mxu2  ;;  %v2596_v12 = vpop.f32.mrf.mxu3 }
 0x3d1   :  { %v2508_v49 = vadd.f32 %v2507_v32, %v2419_v50  ;;  %v2332_v40 = vpop.f32.mrf.mxu0  ;;  %v5784_v60 = vadd.f32 %v5524_v39, %v3184_v6  ;;  %v2421_v46 = vpop.f32.mrf.mxu1  ;;  %v4518_v39 = vld [vmem:[#allocation3 + $0xc] sm:$0xf]  ;;  %v3993_v50 = vld [vmem:[#allocation3 + $0x18] sm:$0xf0] }
 0x3d2   :  { %v2333_v34 = vadd.f32 %v2332_v40, %v5720_v37  ;;  %v4377_v6 = vld [vmem:[#allocation3 + $0x318] sm:$0xf0]  ;;  %v3996_v40 = vor.u32 %v4518_v39, %v3993_v50 }
 0x3d3   :  { %v2597_v10 = vadd.f32 %v2596_v12, %v2508_v49  ;;  %2371 = vmatmul.bf16.gmra.mxu0 %v6455_v18 }
 0x3d4   :  { %v2422_v27 = vadd.f32 %v2421_v46, %v2333_v34  ;;  %2460 = vmatmul.bf16.gmra.mxu1 %v6456_v2  ;;  %v4380_v34 = vor.u32 %v4614_v38, %v4377_v6  ;;  %2666 = vmatpush.bf16.msra.mxu0 %v3996_v40  ;;  %v4550_v2 = vld [vmem:[#allocation3 + $0x10c] sm:$0xf] }
 0x3d5   :  { %v3045_v62 = vmax.f32 %v2597_v10, 0.0  ;;  %2549 = vmatmul.bf16.gmra.mxu2 %v6457_v15  ;;  %2638 = vmatmul.bf16.gmra.mxu3 %v6458_v53 }
 0x3d6   :  { %2933 = vmatpush.bf16.msra.mxu3 %v4380_v34 }
 0x3d7   :  { %v3188_v52 = vmul.f32 %v5738_v17, %v3045_v62 }
 0x3d8   :  { %v2510_v55 = vpop.f32.mrf.mxu2  ;;  %v2599_v49 = vpop.f32.mrf.mxu3 }
 0x3d9   :  { %v2511_v32 = vadd.f32 %v2510_v55, %v2422_v27  ;;  %v2334_v12 = vpop.f32.mrf.mxu0  ;;  %v5793_v46 = vadd.f32 %v5534_v56, %v3188_v52  ;;  %v2423_v53 = vpop.f32.mrf.mxu1  ;;  %v4121_v27 = vld [vmem:[#allocation3 + $0x118] sm:$0xf0] }
 0x3da   :  { %v2335_v10 = vadd.f32 %v2334_v12, %v5720_v37  ;;  %v4124_v18 = vor.u32 %v4550_v2, %v4121_v27 }
 0x3db   :  { %v2600_v62 = vadd.f32 %v2599_v49, %v2511_v32 }
 0x3dc   :  { %v2424_v15 = vadd.f32 %v2423_v53, %v2335_v10  ;;  %2755 = vmatpush.bf16.msra.mxu1 %v4124_v18 }
 0x3dd   :  { %v3049_v11 = vmax.f32 %v2600_v62, 0.0 }
 0x3df   :  { %v3192_v5 = vmul.f32 %v5738_v17, %v3049_v11 }
 0x3e0   :  { %v2512_v55 = vpop.f32.mrf.mxu2  ;;  %v2601_v50 = vpop.f32.mrf.mxu3 }
 0x3e1   :  { %v2513_v39 = vadd.f32 %v2512_v55, %v2424_v15  ;;  %v2337_v38 = vpop.f32.mrf.mxu0  ;;  %v5798_v56 = vadd.f32 %v5540_v13, %v3192_v5  ;;  %v2426_v20 = vpop.f32.mrf.mxu1 }
 0x3e2   :  { %v2338_v52 = vadd.f32 %v2337_v38, %v5720_v37 }
 0x3e3   :  { %v2602_v6 = vadd.f32 %v2601_v50, %v2513_v39  ;;  %2376 = vmatmul.bf16.gmra.mxu0 %v5233_v14 }
 0x3e4   :  { %v2427_v32 = vadd.f32 %v2426_v20, %v2338_v52  ;;  %2465 = vmatmul.bf16.gmra.mxu1 %v5236_v48 }
 0x3e5   :  { %v3053_v53 = vmax.f32 %v2602_v6, 0.0  ;;  %2554 = vmatmul.bf16.gmra.mxu2 %v5242_v42  ;;  %2643 = vmatmul.bf16.gmra.mxu3 %v5246_v57 }
 0x3e7   :  { %v3196_v2 = vmul.f32 %v5738_v17, %v3053_v53 }
 0x3e8   :  { %v2515_v15 = vpop.f32.mrf.mxu2  ;;  %v2604_v49 = vpop.f32.mrf.mxu3 }
 0x3e9   :  { %v2516_v13 = vadd.f32 %v2515_v15, %v2427_v32  ;;  %v2339_v12 = vpop.f32.mrf.mxu0  ;;  %v5807_v40 = vadd.f32 %v5550_v19, %v3196_v2  ;;  %v2428_v34 = vpop.f32.mrf.mxu1  ;;  %v6459_v32 = vld [vmem:[#allocation50_spill] sm:$0xff]  ;;  %v6460_v2 = vld [vmem:[#allocation51_spill] sm:$0xff]  ;;  %v6461_v15 = vld [vmem:[#allocation52_spill] sm:$0xff] }
 0x3ea   :  { %v2340_v18 = vadd.f32 %v2339_v12, %v5720_v37 }
 0x3eb   :  { %v2605_v10 = vadd.f32 %v2604_v49, %v2516_v13  ;;  %v6462_v13 = vld [vmem:[#allocation53_spill] sm:$0xff] }
 0x3ec   :  { %v2429_v62 = vadd.f32 %v2428_v34, %v2340_v18 }
 0x3ed   :  { %v3057_v11 = vmax.f32 %v2605_v10, 0.0 }
 0x3ef   :  { %v3200_v5 = vmul.f32 %v5738_v17, %v3057_v11 }
 0x3f0   :  { %v2517_v27 = vpop.f32.mrf.mxu2  ;;  %v2606_v39 = vpop.f32.mrf.mxu3 }
 0x3f1   :  { %v2518_v55 = vadd.f32 %v2517_v27, %v2429_v62  ;;  %v2342_v50 = vpop.f32.mrf.mxu0  ;;  %v5812_v38 = vadd.f32 %v5556_v1, %v3200_v5  ;;  %v2431_v20 = vpop.f32.mrf.mxu1 }
 0x3f2   :  { %v2343_v52 = vadd.f32 %v2342_v50, %v5720_v37 }
 0x3f3   :  { %v2607_v19 = vadd.f32 %v2606_v39, %v2518_v55  ;;  %2381 = vmatmul.bf16.gmra.mxu0 %v6459_v32 }
 0x3f4   :  { %v2432_v6 = vadd.f32 %v2431_v20, %v2343_v52  ;;  %2470 = vmatmul.bf16.gmra.mxu1 %v6460_v2 }
 0x3f5   :  { %v3061_v53 = vmax.f32 %v2607_v19, 0.0  ;;  %2559 = vmatmul.bf16.gmra.mxu2 %v6461_v15  ;;  %2648 = vmatmul.bf16.gmra.mxu3 %v6462_v13 }
 0x3f7   :  { %v3204_v49 = vmul.f32 %v5738_v17, %v3061_v53 }
 0x3f8   :  { %v2520_v12 = vpop.f32.mrf.mxu2  ;;  %v2609_v1 = vpop.f32.mrf.mxu3 }
 0x3f9   :  { %v2521_v18 = vadd.f32 %v2520_v12, %v2432_v6  ;;  %v2344_v34 = vpop.f32.mrf.mxu0  ;;  %v5821_v10 = vadd.f32 %v5566_v31, %v3204_v49  ;;  %v2433_v11 = vpop.f32.mrf.mxu1 }
 0x3fa   :  { %v2345_v62 = vadd.f32 %v2344_v34, %v5720_v37 }
 0x3fb   :  { %v2610_v5 = vadd.f32 %v2609_v1, %v2521_v18 }
 0x3fc   :  { %v2434_v27 = vadd.f32 %v2433_v11, %v2345_v62 }
 0x3fd   :  { %v3065_v55 = vmax.f32 %v2610_v5, 0.0 }
 0x3ff   :  { %v3208_v39 = vmul.f32 %v5738_v17, %v3065_v55 }
 0x400   :  { %v2522_v50 = vpop.f32.mrf.mxu2  ;;  %v2611_v20 = vpop.f32.mrf.mxu3 }
 0x401   :  { %v2523_v52 = vadd.f32 %v2522_v50, %v2434_v27  ;;  %v2347_v19 = vpop.f32.mrf.mxu0  ;;  %v5826_v53 = vadd.f32 %v5572_v16, %v3208_v39  ;;  %v2436_v12 = vpop.f32.mrf.mxu1 }
 0x402   :  { %v2348_v6 = vadd.f32 %v2347_v19, %v5720_v37 }
 0x403   :  { %v2612_v31 = vadd.f32 %v2611_v20, %v2523_v52  ;;  %2386 = vmatmul.bf16.gmra.mxu0 %v5278_v58 }
 0x404   :  { %v2437_v49 = vadd.f32 %v2436_v12, %v2348_v6  ;;  %2475 = vmatmul.bf16.gmra.mxu1 %v5284_v33 }
 0x405   :  { %v3069_v34 = vmax.f32 %v2612_v31, 0.0  ;;  %2564 = vmatmul.bf16.gmra.mxu2 %v5291_v24  ;;  %2653 = vmatmul.bf16.gmra.mxu3 %v5295_v51 }
 0x407   :  { %v3212_v18 = vmul.f32 %v5738_v17, %v3069_v34 }
 0x408   :  { %v2525_v1 = vpop.f32.mrf.mxu2  ;;  %v2614_v16 = vpop.f32.mrf.mxu3 }
 0x409   :  { %v2526_v62 = vadd.f32 %v2525_v1, %v2437_v49  ;;  %v2349_v11 = vpop.f32.mrf.mxu0  ;;  %v5835_v5 = vadd.f32 %v5582_v21, %v3212_v18  ;;  %v2438_v55 = vpop.f32.mrf.mxu1 }
 0x40a   :  { %v2350_v27 = vadd.f32 %v2349_v11, %v5720_v37 }
 0x40b   :  { %6463 = vst [vmem:[#allocation66_spill] sm:$0xff] %v5835_v5  ;;  %v2615_v39 = vadd.f32 %v2614_v16, %v2526_v62  ;;  %v6464_v5 = vld [vmem:[#allocation9_spill] sm:$0xff]  ;;  %v6465_v62 = vld [vmem:[#allocation10_spill] sm:$0xff]  ;;  %v6466_v16 = vld [vmem:[#allocation11_spill] sm:$0xff] }
 0x40c   :  { %v2439_v50 = vadd.f32 %v2438_v55, %v2350_v27  ;;  %v6467_v27 = vld [vmem:[#allocation12_spill] sm:$0xff] }
 0x40d   :  { %v3073_v52 = vmax.f32 %v2615_v39, 0.0 }
 0x40f   :  { %v3216_v20 = vmul.f32 %v5738_v17, %v3073_v52 }
 0x410   :  { %v2527_v19 = vpop.f32.mrf.mxu2  ;;  %v2616_v12 = vpop.f32.mrf.mxu3 }
 0x411   :  { %v2528_v6 = vadd.f32 %v2527_v19, %v2439_v50  ;;  %v2352_v31 = vpop.f32.mrf.mxu0  ;;  %v5840_v34 = vadd.f32 %v5588_v0, %v3216_v20  ;;  %v2441_v1 = vpop.f32.mrf.mxu1 }
 0x412   :  { %v2353_v49 = vadd.f32 %v2352_v31, %v5720_v37 }
 0x413   :  { %v2617_v21 = vadd.f32 %v2616_v12, %v2528_v6  ;;  %2667 = vmatmul.bf16.vlgmr.msra.gmra.mxu0 %v6464_v5 }
 0x414   :  { %v2442_v18 = vadd.f32 %v2441_v1, %v2353_v49  ;;  %2756 = vmatmul.bf16.vlgmr.msra.gmra.mxu1 %v6465_v62 }
 0x415   :  { %v3077_v11 = vmax.f32 %v2617_v21, 0.0  ;;  %2845 = vmatmul.bf16.vlgmr.msra.gmra.mxu2 %v6466_v16  ;;  %2934 = vmatmul.bf16.vlgmr.msra.gmra.mxu3 %v6467_v27 }
 0x417   :  { %v3220_v55 = vmul.f32 %v5738_v17, %v3077_v11 }
 0x418   :  { %v2530_v39 = vpop.f32.mrf.mxu2  ;;  %v2619_v0 = vpop.f32.mrf.mxu3 }
 0x419   :  { %v2531_v50 = vadd.f32 %v2530_v39, %v2442_v18  ;;  %v2354_v52 = vpop.f32.mrf.mxu0  ;;  %v5849_v20 = vadd.f32 %v5598_v59, %v3220_v55  ;;  %v2443_v6 = vpop.f32.mrf.mxu1 }
 0x41a   :  { %v2355_v19 = vadd.f32 %v2354_v52, %v5720_v37 }
 0x41b   :  { %v2620_v5 = vadd.f32 %v2619_v0, %v2531_v50  ;;  %v6468_v50 = vld [vmem:[#allocation13_spill] sm:$0xff] }
 0x41c   :  { %v2444_v12 = vadd.f32 %v2443_v6, %v2355_v19 }
 0x41d   :  { %v3081_v31 = vmax.f32 %v2620_v5, 0.0  ;;  %v6469_v5 = vld [vmem:[#allocation67_spill] sm:$0xff] }
 0x41f   :  { %v3224_v49 = vmul.f32 %v5738_v17, %v3081_v31 }
 0x420   :  { %v2532_v1 = vpop.f32.mrf.mxu2  ;;  %v2621_v62 = vpop.f32.mrf.mxu3 }
 0x421   :  { %v2533_v21 = vadd.f32 %v2532_v1, %v2444_v12  ;;  %v2357_v16 = vpop.f32.mrf.mxu0  ;;  %v5854_v11 = vadd.f32 %v5604_v8, %v3224_v49  ;;  %v2446_v27 = vpop.f32.mrf.mxu1 }
 0x422   :  { %v2358_v18 = vadd.f32 %v2357_v16, %v5720_v37 }
 0x423   :  { %v2622_v59 = vadd.f32 %v2621_v62, %v2533_v21  ;;  %2672 = vmatmul.bf16.gmra.mxu0 %v4975_v26 }
 0x424   :  { %v2447_v55 = vadd.f32 %v2446_v27, %v2358_v18  ;;  %2761 = vmatmul.bf16.gmra.mxu1 %v4978_v28  ;;  %v6470_v27 = vld [vmem:[#allocation55_spill] sm:$0xff] }
 0x425   :  { %v3085_v39 = vmax.f32 %v2622_v59, 0.0  ;;  %2850 = vmatmul.bf16.gmra.mxu2 %v4987_v43  ;;  %2939 = vmatmul.bf16.gmra.mxu3 %v6468_v50 }
 0x427   :  { %v3228_v0 = vmul.f32 %v5738_v17, %v3085_v39 }
 0x428   :  { %v2535_v52 = vpop.f32.mrf.mxu2  ;;  %v2624_v8 = vpop.f32.mrf.mxu3 }
 0x429   :  { %v2536_v19 = vadd.f32 %v2535_v52, %v2447_v55  ;;  %v2359_v6 = vpop.f32.mrf.mxu0  ;;  %v5863_v12 = vadd.f32 %v6469_v5, %v3228_v0  ;;  %v2448_v49 = vpop.f32.mrf.mxu1  ;;  %v6471_v52 = vld [vmem:[#allocation14_spill] sm:$0xff]  ;;  %v6474_v5 = vld [vmem:[#allocation17_spill] sm:$0xff] }
 0x42a   :  { %v2360_v31 = vadd.f32 %v2359_v6, %v5720_v37 }
 0x42b   :  { %v2625_v26 = vadd.f32 %v2624_v8, %v2536_v19  ;;  %v6472_v19 = vld [vmem:[#allocation15_spill] sm:$0xff]  ;;  %v6473_v8 = vld [vmem:[#allocation16_spill] sm:$0xff] }
 0x42c   :  { %v2449_v1 = vadd.f32 %v2448_v49, %v2360_v31 }
 0x42d   :  { %v3089_v21 = vmax.f32 %v2625_v26, 0.0 }
 0x42f   :  { %v3232_v28 = vmul.f32 %v5738_v17, %v3089_v21 }
 0x430   :  { %v2537_v43 = vpop.f32.mrf.mxu2  ;;  %v2626_v16 = vpop.f32.mrf.mxu3 }
 0x431   :  { %v2538_v62 = vadd.f32 %v2537_v43, %v2449_v1  ;;  %v2362_v18 = vpop.f32.mrf.mxu0  ;;  %v5868_v59 = vadd.f32 %v6470_v27, %v3232_v28  ;;  %v2451_v39 = vpop.f32.mrf.mxu1 }
 0x432   :  { %v2363_v55 = vadd.f32 %v2362_v18, %v5720_v37 }
 0x433   :  { %v2627_v50 = vadd.f32 %v2626_v16, %v2538_v62  ;;  %2677 = vmatmul.bf16.gmra.mxu0 %v6471_v52 }
 0x434   :  { %v2452_v0 = vadd.f32 %v2451_v39, %v2363_v55  ;;  %2766 = vmatmul.bf16.gmra.mxu1 %v6472_v19 }
 0x435   :  { %v3093_v6 = vmax.f32 %v2627_v50, 0.0  ;;  %2855 = vmatmul.bf16.gmra.mxu2 %v6473_v8  ;;  %2944 = vmatmul.bf16.gmra.mxu3 %v6474_v5 }
 0x437   :  { %v3236_v31 = vmul.f32 %v5738_v17, %v3093_v6  ;;  %v6476_v6 = vld [vmem:[#allocation56_spill] sm:$0xff] }
 0x438   :  { %v2540_v49 = vpop.f32.mrf.mxu2  ;;  %v2629_v1 = vpop.f32.mrf.mxu3 }
 0x439   :  { %v2541_v26 = vadd.f32 %v2540_v49, %v2452_v0  ;;  %v2364_v21 = vpop.f32.mrf.mxu0  ;;  %v5877_v28 = vadd.f32 %v5630_v54, %v3236_v31  ;;  %v2453_v62 = vpop.f32.mrf.mxu1  ;;  %v6477_v49 = vld [vmem:[#allocation18_spill] sm:$0xff] }
 0x43a   :  { %v2365_v43 = vadd.f32 %v2364_v21, %v5720_v37 }
 0x43b   :  { %6475 = vst [vmem:[#allocation50_spill] sm:$0xff] %v5877_v28  ;;  %v2630_v16 = vadd.f32 %v2629_v1, %v2541_v26  ;;  %v6478_v26 = vld [vmem:[#allocation19_spill] sm:$0xff]  ;;  %v6479_v1 = vld [vmem:[#allocation20_spill] sm:$0xff] }
 0x43c   :  { %v2454_v18 = vadd.f32 %v2453_v62, %v2365_v43  ;;  %v6480_v43 = vld [vmem:[#allocation21_spill] sm:$0xff] }
 0x43d   :  { %v3097_v27 = vmax.f32 %v2630_v16, 0.0 }
 0x43f   :  { %v3240_v55 = vmul.f32 %v5738_v17, %v3097_v27 }
 0x440   :  { %v2542_v39 = vpop.f32.mrf.mxu2  ;;  %v2631_v52 = vpop.f32.mrf.mxu3 }
 0x441   :  { %v2543_v50 = vadd.f32 %v2542_v39, %v2454_v18  ;;  %v2367_v19 = vpop.f32.mrf.mxu0  ;;  %v5882_v8 = vadd.f32 %v6476_v6, %v3240_v55  ;;  %v2456_v5 = vpop.f32.mrf.mxu1  ;;  %v6481_v39 = vld [vmem:[#allocation57_spill] sm:$0xff] }
 0x442   :  { %v2368_v0 = vadd.f32 %v2367_v19, %v5720_v37 }
 0x443   :  { %v2632_v54 = vadd.f32 %v2631_v52, %v2543_v50  ;;  %2682 = vmatmul.bf16.gmra.mxu0 %v6477_v49 }
 0x444   :  { %v2457_v31 = vadd.f32 %v2456_v5, %v2368_v0  ;;  %2771 = vmatmul.bf16.gmra.mxu1 %v6478_v26 }
 0x445   :  { %v3101_v21 = vmax.f32 %v2632_v54, 0.0  ;;  %2860 = vmatmul.bf16.gmra.mxu2 %v6479_v1  ;;  %2949 = vmatmul.bf16.gmra.mxu3 %v6480_v43 }
 0x447   :  { %v3244_v62 = vmul.f32 %v5738_v17, %v3101_v21  ;;  %v6483_v21 = vld [vmem:[#allocation58_spill] sm:$0xff] }
 0x448   :  { %v2545_v16 = vpop.f32.mrf.mxu2  ;;  %v2634_v27 = vpop.f32.mrf.mxu3 }
 0x449   :  { %v2546_v18 = vadd.f32 %v2545_v16, %v2457_v31  ;;  %v2369_v55 = vpop.f32.mrf.mxu0  ;;  %v5891_v19 = vadd.f32 %v6481_v39, %v3244_v62  ;;  %v2458_v52 = vpop.f32.mrf.mxu1 }
 0x44a   :  { %v2370_v50 = vadd.f32 %v2369_v55, %v5720_v37 }
 0x44b   :  { %6482 = vst [vmem:[#allocation51_spill] sm:$0xff] %v5891_v19  ;;  %v2635_v6 = vadd.f32 %v2634_v27, %v2546_v18  ;;  %v6484_v19 = vld [vmem:[#allocation22_spill] sm:$0xff]  ;;  %v6485_v18 = vld [vmem:[#allocation23_spill] sm:$0xff]  ;;  %v6486_v27 = vld [vmem:[#allocation24_spill] sm:$0xff] }
 0x44c   :  { %v2459_v0 = vadd.f32 %v2458_v52, %v2370_v50  ;;  %v6487_v50 = vld [vmem:[#allocation25_spill] sm:$0xff] }
 0x44d   :  { %v3105_v5 = vmax.f32 %v2635_v6, 0.0 }
 0x44f   :  { %v3248_v54 = vmul.f32 %v5738_v17, %v3105_v5 }
 0x450   :  { %v2547_v49 = vpop.f32.mrf.mxu2  ;;  %v2636_v1 = vpop.f32.mrf.mxu3 }
 0x451   :  { %v2548_v26 = vadd.f32 %v2547_v49, %v2459_v0  ;;  %v2372_v43 = vpop.f32.mrf.mxu0  ;;  %v5896_v28 = vadd.f32 %v6483_v21, %v3248_v54  ;;  %v2461_v16 = vpop.f32.mrf.mxu1 }
 0x452   :  { %v2373_v31 = vadd.f32 %v2372_v43, %v5720_v37 }
 0x453   :  { %v2637_v62 = vadd.f32 %v2636_v1, %v2548_v26  ;;  %2687 = vmatmul.bf16.gmra.mxu0 %v6484_v19 }
 0x454   :  { %v2462_v39 = vadd.f32 %v2461_v16, %v2373_v31  ;;  %2776 = vmatmul.bf16.gmra.mxu1 %v6485_v18 }
 0x455   :  { %v3109_v55 = vmax.f32 %v2637_v62, 0.0  ;;  %2865 = vmatmul.bf16.gmra.mxu2 %v6486_v27  ;;  %2954 = vmatmul.bf16.gmra.mxu3 %v6487_v50 }
 0x457   :  { %v3252_v52 = vmul.f32 %v5738_v17, %v3109_v55  ;;  %v6489_v55 = vld [vmem:[#allocation59_spill] sm:$0xff] }
 0x458   :  { %v2550_v6 = vpop.f32.mrf.mxu2  ;;  %v2639_v5 = vpop.f32.mrf.mxu3 }
 0x459   :  { %v2551_v0 = vadd.f32 %v2550_v6, %v2462_v39  ;;  %v2374_v54 = vpop.f32.mrf.mxu0  ;;  %v5905_v49 = vadd.f32 %v5662_v9, %v3252_v52  ;;  %v2463_v1 = vpop.f32.mrf.mxu1 }
 0x45a   :  { %v2375_v26 = vadd.f32 %v2374_v54, %v5720_v37 }
 0x45b   :  { %6488 = vst [vmem:[#allocation52_spill] sm:$0xff] %v5905_v49  ;;  %v2640_v19 = vadd.f32 %v2639_v5, %v2551_v0  ;;  %v6491_v49 = vld [vmem:[#allocation26_spill] sm:$0xff]  ;;  %v6492_v0 = vld [vmem:[#allocation27_spill] sm:$0xff]  ;;  %v6493_v5 = vld [vmem:[#allocation28_spill] sm:$0xff] }
 0x45c   :  { %v2464_v43 = vadd.f32 %v2463_v1, %v2375_v26  ;;  %v6494_v26 = vld [vmem:[#allocation29_spill] sm:$0xff] }
 0x45d   :  { %v3113_v21 = vmax.f32 %v2640_v19, 0.0 }
 0x45f   :  { %v3256_v31 = vmul.f32 %v5738_v17, %v3113_v21 }
 0x460   :  { %v2552_v16 = vpop.f32.mrf.mxu2  ;;  %v2641_v18 = vpop.f32.mrf.mxu3 }
 0x461   :  { %v2553_v62 = vadd.f32 %v2552_v16, %v2464_v43  ;;  %v2377_v27 = vpop.f32.mrf.mxu0  ;;  %v5910_v50 = vadd.f32 %v6489_v55, %v3256_v31  ;;  %v2466_v6 = vpop.f32.mrf.mxu1  ;;  %v6495_v16 = vld [vmem:[#allocation60_spill] sm:$0xff] }
 0x462   :  { %v2378_v39 = vadd.f32 %v2377_v27, %v5720_v37 }
 0x463   :  { %6490 = vst [vmem:[#allocation53_spill] sm:$0xff] %v5910_v50  ;;  %v2642_v9 = vadd.f32 %v2641_v18, %v2553_v62  ;;  %2692 = vmatmul.bf16.gmra.mxu0 %v6491_v49 }
 0x464   :  { %v2467_v52 = vadd.f32 %v2466_v6, %v2378_v39  ;;  %2781 = vmatmul.bf16.gmra.mxu1 %v6492_v0 }
 0x465   :  { %v3117_v54 = vmax.f32 %v2642_v9, 0.0  ;;  %2870 = vmatmul.bf16.gmra.mxu2 %v6493_v5  ;;  %2959 = vmatmul.bf16.gmra.mxu3 %v6494_v26 }
 0x467   :  { %v3260_v1 = vmul.f32 %v5738_v17, %v3117_v54  ;;  %v6497_v54 = vld [vmem:[#allocation61_spill] sm:$0xff] }
 0x468   :  { %v2555_v19 = vpop.f32.mrf.mxu2  ;;  %v2644_v21 = vpop.f32.mrf.mxu3 }
 0x469   :  { %v2556_v43 = vadd.f32 %v2555_v19, %v2467_v52  ;;  %v2379_v31 = vpop.f32.mrf.mxu0  ;;  %v5919_v27 = vadd.f32 %v6495_v16, %v3260_v1  ;;  %v2468_v18 = vpop.f32.mrf.mxu1 }
 0x46a   :  { %v2380_v62 = vadd.f32 %v2379_v31, %v5720_v37 }
 0x46b   :  { %6496 = vst [vmem:[#allocation9_spill] sm:$0xff] %v5919_v27  ;;  %v2645_v49 = vadd.f32 %v2644_v21, %v2556_v43  ;;  %v6498_v27 = vld [vmem:[#allocation30_spill] sm:$0xff]  ;;  %v6499_v43 = vld [vmem:[#allocation31_spill] sm:$0xff]  ;;  %v6500_v21 = vld [vmem:[#allocation32_spill] sm:$0xff] }
 0x46c   :  { %v2469_v55 = vadd.f32 %v2468_v18, %v2380_v62  ;;  %v6501_v62 = vld [vmem:[#allocation33_spill] sm:$0xff] }
 0x46d   :  { %v3121_v39 = vmax.f32 %v2645_v49, 0.0 }
 0x46f   :  { %v3264_v6 = vmul.f32 %v5738_v17, %v3121_v39 }
 0x470   :  { %v2557_v9 = vpop.f32.mrf.mxu2  ;;  %v2646_v5 = vpop.f32.mrf.mxu3 }
 0x471   :  { %v2558_v0 = vadd.f32 %v2557_v9, %v2469_v55  ;;  %v2382_v26 = vpop.f32.mrf.mxu0  ;;  %v5924_v50 = vadd.f32 %v6497_v54, %v3264_v6  ;;  %v2471_v19 = vpop.f32.mrf.mxu1 }
 0x472   :  { %v2383_v52 = vadd.f32 %v2382_v26, %v5720_v37 }
 0x473   :  { %v2647_v1 = vadd.f32 %v2646_v5, %v2558_v0  ;;  %2697 = vmatmul.bf16.gmra.mxu0 %v6498_v27 }
 0x474   :  { %v2472_v16 = vadd.f32 %v2471_v19, %v2383_v52  ;;  %2786 = vmatmul.bf16.gmra.mxu1 %v6499_v43 }
 0x475   :  { %v3125_v31 = vmax.f32 %v2647_v1, 0.0  ;;  %2875 = vmatmul.bf16.gmra.mxu2 %v6500_v21  ;;  %2964 = vmatmul.bf16.gmra.mxu3 %v6501_v62 }
 0x477   :  { %v3268_v18 = vmul.f32 %v5738_v17, %v3125_v31 }
 0x478   :  { %v2560_v49 = vpop.f32.mrf.mxu2  ;;  %v2649_v39 = vpop.f32.mrf.mxu3 }
 0x479   :  { %v2561_v55 = vadd.f32 %v2560_v49, %v2472_v16  ;;  %v2384_v6 = vpop.f32.mrf.mxu0  ;;  %v5933_v9 = vadd.f32 %v5694_v35, %v3268_v18  ;;  %v2473_v5 = vpop.f32.mrf.mxu1  ;;  %v6503_v49 = vld [vmem:[#allocation34_spill] sm:$0xff] }
 0x47a   :  { %v2385_v0 = vadd.f32 %v2384_v6, %v5720_v37 }
 0x47b   :  { %6502 = vst [vmem:[#allocation10_spill] sm:$0xff] %v5933_v9  ;;  %v2650_v27 = vadd.f32 %v2649_v39, %v2561_v55  ;;  %v6504_v55 = vld [vmem:[#allocation35_spill] sm:$0xff]  ;;  %v6505_v39 = vld [vmem:[#allocation36_spill] sm:$0xff] }
 0x47c   :  { %v2474_v26 = vadd.f32 %v2473_v5, %v2385_v0  ;;  %v6506_v0 = vld [vmem:[#allocation37_spill] sm:$0xff] }
 0x47d   :  { %v3129_v54 = vmax.f32 %v2650_v27, 0.0 }
 0x47f   :  { %v3272_v52 = vmul.f32 %v5738_v17, %v3129_v54 }
 0x480   :  { %v2562_v19 = vpop.f32.mrf.mxu2  ;;  %v2651_v43 = vpop.f32.mrf.mxu3 }
 0x481   :  { %v2563_v1 = vadd.f32 %v2562_v19, %v2474_v26  ;;  %v2387_v21 = vpop.f32.mrf.mxu0  ;;  %v5938_v31 = vadd.f32 %v5700_v47, %v3272_v52  ;;  %v2476_v62 = vpop.f32.mrf.mxu1  ;;  %v6507_v52 = vld [vmem:[#allocation62_spill] sm:$0xff] }
 0x482   :  { %v2388_v16 = vadd.f32 %v2387_v21, %v5720_v37 }
 0x483   :  { %v2652_v35 = vadd.f32 %v2651_v43, %v2563_v1  ;;  %2702 = vmatmul.bf16.gmra.mxu0 %v6503_v49  ;;  %v6508_v49 = vld [vmem:[#allocation63_spill] sm:$0xff] }
 0x484   :  { %v2477_v18 = vadd.f32 %v2476_v62, %v2388_v16  ;;  %2791 = vmatmul.bf16.gmra.mxu1 %v6504_v55  ;;  %v5952_v55 = vperm.slane %v6508_v49, 3 }
 0x485   :  { %v3133_v6 = vmax.f32 %v2652_v35, 0.0  ;;  %2880 = vmatmul.bf16.gmra.mxu2 %v6505_v39  ;;  %2969 = vmatmul.bf16.gmra.mxu3 %v6506_v0 }
 0x487   :  { %v3276_v5 = vmul.f32 %v5738_v17, %v3133_v6 }
 0x488   :  { %v2565_v27 = vpop.f32.mrf.mxu2  ;;  %v2654_v47 = vpop.f32.mrf.mxu3 }
 0x489   :  { %v2566_v26 = vadd.f32 %v2565_v27, %v2477_v18  ;;  %v2389_v54 = vpop.f32.mrf.mxu0  ;;  %v5947_v19 = vadd.f32 %v6507_v52, %v3276_v5  ;;  %v2478_v43 = vpop.f32.mrf.mxu1  ;;  %v6509_v27 = vld [vmem:[#allocation64_spill] sm:$0xff] }
 0x48a   :  { %v2390_v1 = vadd.f32 %v2389_v54, %v5720_v37  ;;  %v6511_v54 = vld [vmem:[#allocation38_spill] sm:$0xff] }
 0x48b   :  { %v2655_v21 = vadd.f32 %v2654_v47, %v2566_v26  ;;  %v6512_v47 = vld [vmem:[#allocation39_spill] sm:$0xff] }
 0x48c   :  { %v2479_v16 = vadd.f32 %v2478_v43, %v2390_v1  ;;  %v6513_v1 = vld [vmem:[#allocation40_spill] sm:$0xff]  ;;  %v6514_v43 = vld [vmem:[#allocation41_spill] sm:$0xff] }
 0x48d   :  { %v3137_v62 = vmax.f32 %v2655_v21, 0.0 }
 0x48f   :  { %v3280_v35 = vmul.f32 %v5738_v17, %v3137_v62  ;;  %v6515_v62 = vld [vmem:[#allocation54_spill] sm:$0xff] }
 0x490   :  { %v2567_v39 = vpop.f32.mrf.mxu2  ;;  %v2656_v0 = vpop.f32.mrf.mxu3  ;;  %v3149_v49 = vperm.slane %v6515_v62, 6 }
 0x491   :  { %v2568_v6 = vadd.f32 %v2567_v39, %v2479_v16  ;;  %v2668_v18 = vpop.f32.mrf.mxu0  ;;  %v5955_v9 = vadd.f32 %v6509_v27, %v3280_v35  ;;  %v2757_v5 = vpop.f32.mrf.mxu1 }
 0x492   :  { %v2669_v37 = vadd.f32 %v2668_v18, %v5952_v55 }
 0x493   :  { %6510 = vst [vmem:[#allocation11_spill] sm:$0xff] %v5955_v9  ;;  %v2657_v52 = vadd.f32 %v2656_v0, %v2568_v6  ;;  %2707 = vmatmul.bf16.gmra.mxu0 %v6511_v54 }
 0x494   :  { %2796 = vmatmul.bf16.gmra.mxu1 %v6512_v47  ;;  %v2758_v16 = vadd.f32 %v2757_v5, %v2669_v37  ;;  %v5968_v47 = vperm.slane %v3149_v49, 0 }
 0x495   :  { %v3141_v26 = vmax.f32 %v2657_v52, 0.0  ;;  %2885 = vmatmul.bf16.gmra.mxu2 %v6513_v1  ;;  %2974 = vmatmul.bf16.gmra.mxu3 %v6514_v43 }
 0x497   :  { %v3284_v21 = vmul.f32 %v5738_v17, %v3141_v26 }
 0x498   :  { %v2846_v35 = vpop.f32.mrf.mxu2  ;;  %v2935_v27 = vpop.f32.mrf.mxu3 }
 0x499   :  { %v2847_v39 = vadd.f32 %v2846_v35, %v2758_v16  ;;  %v2670_v6 = vpop.f32.mrf.mxu0  ;;  %v5965_v0 = vadd.f32 %v5735_v30, %v3284_v21  ;;  %v2759_v18 = vpop.f32.mrf.mxu1 }
 0x49a   :  { %v2671_v54 = vadd.f32 %v2670_v6, %v5952_v55 }
 0x49b   :  { %v2936_v52 = vadd.f32 %v2935_v27, %v2847_v39 }
 0x49c   :  { %v2760_v43 = vadd.f32 %v2759_v18, %v2671_v54 }
 0x49d   :  { %v3018_v1 = vmax.f32 %v2936_v52, 0.0 }
 0x49f   :  { %v3161_v17 = vmul.f32 %v5968_v47, %v3018_v1 }
 0x4a0   :  { %v2848_v5 = vpop.f32.mrf.mxu2  ;;  %v2937_v26 = vpop.f32.mrf.mxu3 }
 0x4a1   :  { %v2849_v37 = vadd.f32 %v2848_v5, %v2760_v43  ;;  %v2673_v62 = vpop.f32.mrf.mxu0  ;;  %v3288_v16 = vadd.f32 %v5742_v44, %v3161_v17  ;;  %v2762_v35 = vpop.f32.mrf.mxu1 }
 0x4a2   :  { %v2674_v30 = vadd.f32 %v2673_v62, %v5952_v55 }
 0x4a3   :  { %v2938_v9 = vadd.f32 %v2937_v26, %v2849_v37  ;;  %3289 = vadd.xlane.f32.xlu0 %v3288_v16  ;;  %2712 = vmatmul.bf16.gmra.mxu0 %v5153_v23  ;;  %v6516_v37 = vld [vmem:[#allocation65_spill] sm:$0xff] }
 0x4a4   :  { %2801 = vmatmul.bf16.gmra.mxu1 %v5156_v36  ;;  %v2763_v49 = vadd.f32 %v2762_v35, %v2674_v30 }
 0x4a5   :  { %v3022_v21 = vmax.f32 %v2938_v9, 0.0  ;;  %2890 = vmatmul.bf16.gmra.mxu2 %v5162_v7  ;;  %2979 = vmatmul.bf16.gmra.mxu3 %v5166_v3 }
 0x4a7   :  { %v3165_v39 = vmul.f32 %v5968_v47, %v3022_v21  ;;  %v6518_v21 = vld [vmem:[#allocation43_spill] sm:$0xff] }
 0x4a8   :  { %v2851_v27 = vpop.f32.mrf.mxu2  ;;  %v2940_v44 = vpop.f32.mrf.mxu3 }
 0x4a9   :  { %v2852_v6 = vadd.f32 %v2851_v27, %v2763_v49  ;;  %v2675_v18 = vpop.f32.mrf.mxu0  ;;  %v3293_v52 = vadd.f32 %v5751_v61, %v3165_v39  ;;  %v2764_v54 = vpop.f32.mrf.mxu1  ;;  %v6517_v61 = vld [vmem:[#allocation42_spill] sm:$0xff]  ;;  %v6519_v49 = vld [vmem:[#allocation44_spill] sm:$0xff]  ;;  %v6520_v39 = vld [vmem:[#allocation45_spill] sm:$0xff] }
 0x4aa   :  { %v2676_v23 = vadd.f32 %v2675_v18, %v5952_v55 }
 0x4ab   :  { %v2941_v1 = vadd.f32 %v2940_v44, %v2852_v6  ;;  %3294 = vadd.xlane.f32.xlu0 %v3293_v52 }
 0x4ac   :  { %v2765_v36 = vadd.f32 %v2764_v54, %v2676_v23 }
 0x4ad   :  { %v3026_v9 = vmax.f32 %v2941_v1, 0.0 }
 0x4af   :  { %v3169_v7 = vmul.f32 %v5968_v47, %v3026_v9 }
 0x4b0   :  { %v2853_v43 = vpop.f32.mrf.mxu2  ;;  %v2942_v17 = vpop.f32.mrf.mxu3 }
 0x4b1   :  { %v2854_v3 = vadd.f32 %v2853_v43, %v2765_v36  ;;  %v2678_v5 = vpop.f32.mrf.mxu0  ;;  %v3298_v26 = vadd.f32 %v6516_v37, %v3169_v7  ;;  %v2767_v62 = vpop.f32.mrf.mxu1 }
 0x4b2   :  { %v2679_v35 = vadd.f32 %v2678_v5, %v5952_v55 }
 0x4b3   :  { %v2943_v16 = vadd.f32 %v2942_v17, %v2854_v3  ;;  %3299 = vadd.xlane.f32.xlu1 %v3298_v26  ;;  %2717 = vmatmul.bf16.gmra.mxu0 %v6517_v61 }
 0x4b4   :  { %2806 = vmatmul.bf16.gmra.mxu1 %v6518_v21  ;;  %v2768_v27 = vadd.f32 %v2767_v62, %v2679_v35 }
 0x4b5   :  { %v3030_v30 = vmax.f32 %v2943_v16, 0.0  ;;  %2895 = vmatmul.bf16.gmra.mxu2 %v6519_v49  ;;  %2984 = vmatmul.bf16.gmra.mxu3 %v6520_v39 }
 0x4b7   :  { %v3173_v6 = vmul.f32 %v5968_v47, %v3030_v30 }
 0x4b8   :  { %v2856_v44 = vpop.f32.mrf.mxu2  ;;  %v2945_v52 = vpop.f32.mrf.mxu3 }
 0x4b9   :  { %v2857_v18 = vadd.f32 %v2856_v44, %v2768_v27  ;;  %v2680_v54 = vpop.f32.mrf.mxu0  ;;  %v3303_v1 = vadd.f32 %v5765_v41, %v3173_v6  ;;  %v2769_v23 = vpop.f32.mrf.mxu1 }
 0x4ba   :  { %v2681_v36 = vadd.f32 %v2680_v54, %v5952_v55 }
 0x4bb   :  { %v2946_v9 = vadd.f32 %v2945_v52, %v2857_v18  ;;  %3304 = vadd.xlane.f32.xlu1 %v3303_v1 }
 0x4bc   :  { %v2770_v43 = vadd.f32 %v2769_v23, %v2681_v36 }
 0x4bd   :  { %v3034_v7 = vmax.f32 %v2946_v9, 0.0 }
 0x4bf   :  { %v3177_v3 = vmul.f32 %v5968_v47, %v3034_v7 }
 0x4c0   :  { %v2858_v17 = vpop.f32.mrf.mxu2  ;;  %v2947_v37 = vpop.f32.mrf.mxu3 }
 0x4c1   :  { %v2859_v5 = vadd.f32 %v2858_v17, %v2770_v43  ;;  %v2683_v26 = vpop.f32.mrf.mxu0  ;;  %v3308_v62 = vadd.f32 %v5770_v63, %v3177_v3  ;;  %v2772_v16 = vpop.f32.mrf.mxu1  ;;  %v6522_v17 = vld [vmem:[#allocation47_spill] sm:$0xff] }
 0x4c2   :  { %v2684_v61 = vadd.f32 %v2683_v26, %v5952_v55 }
 0x4c3   :  { %v2948_v35 = vadd.f32 %v2947_v37, %v2859_v5  ;;  %3309 = vadd.xlane.f32.xlu2 %v3308_v62  ;;  %2722 = vmatmul.bf16.gmra.mxu0 %v5193_v45  ;;  %v6523_v5 = vld [vmem:[#allocation48_spill] sm:$0xff]  ;;  %v6524_v37 = vld [vmem:[#allocation49_spill] sm:$0xff] }
 0x4c4   :  { %2811 = vmatmul.bf16.gmra.mxu1 %v5196_v29  ;;  %v2773_v30 = vadd.f32 %v2772_v16, %v2684_v61 }
 0x4c5   :  { %v3038_v41 = vmax.f32 %v2948_v35, 0.0  ;;  %2900 = vmatmul.bf16.gmra.mxu2 %v5202_v22  ;;  %2989 = vmatmul.bf16.gmra.mxu3 %v5206_v4 }
 0x4c7   :  { %v3181_v21 = vmul.f32 %v5968_v47, %v3038_v41 }
 0x4c8   :  { %v2861_v49 = vpop.f32.mrf.mxu2  ;;  %v2950_v63 = vpop.f32.mrf.mxu3 }
 0x4c9   :  { %v2862_v39 = vadd.f32 %v2861_v49, %v2773_v30  ;;  %v2685_v27 = vpop.f32.mrf.mxu0  ;;  %v3313_v6 = vadd.f32 %v5779_v25, %v3181_v21  ;;  %v2774_v44 = vpop.f32.mrf.mxu1  ;;  %v6521_v25 = vld [vmem:[#allocation46_spill] sm:$0xff] }
 0x4ca   :  { %v2686_v45 = vadd.f32 %v2685_v27, %v5952_v55 }
 0x4cb   :  { %v2951_v18 = vadd.f32 %v2950_v63, %v2862_v39  ;;  %3314 = vadd.xlane.f32.xlu2 %v3313_v6 }
 0x4cc   :  { %v2775_v22 = vadd.f32 %v2774_v44, %v2686_v45 }
 0x4cd   :  { %v3042_v52 = vmax.f32 %v2951_v18, 0.0 }
 0x4cf   :  { %v3185_v29 = vmul.f32 %v5968_v47, %v3042_v52 }
 0x4d0   :  { %v2863_v54 = vpop.f32.mrf.mxu2  ;;  %v2952_v1 = vpop.f32.mrf.mxu3 }
 0x4d1   :  { %v2864_v4 = vadd.f32 %v2863_v54, %v2775_v22  ;;  %v2688_v23 = vpop.f32.mrf.mxu0  ;;  %v3318_v9 = vadd.f32 %v5784_v60, %v3185_v29  ;;  %v2777_v36 = vpop.f32.mrf.mxu1 }
 0x4d2   :  { %v2689_v43 = vadd.f32 %v2688_v23, %v5952_v55 }
 0x4d3   :  { %v2953_v7 = vadd.f32 %v2952_v1, %v2864_v4  ;;  %3319 = vadd.xlane.f32.xlu0 %v3318_v9  ;;  %2727 = vmatmul.bf16.gmra.mxu0 %v6521_v25 }
 0x4d4   :  { %2816 = vmatmul.bf16.gmra.mxu1 %v6522_v17  ;;  %v2778_v26 = vadd.f32 %v2777_v36, %v2689_v43 }
 0x4d5   :  { %v3046_v3 = vmax.f32 %v2953_v7, 0.0  ;;  %2905 = vmatmul.bf16.gmra.mxu2 %v6523_v5  ;;  %2994 = vmatmul.bf16.gmra.mxu3 %v6524_v37 }
 0x4d7   :  { %v3189_v62 = vmul.f32 %v5968_v47, %v3046_v3 }
 0x4d8   :  { %v2866_v16 = vpop.f32.mrf.mxu2  ;;  %v2955_v60 = vpop.f32.mrf.mxu3 }
 0x4d9   :  { %v2867_v35 = vadd.f32 %v2866_v16, %v2778_v26  ;;  %v2690_v61 = vpop.f32.mrf.mxu0  ;;  %v3323_v41 = vadd.f32 %v5793_v46, %v3189_v62  ;;  %v2779_v30 = vpop.f32.mrf.mxu1 }
 0x4da   :  { %v2691_v49 = vadd.f32 %v2690_v61, %v5952_v55 }
 0x4db   :  { %v2956_v21 = vadd.f32 %v2955_v60, %v2867_v35  ;;  %3324 = vadd.xlane.f32.xlu1 %v3323_v41 }
 0x4dc   :  { %v2780_v27 = vadd.f32 %v2779_v30, %v2691_v49 }
 0x4dd   :  { %v3050_v39 = vmax.f32 %v2956_v21, 0.0 }
 0x4df   :  { %v3193_v63 = vmul.f32 %v5968_v47, %v3050_v39 }
 0x4e0   :  { %v2868_v6 = vpop.f32.mrf.mxu2  ;;  %v2957_v18 = vpop.f32.mrf.mxu3 }
 0x4e1   :  { %v2869_v44 = vadd.f32 %v2868_v6, %v2780_v27  ;;  %v2693_v45 = vpop.f32.mrf.mxu0  ;;  %v3328_v52 = vadd.f32 %v5798_v56, %v3193_v63  ;;  %v2782_v29 = vpop.f32.mrf.mxu1 }
 0x4e2   :  { %v2694_v54 = vadd.f32 %v2693_v45, %v5952_v55 }
 0x4e3   :  { %v2958_v22 = vadd.f32 %v2957_v18, %v2869_v44  ;;  %3329 = vadd.xlane.f32.xlu2 %v3328_v52  ;;  %2732 = vmatmul.bf16.gmra.mxu0 %v5233_v14 }
 0x4e4   :  { %2821 = vmatmul.bf16.gmra.mxu1 %v5236_v48  ;;  %v2783_v1 = vadd.f32 %v2782_v29, %v2694_v54 }
 0x4e5   :  { %v3054_v46 = vmax.f32 %v2958_v22, 0.0  ;;  %2910 = vmatmul.bf16.gmra.mxu2 %v5242_v42  ;;  %2999 = vmatmul.bf16.gmra.mxu3 %v5246_v57 }
 0x4e7   :  { %v3197_v4 = vmul.f32 %v5968_v47, %v3054_v46 }
 0x4e8   :  { %v2871_v23 = vpop.f32.mrf.mxu2  ;;  %v2960_v56 = vpop.f32.mrf.mxu3 }
 0x4e9   :  { %v2872_v9 = vadd.f32 %v2871_v23, %v2783_v1  ;;  %v2695_v36 = vpop.f32.mrf.mxu0  ;;  %v3333_v7 = vadd.f32 %v5807_v40, %v3197_v4  ;;  %v2784_v43 = vpop.f32.mrf.mxu1 }
 0x4ea   :  { %v2696_v14 = vadd.f32 %v2695_v36, %v5952_v55 }
 0x4eb   :  { %v2961_v25 = vadd.f32 %v2960_v56, %v2872_v9  ;;  %3334 = vadd.xlane.f32.xlu0 %v3333_v7  ;;  %v6525_v9 = vld [vmem:[#allocation66_spill] sm:$0xff] }
 0x4ec   :  { %v2785_v42 = vadd.f32 %v2784_v43, %v2696_v14  ;;  %v4776_v43 = vmov 0  }
 0x4ed   :  { %v3058_v3 = vmax.f32 %v2961_v25, 0.0  ;;  %4652 = vset.pattern.permute.xlu2 %v4776_v43  ;;  %4653 = vset.pattern.permute.xlu0 %v4776_v43 }
 0x4ee   :  { %4654 = vset.pattern.permute.xlu1 %v4776_v43 }
 0x4ef   :  { %v3201_v48 = vmul.f32 %v5968_v47, %v3058_v3 }
 0x4f0   :  { %v2873_v17 = vpop.f32.mrf.mxu2  ;;  %v2962_v5 = vpop.f32.mrf.mxu3 }
 0x4f1   :  { %v2874_v57 = vadd.f32 %v2873_v17, %v2785_v42  ;;  %v2698_v37 = vpop.f32.mrf.mxu0  ;;  %v3338_v26 = vadd.f32 %v5812_v38, %v3201_v48  ;;  %v2787_v62 = vpop.f32.mrf.mxu1 }
 0x4f2   :  { %v2699_v35 = vadd.f32 %v2698_v37, %v5952_v55  ;;  %v6043_v37 = vld [vmem:[#allocation2] ss:$0 sm:$0xff] }
 0x4f3   :  { %v2963_v16 = vadd.f32 %v2962_v5, %v2874_v57  ;;  %3339 = vadd.xlane.f32.xlu1 %v3338_v26  ;;  %2737 = vmatmul.bf16.gmra.mxu0 %v6459_v32 }
 0x4f4   :  { %2826 = vmatmul.bf16.gmra.mxu1 %v6460_v2  ;;  %v2788_v61 = vadd.f32 %v2787_v62, %v2699_v35 }
 0x4f5   :  { %v3062_v40 = vmax.f32 %v2963_v16, 0.0  ;;  %2915 = vmatmul.bf16.gmra.mxu2 %v6461_v15  ;;  %3004 = vmatmul.bf16.gmra.mxu3 %v6462_v13 }
 0x4f7   :  { %v3205_v60 = vmul.f32 %v5968_v47, %v3062_v40 }
 0x4f8   :  { %v2876_v41 = vpop.f32.mrf.mxu2  ;;  %v2965_v38 = vpop.f32.mrf.mxu3 }
 0x4f9   :  { %v2877_v30 = vadd.f32 %v2876_v41, %v2788_v61  ;;  %v2700_v21 = vpop.f32.mrf.mxu0  ;;  %v3343_v49 = vadd.f32 %v5821_v10, %v3205_v60  ;;  %v2789_v39 = vpop.f32.mrf.mxu1 }
 0x4fa   :  { %v2701_v32 = vadd.f32 %v2700_v21, %v5952_v55 }
 0x4fb   :  { %v2966_v63 = vadd.f32 %v2965_v38, %v2877_v30  ;;  %3344 = vadd.xlane.f32.xlu2 %v3343_v49 }
 0x4fc   :  { %v2790_v15 = vadd.f32 %v2789_v39, %v2701_v32 }
 0x4fd   :  { %v3066_v27 = vmax.f32 %v2966_v63, 0.0 }
 0x4ff   :  { %v3209_v2 = vmul.f32 %v5968_v47, %v3066_v27 }
 0x500   :  { %v2878_v6 = vpop.f32.mrf.mxu2  ;;  %v2967_v44 = vpop.f32.mrf.mxu3 }
 0x501   :  { %v2879_v13 = vadd.f32 %v2878_v6, %v2790_v15  ;;  %v2703_v18 = vpop.f32.mrf.mxu0  ;;  %v3348_v45 = vadd.f32 %v5826_v53, %v3209_v2  ;;  %v2792_v52 = vpop.f32.mrf.mxu1 }
 0x502   :  { %v2704_v22 = vadd.f32 %v2703_v18, %v5952_v55 }
 0x503   :  { %v2968_v29 = vadd.f32 %v2967_v44, %v2879_v13  ;;  %3349 = vadd.xlane.f32.xlu0 %v3348_v45  ;;  %2742 = vmatmul.bf16.gmra.mxu0 %v5278_v58 }
 0x504   :  { %2831 = vmatmul.bf16.gmra.mxu1 %v5284_v33  ;;  %v2793_v46 = vadd.f32 %v2792_v52, %v2704_v22 }
 0x505   :  { %v3070_v10 = vmax.f32 %v2968_v29, 0.0  ;;  %2920 = vmatmul.bf16.gmra.mxu2 %v5291_v24  ;;  %3009 = vmatmul.bf16.gmra.mxu3 %v5295_v51 }
 0x507   :  { %v3213_v54 = vmul.f32 %v5968_v47, %v3070_v10 }
 0x508   :  { %v2881_v4 = vpop.f32.mrf.mxu2  ;;  %v2970_v53 = vpop.f32.mrf.mxu3 }
 0x509   :  { %v2882_v1 = vadd.f32 %v2881_v4, %v2793_v46  ;;  %v2705_v23 = vpop.f32.mrf.mxu0  ;;  %v3353_v56 = vadd.f32 %v6525_v9, %v3213_v54  ;;  %v2794_v36 = vpop.f32.mrf.mxu1 }
 0x50a   :  { %v2706_v58 = vadd.f32 %v2705_v23, %v5952_v55 }
 0x50b   :  { %v2971_v7 = vadd.f32 %v2970_v53, %v2882_v1  ;;  %3354 = vadd.xlane.f32.xlu1 %v3353_v56 }
 0x50c   :  { %v2795_v51 = vadd.f32 %v2794_v36, %v2706_v58 }
 0x50d   :  { %v3074_v33 = vmax.f32 %v2971_v7, 0.0 }
 0x50f   :  { %v3217_v24 = vmul.f32 %v5968_v47, %v3074_v33 }
 0x510   :  { %v2883_v25 = vpop.f32.mrf.mxu2  ;;  %v2972_v3 = vpop.f32.mrf.mxu3 }
 0x511   :  { %v2884_v14 = vadd.f32 %v2883_v25, %v2795_v51  ;;  %v2708_v48 = vpop.f32.mrf.mxu0  ;;  %v3358_v42 = vadd.f32 %v5840_v34, %v3217_v24  ;;  %v2797_v17 = vpop.f32.mrf.mxu1 }
 0x512   :  { %v2709_v5 = vadd.f32 %v2708_v48, %v5952_v55 }
 0x513   :  { %v2973_v57 = vadd.f32 %v2972_v3, %v2884_v14  ;;  %3359 = vadd.xlane.f32.xlu2 %v3358_v42 }
 0x514   :  { %v2798_v35 = vadd.f32 %v2797_v17, %v2709_v5 }
 0x515   :  { %v3078_v26 = vmax.f32 %v2973_v57, 0.0 }
 0x516   :  { %v3290_v62 = vpop.xlane.xlu0 %3289 }
 0x517   :  { %v3221_v16 = vmul.f32 %v5968_v47, %v3078_v26  ;;  %v3450_v40 = vadd.f32 %v6043_v37, %v3290_v62 }
 0x518   :  { %v2886_v60 = vpop.f32.mrf.mxu2  ;;  %v2975_v30 = vpop.f32.mrf.mxu3 }
 0x519   :  { %v3482_v61 = vmul.f32 0.5, %v3450_v40  ;;  %v2887_v41 = vadd.f32 %v2886_v60, %v2798_v35  ;;  %v2710_v38 = vpop.f32.mrf.mxu0  ;;  %v3363_v34 = vadd.f32 %v5849_v20, %v3221_v16  ;;  %v2799_v21 = vpop.f32.mrf.mxu1 }
 0x51a   :  { %v2711_v57 = vadd.f32 %v2710_v38, %v5952_v55 }
 0x51b   :  { %v2976_v49 = vadd.f32 %v2975_v30, %v2887_v41  ;;  %3364 = vadd.xlane.f32.xlu0 %v3363_v34  ;;  %4656 = vtanh.f32 %v3482_v61 }
 0x51c   :  { %v2800_v62 = vadd.f32 %v2799_v21, %v2711_v57 }
 0x51d   :  { %v3082_v39 = vmax.f32 %v2976_v49, 0.0 }
 0x51e   :  { %v3295_v63 = vpop.xlane.xlu0 %3294 }
 0x51f   :  { %v3225_v32 = vmul.f32 %v5968_v47, %v3082_v39  ;;  %v3451_v27 = vadd.f32 %v6043_v37, %v3295_v63 }
 0x520   :  { %v2888_v2 = vpop.f32.mrf.mxu2  ;;  %v2977_v6 = vpop.f32.mrf.mxu3 }
 0x521   :  { %v3483_v15 = vmul.f32 0.5, %v3451_v27  ;;  %v2713_v13 = vpop.f32.mrf.mxu0  ;;  %v3368_v44 = vadd.f32 %v5854_v11, %v3225_v32  ;;  %v4657_v18 = vpop.eup %4656  ;;  %v2889_v41 = vadd.f32 %v2888_v2, %v2800_v62 }
 0x522   :  { %v2802_v45 = vpop.f32.mrf.mxu1  ;;  %v3546_v20 = vadd.f32 1.0, %v4657_v18  ;;  %v2714_v35 = vadd.f32 %v2713_v13, %v5952_v55 }
 0x523   :  { %4658 = vtanh.f32 %v3483_v15  ;;  %3369 = vadd.xlane.f32.xlu1 %v3368_v44  ;;  %v2978_v38 = vadd.f32 %v2977_v6, %v2889_v41 }
 0x524   :  { %v3578_v54 = vmul.f32 0.5, %v3546_v20  ;;  %v2803_v39 = vadd.f32 %v2802_v45, %v2714_v35 }
 0x525   :  { %v3086_v13 = vmax.f32 %v2978_v38, 0.0 }
 0x526   :  { %v3300_v52 = vpop.xlane.xlu1 %3299 }
 0x527   :  { %v3452_v29 = vadd.f32 %v6043_v37, %v3300_v52 }
 0x528   :  { %v2891_v22 = vpop.f32.mrf.mxu2  ;;  %v2980_v4 = vpop.f32.mrf.mxu3 }
 0x529   :  { %v4659_v10 = vpop.eup %4658  ;;  %v3484_v46 = vmul.f32 0.5, %v3452_v29  ;;  %v2715_v1 = vpop.f32.mrf.mxu0  ;;  %v2892_v63 = vadd.f32 %v2891_v22, %v2803_v39 }
 0x52a   :  { %v3547_v53 = vadd.f32 1.0, %v4659_v10  ;;  %v2804_v23 = vpop.f32.mrf.mxu1  ;;  %v2716_v6 = vadd.f32 %v2715_v1, %v5952_v55 }
 0x52b   :  { %3612 = vperm.xlu2 %4652, %v3578_v54   ;;  %4660 = vtanh.f32 %v3484_v46  ;;  %v3229_v54 = vmul.f32 %v5968_v47, %v3086_v13 }
 0x52c   :  { %v3579_v9 = vmul.f32 0.5, %v3547_v53 }
 0x52f   :  { %3617 = vperm.xlu0 %4653, %v3579_v9  }
 0x530   :  { %v6052_v11 = vpop.f32.mrf.mxu2  ;;  %v6054_v56 = vpop.f32.mrf.mxu3 }
 0x531   :  { %v2718_v36 = vpop.f32.mrf.mxu0  ;;  %v4661_v43 = vpop.eup %4660 }
 0x532   :  { %v2719_v7 = vadd.f32 %v2718_v36, %v5952_v55  ;;  %v2807_v58 = vpop.f32.mrf.mxu1  ;;  %v3548_v24 = vadd.f32 1.0, %v4661_v43  ;;  %v2805_v43 = vadd.f32 %v2804_v23, %v2716_v6 }
 0x534   :  { %v2808_v33 = vadd.f32 %v2807_v58, %v2719_v7  ;;  %v3580_v48 = vmul.f32 0.5, %v3548_v24 }
 0x536   :  { %v6069_v53 = vpop.xlane.xlu2 %3309 }
 0x538   :  { %v2896_v51 = vpop.f32.mrf.mxu2  ;;  %v2985_v14 = vpop.f32.mrf.mxu3 }
 0x539   :  { %v2897_v25 = vadd.f32 %v2896_v51, %v2808_v33  ;;  %v2720_v3 = vpop.f32.mrf.mxu0  ;;  %v3305_v33 = vpop.xlane.xlu1 %3304  ;;  %v3373_v51 = vadd.f32 %v5863_v12, %v3229_v54  ;;  %v6528_v54 = vld [vmem:[#allocation50_spill] sm:$0xff] }
 0x53a   :  { %v2809_v42 = vpop.f32.mrf.mxu1  ;;  %v2721_v27 = vadd.f32 %v2720_v3, %v5952_v55 }
 0x53b   :  { %v2986_v17 = vadd.f32 %v2985_v14, %v2897_v25 }
 0x53c   :  { %3622 = vperm.xlu1 %4654, %v3580_v48   ;;  %v2810_v29 = vadd.f32 %v2809_v42, %v2721_v27  ;;  %v2894_v48 = vadd.f32 %v6052_v11, %v2805_v43  ;;  %v3453_v42 = vadd.f32 %v6043_v37, %v3305_v33 }
 0x53d   :  { %v3098_v5 = vmax.f32 %v2986_v17, 0.0 }
 0x53e   :  { %v2983_v12 = vadd.f32 %v6054_v56, %v2894_v48  ;;  %v3485_v62 = vmul.f32 0.5, %v3453_v42 }
 0x53f   :  { %v3241_v26 = vmul.f32 %v5968_v47, %v3098_v5 }
 0x540   :  { %v2898_v16 = vpop.f32.mrf.mxu2  ;;  %v2987_v40 = vpop.f32.mrf.mxu3  ;;  %v3094_v38 = vmax.f32 %v2983_v12, 0.0  ;;  %4662 = vtanh.f32 %v3485_v62 }
 0x541   :  { %v2723_v60 = vpop.f32.mrf.mxu0  ;;  %v6061_v61 = vadd.f32 %v5882_v8, %v3241_v26  ;;  %v2981_v8 = vadd.f32 %v2980_v4, %v2892_v63  ;;  %v2899_v22 = vadd.f32 %v2898_v16, %v2810_v29  ;;  %v6527_v63 = vld [vmem:[#allocation51_spill] sm:$0xff] }
 0x542   :  { %v2724_v30 = vadd.f32 %v2723_v60, %v5952_v55  ;;  %v2812_v34 = vpop.f32.mrf.mxu1  ;;  %v6526_v60 = vld [vmem:[#allocation52_spill] sm:$0xff]  ;;  %v3237_v27 = vmul.f32 %v5968_v47, %v3094_v38 }
 0x543   :  { %v3090_v45 = vmax.f32 %v2981_v8, 0.0  ;;  %v2988_v25 = vadd.f32 %v2987_v40, %v2899_v22 }
 0x544   :  { %v2813_v49 = vadd.f32 %v2812_v34, %v2724_v30  ;;  %v3315_v34 = vpop.xlane.xlu2 %3314  ;;  %v3383_v6 = vadd.f32 %v6528_v54, %v3237_v27 }
 0x545   :  { %v3233_v1 = vmul.f32 %v5968_v47, %v3090_v45  ;;  %v3102_v57 = vmax.f32 %v2988_v25, 0.0 }
 0x546   :  { %v4663_v8 = vpop.eup %4662 }
 0x547   :  { %v3378_v5 = vadd.f32 %v5868_v59, %v3233_v1  ;;  %v3549_v22 = vadd.f32 1.0, %v4663_v8  ;;  %v6530_v1 = vld [vmem:[#allocation9_spill] sm:$0xff] }
 0x548   :  { %v2901_v32 = vpop.f32.mrf.mxu2  ;;  %v2990_v15 = vpop.f32.mrf.mxu3 }
 0x549   :  { %v2902_v21 = vadd.f32 %v2901_v32, %v2813_v49  ;;  %v2725_v44 = vpop.f32.mrf.mxu0  ;;  %v3245_v49 = vmul.f32 %v5968_v47, %v3102_v57 }
 0x54a   :  { %v2726_v18 = vadd.f32 %v2725_v44, %v5952_v55  ;;  %v2814_v20 = vpop.f32.mrf.mxu1 }
 0x54b   :  { %v2991_v52 = vadd.f32 %v2990_v15, %v2902_v21  ;;  %v3393_v32 = vadd.f32 %v6527_v63, %v3245_v49 }
 0x54c   :  { %v2815_v2 = vadd.f32 %v2814_v20, %v2726_v18 }
 0x54d   :  { %v3106_v10 = vmax.f32 %v2991_v52, 0.0 }
 0x54f   :  { %v3249_v46 = vmul.f32 %v5968_v47, %v3106_v10 }
 0x550   :  { %v2903_v9 = vpop.f32.mrf.mxu2  ;;  %v2992_v7 = vpop.f32.mrf.mxu3 }
 0x551   :  { %v2904_v36 = vadd.f32 %v2903_v9, %v2815_v2  ;;  %v2728_v58 = vpop.f32.mrf.mxu0  ;;  %v6072_v4 = vadd.f32 %v5896_v28, %v3249_v46 }
 0x552   :  { %v2817_v24 = vpop.f32.mrf.mxu1  ;;  %v2729_v3 = vadd.f32 %v2728_v58, %v5952_v55  ;;  %v3455_v58 = vadd.f32 %v6043_v37, %v3315_v34 }
 0x553   :  { %v2993_v14 = vadd.f32 %v2992_v7, %v2904_v36  ;;  %v6529_v36 = vld [vmem:[#allocation53_spill] sm:$0xff] }
 0x554   :  { %3374 = vadd.xlane.f32.xlu2 %v3373_v51  ;;  %v2818_v23 = vadd.f32 %v2817_v24, %v2729_v3 }
 0x555   :  { %v3110_v17 = vmax.f32 %v2993_v14, 0.0  ;;  %v3581_v14 = vmul.f32 0.5, %v3549_v22  ;;  %v3325_v22 = vpop.xlane.xlu1 %3324 }
 0x556   :  { %v3330_v52 = vpop.xlane.xlu2 %3329 }
 0x557   :  { %v3253_v28 = vmul.f32 %v5968_v47, %v3110_v17  ;;  %v3458_v46 = vadd.f32 %v6043_v37, %v3330_v52  ;;  %v3487_v17 = vmul.f32 0.5, %v3455_v58  ;;  %v3454_v58 = vadd.f32 %v6043_v37, %v6069_v53 }
 0x558   :  { %v2906_v26 = vpop.f32.mrf.mxu2  ;;  %v2995_v35 = vpop.f32.mrf.mxu3 }
 0x559   :  { %v2907_v16 = vadd.f32 %v2906_v26, %v2818_v23  ;;  %3379 = vadd.xlane.f32.xlu0 %v3378_v5  ;;  %v2730_v40 = vpop.f32.mrf.mxu0  ;;  %v6083_v11 = vadd.f32 %v6526_v60, %v3253_v28  ;;  %v3490_v3 = vmul.f32 0.5, %v3458_v46 }
 0x55a   :  { %v2731_v41 = vadd.f32 %v2730_v40, %v5952_v55  ;;  %v2819_v30 = vpop.f32.mrf.mxu1 }
 0x55b   :  { %v2996_v39 = vadd.f32 %v2995_v35, %v2907_v16  ;;  %4664 = vtanh.f32 %v3490_v3 }
 0x55c   :  { %v2820_v59 = vadd.f32 %v2819_v30, %v2731_v41  ;;  %4666 = vtanh.f32 %v3487_v17  ;;  %v6531_v17 = vld [vmem:[#allocation10_spill] sm:$0xff] }
 0x55d   :  { %v3114_v56 = vmax.f32 %v2996_v39, 0.0 }
 0x55f   :  { %v3257_v2 = vmul.f32 %v5968_v47, %v3114_v56 }
 0x560   :  { %v2908_v21 = vpop.f32.mrf.mxu2  ;;  %v2997_v44 = vpop.f32.mrf.mxu3 }
 0x561   :  { %v2909_v15 = vadd.f32 %v2908_v21, %v2820_v59  ;;  %3394 = vadd.xlane.f32.xlu0 %v3393_v32  ;;  %v2733_v13 = vpop.f32.mrf.mxu0  ;;  %v3408_v7 = vadd.f32 %v6529_v36, %v3257_v2  ;;  %v4665_v35 = vpop.eup %4664 }
 0x562   :  { %v2734_v18 = vadd.f32 %v2733_v13, %v5952_v55  ;;  %v2822_v20 = vpop.f32.mrf.mxu1  ;;  %v4667_v60 = vpop.eup %4666  ;;  %v3554_v41 = vadd.f32 1.0, %v4665_v35 }
 0x563   :  { %v2998_v29 = vadd.f32 %v2997_v44, %v2909_v15  ;;  %v3551_v34 = vadd.f32 1.0, %v4667_v60 }
 0x564   :  { %v2823_v10 = vadd.f32 %v2822_v20, %v2734_v18  ;;  %v3586_v56 = vmul.f32 0.5, %v3554_v41  ;;  %v3320_v18 = vpop.xlane.xlu0 %3319 }
 0x565   :  { %v3118_v45 = vmax.f32 %v2998_v29, 0.0 }
 0x566   :  { %3384 = vadd.xlane.f32.xlu1 %v3383_v6 }
 0x567   :  { %v3261_v9 = vmul.f32 %v5968_v47, %v3118_v45 }
 0x568   :  { %v2911_v43 = vpop.f32.mrf.mxu2  ;;  %v3000_v24 = vpop.f32.mrf.mxu3 }
 0x569   :  { %v2912_v33 = vadd.f32 %v2911_v43, %v2823_v10  ;;  %3409 = vadd.xlane.f32.xlu0 %v3408_v7  ;;  %v2735_v51 = vpop.f32.mrf.mxu0  ;;  %v6097_v25 = vadd.f32 %v6530_v1, %v3261_v9  ;;  %v6123_v43 = vpop.xlane.xlu1 %3339 }
 0x56a   :  { %v2824_v48 = vpop.f32.mrf.mxu1  ;;  %v2736_v9 = vadd.f32 %v2735_v51, %v5952_v55  ;;  %v3456_v51 = vadd.f32 %v6043_v37, %v3320_v18 }
 0x56b   :  { %v3001_v42 = vadd.f32 %v3000_v24, %v2912_v33 }
 0x56c   :  { %3627 = vperm.xlu2 %4652, %v3581_v14   ;;  %v6112_v6 = vpop.xlane.xlu0 %3334 }
 0x56d   :  { %v3122_v57 = vmax.f32 %v3001_v42, 0.0  ;;  %v3488_v42 = vmul.f32 0.5, %v3456_v51 }
 0x56e   :  { %v3345_v15 = vpop.xlane.xlu2 %3344 }
 0x56f   :  { %v3265_v28 = vmul.f32 %v5968_v47, %v3122_v57  ;;  %v3461_v53 = vadd.f32 %v6043_v37, %v3345_v15 }
 0x570   :  { %v2913_v23 = vpop.f32.mrf.mxu2  ;;  %v3002_v5 = vpop.f32.mrf.mxu3 }
 0x571   :  { %v2738_v12 = vpop.f32.mrf.mxu0  ;;  %v6101_v26 = vadd.f32 %v5924_v50, %v3265_v28  ;;  %v3583_v50 = vmul.f32 0.5, %v3551_v34 }
 0x572   :  { %v2739_v62 = vadd.f32 %v2738_v12, %v5952_v55  ;;  %v2827_v16 = vpop.f32.mrf.mxu1 }
 0x574   :  { %v2828_v40 = vadd.f32 %v2827_v16, %v2739_v62  ;;  %v3457_v62 = vadd.f32 %v6043_v37, %v3325_v22 }
 0x576   :  { %v6118_v36 = vpop.xlane.xlu0 %3349  ;;  %v3489_v60 = vmul.f32 0.5, %v3457_v62 }
 0x578   :  { %v2916_v30 = vpop.f32.mrf.mxu2  ;;  %v3005_v39 = vpop.f32.mrf.mxu3 }
 0x579   :  { %v2917_v49 = vadd.f32 %v2916_v30, %v2828_v40  ;;  %v2740_v38 = vpop.f32.mrf.mxu0 }
 0x57a   :  { %v2741_v59 = vadd.f32 %v2740_v38, %v5952_v55  ;;  %v2829_v32 = vpop.f32.mrf.mxu1 }
 0x57b   :  { %v3006_v63 = vadd.f32 %v3005_v39, %v2917_v49 }
 0x57c   :  { %v2830_v27 = vadd.f32 %v2829_v32, %v2741_v59 }
 0x57d   :  { %v3130_v21 = vmax.f32 %v3006_v63, 0.0  ;;  %3652 = vperm.xlu0 %4653, %v3586_v56  }
 0x57e   :  { %v6128_v14 = vpop.xlane.xlu1 %3354 }
 0x57f   :  { %v3273_v44 = vmul.f32 %v5968_v47, %v3130_v21  ;;  %3637 = vperm.xlu1 %4654, %v3583_v50  }
 0x580   :  { %v2918_v13 = vpop.f32.mrf.mxu2  ;;  %v3007_v52 = vpop.f32.mrf.mxu3 }
 0x581   :  { %v2919_v20 = vadd.f32 %v2918_v13, %v2830_v27  ;;  %v6107_v8 = vadd.f32 %v5938_v31, %v3273_v44  ;;  %v2825_v31 = vadd.f32 %v2824_v48, %v2736_v9  ;;  %v2743_v56 = vpop.f32.mrf.mxu0 }
 0x582   :  { %v2744_v63 = vadd.f32 %v2743_v56, %v5952_v55  ;;  %v2832_v27 = vpop.f32.mrf.mxu1 }
 0x583   :  { %v3008_v2 = vadd.f32 %v3007_v52, %v2919_v20  ;;  %v2914_v7 = vadd.f32 %v2913_v23, %v2825_v31 }
 0x584   :  { %v2833_v21 = vadd.f32 %v2832_v27, %v2744_v63  ;;  %v3463_v63 = vadd.f32 %v6043_v37, %v6128_v14 }
 0x585   :  { %v3134_v29 = vmax.f32 %v3008_v2, 0.0  ;;  %v3003_v33 = vadd.f32 %v3002_v5, %v2914_v7  ;;  %v3493_v5 = vmul.f32 0.5, %v3461_v53  ;;  %v3459_v2 = vadd.f32 %v6043_v37, %v6112_v6 }
 0x586   :  { %v6109_v10 = vpop.xlane.xlu2 %3359  ;;  %v3495_v27 = vmul.f32 0.5, %v3463_v63 }
 0x587   :  { %v3277_v54 = vmul.f32 %v5968_v47, %v3134_v29  ;;  %v3126_v1 = vmax.f32 %v3003_v33, 0.0  ;;  %v3491_v22 = vmul.f32 0.5, %v3459_v2  ;;  %v3460_v33 = vadd.f32 %v6043_v37, %v6123_v43 }
 0x588   :  { %v2921_v50 = vpop.f32.mrf.mxu2  ;;  %v3010_v13 = vpop.f32.mrf.mxu3 }
 0x589   :  { %v6115_v45 = vadd.f32 %v5947_v19, %v3277_v54  ;;  %v3486_v19 = vmul.f32 0.5, %v3454_v58  ;;  %v3269_v3 = vmul.f32 %v5968_v47, %v3126_v1  ;;  %v2922_v15 = vadd.f32 %v2921_v50, %v2833_v21 }
 0x58a   :  { %v3464_v54 = vadd.f32 %v6043_v37, %v6109_v10 }
 0x58b   :  { %4668 = vtanh.f32 %v3486_v19  ;;  %v3423_v57 = vadd.f32 %v6531_v17, %v3269_v3  ;;  %v3011_v18 = vadd.f32 %v3010_v13, %v2922_v15 }
 0x58c   :  { %4670 = vtanh.f32 %v3488_v42  ;;  %v3496_v31 = vmul.f32 0.5, %v3464_v54 }
 0x58d   :  { %4672 = vtanh.f32 %v3493_v5  ;;  %v3138_v20 = vmax.f32 %v3011_v18, 0.0 }
 0x58e   :  { %v3613_v46 = vpop.permute.xlu2 %3612  ;;  %v6125_v24 = vpop.xlane.xlu0 %3364  ;;  %4674 = vtanh.f32 %v3489_v60 }
 0x58f   :  { %3770 = vst [vmem:[#allocation6] sm:$0xff] %v3613_v46  ;;  %v3281_v29 = vmul.f32 %v5968_v47, %v3138_v20  ;;  %v6532_v46 = vld [vmem:[#allocation11_spill] sm:$0xff]  ;;  %4676 = vtanh.f32 %v3491_v22 }
 0x590   :  { %4678 = vtanh.f32 %v3496_v31  ;;  %v2923_v54 = vpop.f32.mrf.mxu2 }
 0x591   :  { %v3438_v9 = vadd.f32 %v6532_v46, %v3281_v29  ;;  %v2834_v29 = vpop.f32.mrf.mxu1 }
 0x595   :  { %3389 = vadd.xlane.f32.xlu2 %v6061_v61  ;;  %v4669_v61 = vpop.eup %4668 }
 0x596   :  { %v6133_v28 = vpop.xlane.xlu1 %3369  ;;  %v3550_v23 = vadd.f32 1.0, %v4669_v61  ;;  %v4671_v16 = vpop.eup %4670 }
 0x597   :  { %v3552_v40 = vadd.f32 1.0, %v4671_v16  ;;  %v4673_v41 = vpop.eup %4672 }
 0x598   :  { %v3582_v12 = vmul.f32 0.5, %v3550_v23  ;;  %v3557_v34 = vadd.f32 1.0, %v4673_v41  ;;  %v4675_v49 = vpop.eup %4674 }
 0x599   :  { %v3584_v30 = vmul.f32 0.5, %v3552_v40  ;;  %v3553_v38 = vadd.f32 1.0, %v4675_v49  ;;  %v4677_v6 = vpop.eup %4676 }
 0x59a   :  { %v3589_v39 = vmul.f32 0.5, %v3557_v34  ;;  %v4679_v1 = vpop.eup %4678  ;;  %v3555_v51 = vadd.f32 1.0, %v4677_v6  ;;  %v3462_v34 = vadd.f32 %v6043_v37, %v6118_v36  ;;  %v3012_v6 = vpop.f32.mrf.mxu3 }
 0x59b   :  { %v3560_v42 = vadd.f32 1.0, %v4679_v1 }
 0x59c   :  { %v3587_v61 = vmul.f32 0.5, %v3555_v51  ;;  %v3494_v49 = vmul.f32 0.5, %v3462_v34 }
 0x59d   :  { %v3592_v53 = vmul.f32 0.5, %v3560_v42 }
 0x5a1   :  { %v3618_v48 = vpop.permute.xlu0 %3617 }
 0x5a2   :  { %3771 = vst [vmem:[#allocation6 + $0x8] sm:$0xff] %v3618_v48  ;;  %v3492_v48 = vmul.f32 0.5, %v3460_v33 }
 0x5a7   :  { %3424 = vadd.xlane.f32.xlu0 %v3423_v57 }
 0x5a9   :  { %3399 = vadd.xlane.f32.xlu1 %v6072_v4  ;;  %v3585_v4 = vmul.f32 0.5, %v3553_v38 }
 0x5ad   :  { %3632 = vperm.xlu2 %4652, %v3582_v12  }
 0x5ae   :  { %v3623_v35 = vpop.permute.xlu1 %3622 }
 0x5af   :  { %3772 = vst [vmem:[#allocation6 + $0x10] sm:$0xff] %v3623_v35 }
 0x5b5   :  { %3642 = vperm.xlu2 %4652, %v3584_v30  }
 0x5bb   :  { %3667 = vperm.xlu0 %4653, %v3589_v39  }
 0x5c2   :  { %3647 = vperm.xlu1 %4654, %v3585_v4  }
 0x5c7   :  { %v3375_v59 = vpop.xlane.xlu2 %3374 }
 0x5cc   :  { %v6138_v44 = vpop.xlane.xlu0 %3379 }
 0x5cf   :  { %v3628_v32 = vpop.permute.xlu2 %3627 }
 0x5d0   :  { %3773 = vst [vmem:[#allocation6 + $0x18] sm:$0xff] %v3628_v32 }
 0x5d4   :  { %v6140_v52 = vpop.xlane.xlu0 %3394 }
 0x5d9   :  { %v6151_v58 = vpop.xlane.xlu1 %3384 }
 0x5dc   :  { %v6149_v7 = vpop.xlane.xlu0 %3409 }
 0x5de   :  { %3404 = vadd.xlane.f32.xlu2 %v6083_v11  ;;  %v3467_v11 = vadd.f32 %v6043_v37, %v3375_v59 }
 0x5e0   :  { %v3499_v10 = vmul.f32 0.5, %v3467_v11  ;;  %v3465_v11 = vadd.f32 %v6043_v37, %v6125_v24  ;;  %v3471_v24 = vadd.f32 %v6043_v37, %v6140_v52  ;;  %v3469_v52 = vadd.f32 %v6043_v37, %v6151_v58 }
 0x5e2   :  { %4680 = vtanh.f32 %v3499_v10 }
 0x5e3   :  { %4682 = vtanh.f32 %v3492_v48 }
 0x5e5   :  { %3439 = vadd.xlane.f32.xlu0 %v3438_v9 }
 0x5e8   :  { %v4681_v17 = vpop.eup %4680 }
 0x5e9   :  { %v4683_v57 = vpop.eup %4682 }
 0x5ea   :  { %v3556_v23 = vadd.f32 1.0, %v4683_v57 }
 0x5ec   :  { %3414 = vadd.xlane.f32.xlu1 %v6097_v25  ;;  %v3563_v25 = vadd.f32 1.0, %v4681_v17  ;;  %v3588_v5 = vmul.f32 0.5, %v3556_v23 }
 0x5ee   :  { %v3595_v43 = vmul.f32 0.5, %v3563_v25  ;;  %v3466_v25 = vadd.f32 %v6043_v37, %v6133_v28 }
 0x5ef   :  { %v3653_v19 = vpop.permute.xlu0 %3652 }
 0x5f0   :  { %3778 = vst [vmem:[#allocation6 + $0x40] sm:$0xff] %v3653_v19  ;;  %v3497_v19 = vmul.f32 0.5, %v3465_v11 }
 0x5f1   :  { %v3638_v3 = vpop.permute.xlu1 %3637 }
 0x5f2   :  { %3775 = vst [vmem:[#allocation6 + $0x28] sm:$0xff] %v3638_v3 }
 0x5f6   :  { %3657 = vperm.xlu2 %4652, %v3587_v61  }
 0x5f9   :  { %3682 = vperm.xlu0 %4653, %v3592_v53  }
 0x601   :  { %3697 = vperm.xlu0 %4653, %v3595_v43   ;;  %v3498_v43 = vmul.f32 0.5, %v3466_v25 }
 0x605   :  { %3662 = vperm.xlu1 %4654, %v3588_v5  }
 0x608   :  { %v3390_v12 = vpop.xlane.xlu2 %3389 }
 0x609   :  { %v3470_v62 = vadd.f32 %v6043_v37, %v3390_v12 }
 0x60b   :  { %v3502_v16 = vmul.f32 0.5, %v3470_v62 }
 0x60d   :  { %4684 = vtanh.f32 %v3502_v16  ;;  %v3501_v16 = vmul.f32 0.5, %v3469_v52 }
 0x60e   :  { %4686 = vtanh.f32 %v3494_v49 }
 0x60f   :  { %4688 = vtanh.f32 %v3495_v27 }
 0x610   :  { %v3633_v35 = vpop.permute.xlu2 %3632 }
 0x611   :  { %3774 = vst [vmem:[#allocation6 + $0x20] sm:$0xff] %v3633_v35 }
 0x613   :  { %v4685_v40 = vpop.eup %4684 }
 0x614   :  { %v3566_v60 = vadd.f32 1.0, %v4685_v40  ;;  %v4687_v59 = vpop.eup %4686 }
 0x615   :  { %v3558_v56 = vadd.f32 1.0, %v4687_v59  ;;  %v4689_v36 = vpop.eup %4688 }
 0x616   :  { %v3598_v41 = vmul.f32 0.5, %v3566_v60  ;;  %v3559_v50 = vadd.f32 1.0, %v4689_v36 }
 0x618   :  { %3712 = vperm.xlu0 %4653, %v3598_v41   ;;  %v3643_v30 = vpop.permute.xlu2 %3642  ;;  %v3591_v21 = vmul.f32 0.5, %v3559_v50 }
 0x619   :  { %3776 = vst [vmem:[#allocation6 + $0x30] sm:$0xff] %v3643_v30 }
 0x61a   :  { %v6161_v39 = vpop.xlane.xlu0 %3424 }
 0x61b   :  { %v3477_v35 = vadd.f32 %v6043_v37, %v6161_v39 }
 0x61c   :  { %v6163_v38 = vpop.xlane.xlu1 %3399 }
 0x61d   :  { %v3509_v30 = vmul.f32 0.5, %v3477_v35 }
 0x61f   :  { %3419 = vadd.xlane.f32.xlu2 %v6101_v26  ;;  %v3590_v26 = vmul.f32 0.5, %v3558_v56 }
 0x62d   :  { %v3668_v4 = vpop.permute.xlu0 %3667 }
 0x62e   :  { %3781 = vst [vmem:[#allocation6 + $0x58] sm:$0xff] %v3668_v4 }
 0x62f   :  { %3429 = vadd.xlane.f32.xlu1 %v6107_v8  ;;  %v2745_v8 = vpop.f32.mrf.mxu0 }
 0x630   :  { %v2746_v2 = vadd.f32 %v2745_v8, %v5952_v55  ;;  %v3468_v55 = vadd.f32 %v6043_v37, %v6138_v44  ;;  %v3503_v44 = vmul.f32 0.5, %v3471_v24 }
 0x632   :  { %v2835_v46 = vadd.f32 %v2834_v29, %v2746_v2  ;;  %v3500_v48 = vmul.f32 0.5, %v3468_v55 }
 0x634   :  { %v3648_v32 = vpop.permute.xlu1 %3647  ;;  %v2924_v31 = vadd.f32 %v2923_v54, %v2835_v46 }
 0x635   :  { %3777 = vst [vmem:[#allocation6 + $0x38] sm:$0xff] %v3648_v32 }
 0x636   :  { %v3013_v10 = vadd.f32 %v3012_v6, %v2924_v31 }
 0x637   :  { %3672 = vperm.xlu2 %4652, %v3590_v26  }
 0x638   :  { %v3142_v1 = vmax.f32 %v3013_v10, 0.0 }
 0x63a   :  { %v3285_v3 = vmul.f32 %v5968_v47, %v3142_v1 }
 0x63c   :  { %v3443_v61 = vadd.f32 %v5965_v0, %v3285_v3  ;;  %v3474_v0 = vadd.f32 %v6043_v37, %v6149_v7  ;;  %v3472_v7 = vadd.f32 %v6043_v37, %v6163_v38 }
 0x63e   :  { %v3506_v12 = vmul.f32 0.5, %v3474_v0  ;;  %v3504_v58 = vmul.f32 0.5, %v3472_v7 }
 0x648   :  { %3677 = vperm.xlu1 %4654, %v3591_v21  }
 0x651   :  { %v3405_v15 = vpop.xlane.xlu2 %3404 }
 0x652   :  { %v3473_v13 = vadd.f32 %v6043_v37, %v3405_v15 }
 0x654   :  { %v3505_v18 = vmul.f32 0.5, %v3473_v13 }
 0x656   :  { %4690 = vtanh.f32 %v3505_v18 }
 0x657   :  { %4692 = vtanh.f32 %v3497_v19 }
 0x658   :  { %v3440_v33 = vpop.xlane.xlu0 %3439  ;;  %4694 = vtanh.f32 %v3500_v48 }
 0x659   :  { %v3658_v20 = vpop.permute.xlu2 %3657  ;;  %4696 = vtanh.f32 %v3503_v44  ;;  %v3480_v59 = vadd.f32 %v6043_v37, %v3440_v33 }
 0x65a   :  { %3779 = vst [vmem:[#allocation6 + $0x48] sm:$0xff] %v3658_v20  ;;  %4698 = vtanh.f32 %v3498_v43 }
 0x65b   :  { %4700 = vtanh.f32 %v3506_v12  ;;  %v3512_v38 = vmul.f32 0.5, %v3480_v59 }
 0x65c   :  { %v4691_v14 = vpop.eup %4690  ;;  %4702 = vtanh.f32 %v3501_v16 }
 0x65d   :  { %v3569_v22 = vadd.f32 1.0, %v4691_v14  ;;  %v4693_v42 = vpop.eup %4692  ;;  %4704 = vtanh.f32 %v3509_v30 }
 0x65e   :  { %v3561_v53 = vadd.f32 1.0, %v4693_v42  ;;  %v4695_v47 = vpop.eup %4694  ;;  %4706 = vtanh.f32 %v3504_v58 }
 0x65f   :  { %v3601_v9 = vmul.f32 0.5, %v3569_v22  ;;  %v3564_v5 = vadd.f32 1.0, %v4695_v47  ;;  %v4697_v28 = vpop.eup %4696  ;;  %4708 = vtanh.f32 %v3512_v38 }
 0x660   :  { %3434 = vadd.xlane.f32.xlu2 %v6115_v45  ;;  %v3415_v45 = vpop.xlane.xlu1 %3414  ;;  %v3593_v57 = vmul.f32 0.5, %v3561_v53  ;;  %v4699_v40 = vpop.eup %4698  ;;  %v3567_v60 = vadd.f32 1.0, %v4697_v28 }
 0x661   :  { %3727 = vperm.xlu0 %4653, %v3601_v9   ;;  %v3596_v62 = vmul.f32 0.5, %v3564_v5  ;;  %v3562_v41 = vadd.f32 1.0, %v4699_v40  ;;  %v4701_v49 = vpop.eup %4700  ;;  %v3475_v39 = vadd.f32 %v6043_v37, %v3415_v45 }
 0x662   :  { %v3599_v34 = vmul.f32 0.5, %v3567_v60  ;;  %v4703_v56 = vpop.eup %4702  ;;  %v3570_v63 = vadd.f32 1.0, %v4701_v49 }
 0x663   :  { %v3594_v4 = vmul.f32 0.5, %v3562_v41  ;;  %v3565_v26 = vadd.f32 1.0, %v4703_v56  ;;  %v4705_v36 = vpop.eup %4704  ;;  %v3507_v50 = vmul.f32 0.5, %v3475_v39 }
 0x664   :  { %v3602_v27 = vmul.f32 0.5, %v3570_v63  ;;  %v4707_v15 = vpop.eup %4706  ;;  %v3573_v13 = vadd.f32 1.0, %v4705_v36 }
 0x665   :  { %v3597_v21 = vmul.f32 0.5, %v3565_v26  ;;  %4710 = vtanh.f32 %v3507_v50  ;;  %v3568_v20 = vadd.f32 1.0, %v4707_v15  ;;  %v4709_v29 = vpop.eup %4708 }
 0x666   :  { %v3605_v14 = vmul.f32 0.5, %v3573_v13  ;;  %v3576_v46 = vadd.f32 1.0, %v4709_v29 }
 0x667   :  { %v3600_v54 = vmul.f32 0.5, %v3568_v20 }
 0x668   :  { %v3608_v6 = vmul.f32 0.5, %v3576_v46 }
 0x66b   :  { %v3683_v51 = vpop.permute.xlu0 %3682  ;;  %v4711_v22 = vpop.eup %4710 }
 0x66c   :  { %3784 = vst [vmem:[#allocation6 + $0x70] sm:$0xff] %v3683_v51  ;;  %v3571_v11 = vadd.f32 1.0, %v4711_v22 }
 0x66e   :  { %v3603_v19 = vmul.f32 0.5, %v3571_v11 }
 0x672   :  { %3444 = vadd.xlane.f32.xlu1 %v3443_v61 }
 0x673   :  { %v3698_v17 = vpop.permute.xlu0 %3697 }
 0x674   :  { %3787 = vst [vmem:[#allocation6 + $0x88] sm:$0xff] %v3698_v17 }
 0x677   :  { %v3663_v23 = vpop.permute.xlu1 %3662 }
 0x678   :  { %3780 = vst [vmem:[#allocation6 + $0x50] sm:$0xff] %v3663_v23  ;;  %3687 = vperm.xlu2 %4652, %v3593_v57  }
 0x680   :  { %3702 = vperm.xlu2 %4652, %v3596_v62  }
 0x688   :  { %3717 = vperm.xlu2 %4652, %v3599_v34  }
 0x68a   :  { %v3713_v32 = vpop.permute.xlu0 %3712 }
 0x68b   :  { %3790 = vst [vmem:[#allocation6 + $0xa0] sm:$0xff] %v3713_v32  ;;  %3692 = vperm.xlu1 %4654, %v3594_v4  }
 0x690   :  { %3732 = vperm.xlu2 %4652, %v3602_v27  }
 0x692   :  { %v3420_v18 = vpop.xlane.xlu2 %3419 }
 0x693   :  { %v3476_v8 = vadd.f32 %v6043_v37, %v3420_v18  ;;  %3707 = vperm.xlu1 %4654, %v3597_v21  }
 0x695   :  { %v3508_v2 = vmul.f32 0.5, %v3476_v8 }
 0x697   :  { %4712 = vtanh.f32 %v3508_v2 }
 0x698   :  { %3747 = vperm.xlu2 %4652, %v3605_v14  }
 0x69a   :  { %v3673_v9 = vpop.permute.xlu2 %3672 }
 0x69b   :  { %3782 = vst [vmem:[#allocation6 + $0x60] sm:$0xff] %v3673_v9  ;;  %3722 = vperm.xlu1 %4654, %v3600_v54  }
 0x69d   :  { %v4713_v31 = vpop.eup %4712 }
 0x69e   :  { %v3572_v33 = vadd.f32 1.0, %v4713_v31 }
 0x6a0   :  { %v3604_v10 = vmul.f32 0.5, %v3572_v33  ;;  %3762 = vperm.xlu2 %4652, %v3608_v6  }
 0x6a2   :  { %v3430_v1 = vpop.xlane.xlu1 %3429  ;;  %3742 = vperm.xlu0 %4653, %v3604_v10  }
 0x6a3   :  { %v3478_v55 = vadd.f32 %v6043_v37, %v3430_v1  ;;  %3737 = vperm.xlu1 %4654, %v3603_v19  }
 0x6a5   :  { %v3510_v51 = vmul.f32 0.5, %v3478_v55 }
 0x6a7   :  { %4714 = vtanh.f32 %v3510_v51 }
 0x6ad   :  { %v4715_v3 = vpop.eup %4714 }
 0x6ae   :  { %v3574_v48 = vadd.f32 1.0, %v4715_v3 }
 0x6b0   :  { %v3606_v42 = vmul.f32 0.5, %v3574_v48 }
 0x6b2   :  { %3752 = vperm.xlu1 %4654, %v3606_v42  }
 0x6ba   :  { %v3678_v45 = vpop.permute.xlu1 %3677 }
 0x6bb   :  { %3783 = vst [vmem:[#allocation6 + $0x68] sm:$0xff] %v3678_v45 }
 0x6d3   :  { %v3435_v61 = vpop.xlane.xlu2 %3434  ;;  %v3728_v24 = vpop.permute.xlu0 %3727 }
 0x6d4   :  { %v3479_v53 = vadd.f32 %v6043_v37, %v3435_v61  ;;  %3793 = vst [vmem:[#allocation6 + $0xb8] sm:$0xff] %v3728_v24 }
 0x6d6   :  { %v3511_v17 = vmul.f32 0.5, %v3479_v53 }
 0x6d8   :  { %4716 = vtanh.f32 %v3511_v17 }
 0x6db   :  { %v3688_v25 = vpop.permute.xlu2 %3687 }
 0x6dc   :  { %3785 = vst [vmem:[#allocation6 + $0x78] sm:$0xff] %v3688_v25 }
 0x6de   :  { %v4717_v44 = vpop.eup %4716 }
 0x6df   :  { %v3575_v57 = vadd.f32 1.0, %v4717_v44 }
 0x6e1   :  { %v3607_v47 = vmul.f32 0.5, %v3575_v57 }
 0x6e3   :  { %3757 = vperm.xlu0 %4653, %v3607_v47   ;;  %v3703_v23 = vpop.permute.xlu2 %3702 }
 0x6e4   :  { %3788 = vst [vmem:[#allocation6 + $0x90] sm:$0xff] %v3703_v23 }
 0x6e5   :  { %v3445_v43 = vpop.xlane.xlu1 %3444 }
 0x6e6   :  { %v3481_v0 = vadd.f32 %v6043_v37, %v3445_v43 }
 0x6e8   :  { %v3513_v5 = vmul.f32 0.5, %v3481_v0 }
 0x6ea   :  { %4718 = vtanh.f32 %v3513_v5 }
 0x6eb   :  { %v3718_v52 = vpop.permute.xlu2 %3717 }
 0x6ec   :  { %3791 = vst [vmem:[#allocation6 + $0xa8] sm:$0xff] %v3718_v52 }
 0x6f0   :  { %v4719_v12 = vpop.eup %4718 }
 0x6f1   :  { %v3577_v62 = vadd.f32 1.0, %v4719_v12 }
 0x6f3   :  { %v3609_v28 = vmul.f32 0.5, %v3577_v62  ;;  %v3733_v16 = vpop.permute.xlu2 %3732 }
 0x6f4   :  { %3794 = vst [vmem:[#allocation6 + $0xc0] sm:$0xff] %v3733_v16 }
 0x6f5   :  { %3767 = vperm.xlu1 %4654, %v3609_v28  }
 0x6fb   :  { %v3748_v35 = vpop.permute.xlu2 %3747 }
 0x6fc   :  { %3797 = vst [vmem:[#allocation6 + $0xd8] sm:$0xff] %v3748_v35 }
 0x6fd   :  { %v3693_v40 = vpop.permute.xlu1 %3692 }
 0x6fe   :  { %3786 = vst [vmem:[#allocation6 + $0x80] sm:$0xff] %v3693_v40 }
 0x703   :  { %v3763_v60 = vpop.permute.xlu2 %3762 }
 0x704   :  { %3800 = vst [vmem:[#allocation6 + $0xf0] sm:$0xff] %v3763_v60 }
 0x705   :  { %v3708_v7 = vpop.permute.xlu1 %3707 }
 0x706   :  { %3789 = vst [vmem:[#allocation6 + $0x98] sm:$0xff] %v3708_v7 }
 0x70d   :  { %v3723_v41 = vpop.permute.xlu1 %3722 }
 0x70e   :  { %3792 = vst [vmem:[#allocation6 + $0xb0] sm:$0xff] %v3723_v41 }
 0x714   :  { %v3743_v37 = vpop.permute.xlu0 %3742 }
 0x715   :  { %3796 = vst [vmem:[#allocation6 + $0xd0] sm:$0xff] %v3743_v37  ;;  %v3738_v30 = vpop.permute.xlu1 %3737 }
 0x716   :  { %3795 = vst [vmem:[#allocation6 + $0xc8] sm:$0xff] %v3738_v30 }
 0x724   :  { %v3753_v34 = vpop.permute.xlu1 %3752 }
 0x725   :  { %3798 = vst [vmem:[#allocation6 + $0xe0] sm:$0xff] %v3753_v34 }
 0x755   :  { %v3758_v49 = vpop.permute.xlu0 %3757 }
 0x756   :  { %3799 = vst [vmem:[#allocation6 + $0xe8] sm:$0xff] %v3758_v49 }
 0x767   :  { %v3768_v58 = vpop.permute.xlu1 %3767 }
 0x768   :  { %3801 = vst [vmem:[#allocation6 + $0xf8] sm:$0xff] %v3768_v58 }
 0x769   :  { %3814 = dma.vmem_to_hbm [thread:$0]  %s3807_s25, 4096, %s3809_s28, [#allocation5], %s4778_s29, %s4778_s29, %s4779_s30  }
 0x76a   :  { %4771 = dma.done.wait [#allocation5], 4096  }
 0x76b   :  { %4772 = vsyncadd [#allocation5], 4294963200 }
 0x76c   :  { %3819 = vsyncpa [#allocation4], 1 }
 0x76d   :  { %3820 = vsyncpa [#allocation5], 1 }

</bundles_post_ra>
